<compile_context>
chip_gen: v7x
topology: tpu7x:2x2x1
jax: 0.10.0
libtpu: 0.0.40
codegen_flags: <defaults>
</compile_context>

<pallas_src>
import functools
import math

import jax
import jax.numpy as jnp
from jax.experimental import pallas as pl
from jax.experimental.pallas import tpu as pltpu

BN_EPS = 1e-5


# --------------------------------- kernel ------------------------------------

def _decoder_stage_kernel(xnn_ref, xs_ref, masks_ref, wup_ref, wsam_ref,
                          wgeca_ref, wpsi_ref, wres_ref, o_ref,
                          stat_ref, slab_ref, t_ref, cat_ref, pad3_ref,
                          col9_ref, *, num_res, HW, Ww, Co, Cs, PS, PT, P3):
    f32 = jnp.float32

    # --- zero only the halo strips (interiors are fully overwritten before
    #     every read); strip starts/sizes are 128-lane aligned -----------------
    stat_ref[:, 0:PS] = jnp.zeros((2, PS), f32)
    stat_ref[:, PS + HW:PS + HW + PS] = jnp.zeros((2, PS), f32)
    t_ref[:, 0:PT] = jnp.zeros((8, PT), f32)
    t_ref[:, PT + HW:PT + HW + PT] = jnp.zeros((8, PT), f32)
    pad3_ref[:, 0:P3] = jnp.zeros((Co, P3), f32)
    pad3_ref[:, P3 + HW:P3 + HW + P3] = jnp.zeros((Co, P3), f32)
    slab_ref[14:16, :] = jnp.zeros((2, HW), f32)

    # --- SpatialAttention: x * sigmoid(conv7x7([mean_c x, max_c x])) ---------
    # Two-stage shift scheme: stage 1 = 14 row-shifted taps (offsets di*Ww)
    # folded into ONE small MXU matmul; stage 2 = 7 column shifts (+/-3) with
    # column-validity masks.
    def sam(x, wmat):
        stat_ref[0:1, PS:PS + HW] = jnp.mean(x, axis=0, keepdims=True)
        stat_ref[1:2, PS:PS + HW] = jnp.max(x, axis=0, keepdims=True)
        for c in range(2):
            for ki in range(7):
                off = PS + (ki - 3) * Ww
                slab_ref[c * 7 + ki:c * 7 + ki + 1, :] = \
                    stat_ref[c:c + 1, off:off + HW]
        t_ref[:, PT:PT + HW] = jnp.dot(wmat, slab_ref[...],
                                       preferred_element_type=f32)
        score = jnp.zeros((1, HW), f32)
        for kj in range(7):
            dj = kj - 3
            score = score + (t_ref[kj:kj + 1, PT + dj:PT + dj + HW]
                             * masks_ref[kj:kj + 1, :])
        return x * jax.nn.sigmoid(score)

    # --- 3x3 same-padded conv: im2col-in-VMEM then one (C,9C)x(9C,HW) matmul -
    def conv3x3(x, w):
        pad3_ref[:, P3:P3 + HW] = x
        t = 0
        for di in (-1, 0, 1):
            for dj in (-1, 0, 1):
                off = P3 + di * Ww + dj
                v = pad3_ref[:, off:off + HW]
                if dj != 0:
                    v = v * masks_ref[dj + 3:dj + 4, :]
                col9_ref[t * Co:(t + 1) * Co, :] = v
                t += 1
        return jnp.dot(w, col9_ref[...], preferred_element_type=f32)

    # --- ConvTranspose2d(k=2,s=2) + folded BN + ReLU --------------------------
    # xnn is the nearest-upsampled deep feature; tap masks (built from iota in
    # the wrapper) select which of the 4 weight blocks applies per pixel.
    y4 = jnp.dot(wup_ref[...], xnn_ref[0, :, :], preferred_element_type=f32)
    xu = (masks_ref[7:8, :] * y4[0:Co, :]
          + masks_ref[8:9, :] * y4[Co:2 * Co, :]
          + masks_ref[9:10, :] * y4[2 * Co:3 * Co, :]
          + masks_ref[10:11, :] * y4[3 * Co:4 * Co, :])
    xu = jnp.maximum(xu, 0.0)

    # --- spatial attention on the upsampled path ------------------------------
    xu = sam(xu, wsam_ref[0:8, :])

    # --- csfg skip fusion (attention gate) + concat + 1x1 channel_adjust ------
    xs = xs_ref[0, :, :]
    cat_ref[0:Co, :] = xu
    cat_ref[Co:Co + Cs, :] = xs
    h = jnp.maximum(jnp.dot(wgeca_ref[0:Cs, :], cat_ref[...],
                            preferred_element_type=f32), 0.0)
    a = jax.nn.sigmoid(jnp.dot(wpsi_ref[...], h, preferred_element_type=f32))
    cat_ref[Co:Co + Cs, :] = xs * a           # gated skip replaces raw skip
    x = jnp.maximum(jnp.dot(wgeca_ref[Cs:Cs + Co, :], cat_ref[...],
                            preferred_element_type=f32), 0.0)

    # --- spatial attention on the fused features ------------------------------
    x = sam(x, wsam_ref[8:16, :])

    # --- residual blocks: conv3x3+BN+ReLU -> conv3x3+BN -> +x -> ReLU ---------
    for r in range(num_res):
        w1 = wres_ref[(2 * r) * Co:(2 * r + 1) * Co, :]
        w2 = wres_ref[(2 * r + 1) * Co:(2 * r + 2) * Co, :]
        hh = jnp.maximum(conv3x3(x, w1), 0.0)
        # TODO(synk): Dropout(p=0.05) of the first ResidualBlock is identity here.
        y = conv3x3(hh, w2)
        x = jnp.maximum(y + x, 0.0)

    o_ref[0, :, :] = x


# ---------------------------- wrapper-side helpers ----------------------------

def _ceil128(n):
    return ((n + 127) // 128) * 128


def _build_masks(Hh, Ww):
    """(11, HW): rows 0..6 column-validity for dj=-3..3, rows 7..10 tap masks."""
    HW = Hh * Ww
    p = jnp.arange(HW, dtype=jnp.int32)
    col = p % Ww
    row = p // Ww
    rows = []
    for dj in range(-3, 4):
        rows.append(((col + dj >= 0) & (col + dj < Ww)).astype(jnp.float32))
    for di in range(2):
        for dj in range(2):
            rows.append((((row % 2) == di) & ((col % 2) == dj))
                        .astype(jnp.float32))
    return jnp.stack(rows, axis=0)


def _sam_wmat(w_conv):
    """(1,2,7,7) SAM conv weight -> (8,16): [kj, c*7+ki] = w[c,ki,kj], zero-padded."""
    w = w_conv.reshape(2, 7, 7).astype(jnp.float32)
    m = jnp.transpose(w, (2, 0, 1)).reshape(7, 14)
    return jnp.pad(m, ((0, 1), (0, 2)))


def _conv3_w(w, scale):
    """(Co,Ci,3,3) -> (Co, 9*Ci), columns ordered (tap, cin); BN scale folded."""
    co, ci = w.shape[0], w.shape[1]
    return (jnp.transpose(w, (0, 2, 3, 1)).reshape(co, 9 * ci)
            * scale).astype(jnp.float32)


# ----------------------------- DecoderStage forward ---------------------------

def decoder_stage_forward(params, x_deep_nchw, x_skip_nchw):
    B, Cd, H, W = x_deep_nchw.shape
    Bs, Cs, Hh, Ww = x_skip_nchw.shape
    assert Bs == B and Hh == 2 * H and Ww == 2 * W  # F.interpolate branch not taken
    Co = params["up_w"].shape[1]
    HW = Hh * Ww
    n_res = len(params["res"])
    bn = 1.0 / math.sqrt(1.0 + BN_EPS)      # eval-mode BN at init (mean 0, var 1)

    PS = max(128, _ceil128(3 * Ww))         # SAM row-shift halo (lane aligned)
    PT = 128                                # SAM column-shift halo
    P3 = max(128, _ceil128(Ww + 1))         # 3x3 conv halo

    # Nearest-neighbour 2x expansion of the deep input (one XLA broadcast);
    # everything downstream is a single fused Pallas kernel.
    x_nn = jnp.broadcast_to(
        x_deep_nchw.reshape(B, Cd, H, 1, W, 1).astype(jnp.float32),
        (B, Cd, H, 2, W, 2)).reshape(B, Cd, HW)
    xs_flat = x_skip_nchw.reshape(B, Cs, HW).astype(jnp.float32)

    masks = _build_masks(Hh, Ww)                                    # (11, HW)

    # ConvTranspose2d weight (Cd, Co, 2, 2) -> rows (tap=2*di+dj, cout)
    w_up4 = (jnp.transpose(params["up_w"], (2, 3, 1, 0))
             .reshape(4 * Co, Cd).astype(jnp.float32) * bn)

    w_sam = jnp.concatenate([_sam_wmat(params["sam_up_w"]),
                             _sam_wmat(params["sam_fuse_w"])], axis=0)  # (16,16)

    wg = params["csfg_wg"][:, :, 0, 0].astype(jnp.float32)          # (Cs, Co)
    we = params["csfg_we"][:, :, 0, 0].astype(jnp.float32)          # (Cs, Cs)
    wge = jnp.concatenate([wg, we], axis=1)                         # (Cs, Co+Cs)
    wca = params["ca_w"][:, :, 0, 0].astype(jnp.float32) * bn       # (Co, Co+Cs)
    w_geca = jnp.concatenate([wge, wca], axis=0)                    # (Cs+Co, Co+Cs)
    w_psi = params["csfg_wp"][:, :, 0, 0].astype(jnp.float32)       # (Cs, Cs)

    w_res = jnp.concatenate(
        [_conv3_w(w, bn) for pair in params["res"] for w in pair], axis=0)

    kernel = functools.partial(_decoder_stage_kernel, num_res=n_res, HW=HW,
                               Ww=Ww, Co=Co, Cs=Cs, PS=PS, PT=PT, P3=P3)

    out = pl.pallas_call(
        kernel,
        out_shape=jax.ShapeDtypeStruct((B, Co, HW), jnp.float32),
        grid=(B,),
        in_specs=[
            pl.BlockSpec((1, Cd, HW), lambda b: (b, 0, 0)),
            pl.BlockSpec((1, Cs, HW), lambda b: (b, 0, 0)),
            pl.BlockSpec((11, HW), lambda b: (0, 0)),
            pl.BlockSpec((4 * Co, Cd), lambda b: (0, 0)),
            pl.BlockSpec((16, 16), lambda b: (0, 0)),
            pl.BlockSpec((Cs + Co, Co + Cs), lambda b: (0, 0)),
            pl.BlockSpec((Cs, Cs), lambda b: (0, 0)),
            pl.BlockSpec((2 * n_res * Co, 9 * Co), lambda b: (0, 0)),
        ],
        out_specs=pl.BlockSpec((1, Co, HW), lambda b: (b, 0, 0)),
        scratch_shapes=[
            pltpu.VMEM((2, HW + 2 * PS), jnp.float32),     # SAM mean/max halo
            pltpu.VMEM((16, HW), jnp.float32),             # SAM row-shift slab
            pltpu.VMEM((8, HW + 2 * PT), jnp.float32),     # SAM t halo
            pltpu.VMEM((Co + Cs, HW), jnp.float32),        # [x_up; x_skip] slab
            pltpu.VMEM((Co, HW + 2 * P3), jnp.float32),    # 3x3 conv halo
            pltpu.VMEM((9 * Co, HW), jnp.float32),         # 3x3 im2col slab
        ],
        compiler_params=pltpu.CompilerParams(dimension_semantics=("parallel",)),
    )(x_nn, xs_flat, masks, w_up4, w_sam, w_geca, w_psi, w_res)

    return out.reshape(B, Co, Hh, Ww)                               # NCHW out


# ------------------------------- parameter init --------------------------------

def _kaiming(key, shape):
    """Kaiming-normal, fan_out, for conv weight (Cout, Cin, kh, kw)."""
    cout, _, kh, kw = shape
    std = math.sqrt(2.0 / (cout * kh * kw))
    return std * jax.random.normal(key, shape, jnp.float32)


def init_params(key, deep_channels, skip_channels, out_channels, num_res_blocks=2):
    Cd, Cs, Co = deep_channels, skip_channels, out_channels
    ks = jax.random.split(key, 8 + 2 * num_res_blocks)
    params = {
        # ConvTranspose2d weight is (in, out, kh, kw)
        "up_w": math.sqrt(2.0 / (Co * 4)) * jax.random.normal(
            ks[0], (Cd, Co, 2, 2), jnp.float32),
        "sam_up_w": _kaiming(ks[1], (1, 2, 7, 7)),
        "csfg_wg": _kaiming(ks[2], (Cs, Co, 1, 1)),
        "csfg_we": _kaiming(ks[3], (Cs, Cs, 1, 1)),
        "csfg_wp": _kaiming(ks[4], (Cs, Cs, 1, 1)),
        "ca_w": _kaiming(ks[5], (Co, Co + Cs, 1, 1)),
        "sam_fuse_w": _kaiming(ks[6], (1, 2, 7, 7)),
        "res": [(_kaiming(ks[7 + 2 * i], (Co, Co, 3, 3)),
                 _kaiming(ks[8 + 2 * i], (Co, Co, 3, 3)))
                for i in range(num_res_blocks)],
    }
    return params


if __name__ == "__main__":
    key = jax.random.PRNGKey(0)
    kp, kd, ksk = jax.random.split(key, 3)

    B, Cd, Cs, Co = 2, 16, 8, 8
    H = W = 8                       # deep spatial; skip is (2H, 2W) = 16x16

    params = init_params(kp, Cd, Cs, Co, num_res_blocks=2)
    x_deep = jax.random.normal(kd, (B, Cd, H, W), jnp.float32)
    x_skip = jax.random.normal(ksk, (B, Cs, 2 * H, 2 * W), jnp.float32)

    fwd = jax.jit(decoder_stage_forward)
    out = jax.block_until_ready(fwd(params, x_deep, x_skip))
    assert out.shape == (B, Co, 2 * H, 2 * W), out.shape
    assert bool(jnp.all(jnp.isfinite(out)))
    print("KERNEL_OK")
</pallas_src>

<mosaic_0001>
module attributes {stable_mosaic.version = 11 : i64} {
  func.func @_decoder_stage_kernel(%arg0: i32, %arg1: memref<1x16x256xf32, #tpu.memory_space<vmem>>, %arg2: memref<1x8x256xf32, #tpu.memory_space<vmem>>, %arg3: memref<11x256xf32, #tpu.memory_space<vmem>>, %arg4: memref<32x16xf32, #tpu.memory_space<vmem>>, %arg5: memref<16x16xf32, #tpu.memory_space<vmem>>, %arg6: memref<16x16xf32, #tpu.memory_space<vmem>>, %arg7: memref<8x8xf32, #tpu.memory_space<vmem>>, %arg8: memref<32x72xf32, #tpu.memory_space<vmem>>, %arg9: memref<1x8x256xf32, #tpu.memory_space<vmem>>, %arg10: memref<2x512xf32, #tpu.memory_space<vmem>>, %arg11: memref<16x256xf32, #tpu.memory_space<vmem>>, %arg12: memref<8x512xf32, #tpu.memory_space<vmem>>, %arg13: memref<16x256xf32, #tpu.memory_space<vmem>>, %arg14: memref<8x512xf32, #tpu.memory_space<vmem>>, %arg15: memref<72x256xf32, #tpu.memory_space<vmem>>) attributes {dimension_semantics = [#tpu.dimension_semantics<parallel>], iteration_bounds = array<i64: 2>, scalar_prefetch = 0 : i64, scratch_operands = 6 : i64, tpu.core_type = #tpu.core_type<tc>, window_params = [{transform_indices = @transform_0, window_bounds = array<i64: 1, 16, 256>}, {transform_indices = @transform_1, window_bounds = array<i64: 1, 8, 256>}, {pipeline_mode = #tpu.pipeline_mode<synchronous>, transform_indices = @transform_2, window_bounds = array<i64: 11, 256>}, {pipeline_mode = #tpu.pipeline_mode<synchronous>, transform_indices = @transform_3, window_bounds = array<i64: 32, 16>}, {pipeline_mode = #tpu.pipeline_mode<synchronous>, transform_indices = @transform_4, window_bounds = array<i64: 16, 16>}, {pipeline_mode = #tpu.pipeline_mode<synchronous>, transform_indices = @transform_5, window_bounds = array<i64: 16, 16>}, {pipeline_mode = #tpu.pipeline_mode<synchronous>, transform_indices = @transform_6, window_bounds = array<i64: 8, 8>}, {pipeline_mode = #tpu.pipeline_mode<synchronous>, transform_indices = @transform_7, window_bounds = array<i64: 32, 72>}, {transform_indices = @transform_8, window_bounds = array<i64: 1, 8, 256>}]} {
    %cst = arith.constant 0.000000e+00 : f32
    %0 = vector.broadcast %cst : f32 to vector<2x128xf32>
    %c0 = arith.constant 0 : index
    %c0_0 = arith.constant 0 : index
    %1 = vector.load %arg10[%c0, %c0_0] : memref<2x512xf32, #tpu.memory_space<vmem>>, vector<2x128xf32>
    tpu.vector_store %arg10[%c0, %c0_0], %0 {strides = array<i32>} : memref<2x512xf32, #tpu.memory_space<vmem>>, vector<2x128xf32>,
    %cst_1 = arith.constant 0.000000e+00 : f32
    %2 = vector.broadcast %cst_1 : f32 to vector<2x128xf32>
    %c0_2 = arith.constant 0 : index
    %c384 = arith.constant 384 : index
    %3 = vector.load %arg10[%c0_2, %c384] : memref<2x512xf32, #tpu.memory_space<vmem>>, vector<2x128xf32>
    tpu.vector_store %arg10[%c0_2, %c384], %2 {strides = array<i32>} : memref<2x512xf32, #tpu.memory_space<vmem>>, vector<2x128xf32>,
    %cst_3 = arith.constant 0.000000e+00 : f32
    %4 = vector.broadcast %cst_3 : f32 to vector<8x128xf32>
    %c0_4 = arith.constant 0 : index
    %c0_5 = arith.constant 0 : index
    %5 = vector.load %arg12[%c0_4, %c0_5] : memref<8x512xf32, #tpu.memory_space<vmem>>, vector<8x128xf32>
    tpu.vector_store %arg12[%c0_4, %c0_5], %4 {strides = array<i32>} : memref<8x512xf32, #tpu.memory_space<vmem>>, vector<8x128xf32>,
    %cst_6 = arith.constant 0.000000e+00 : f32
    %6 = vector.broadcast %cst_6 : f32 to vector<8x128xf32>
    %c0_7 = arith.constant 0 : index
    %c384_8 = arith.constant 384 : index
    %7 = vector.load %arg12[%c0_7, %c384_8] : memref<8x512xf32, #tpu.memory_space<vmem>>, vector<8x128xf32>
    tpu.vector_store %arg12[%c0_7, %c384_8], %6 {strides = array<i32>} : memref<8x512xf32, #tpu.memory_space<vmem>>, vector<8x128xf32>,
    %cst_9 = arith.constant 0.000000e+00 : f32
    %8 = vector.broadcast %cst_9 : f32 to vector<8x128xf32>
    %c0_10 = arith.constant 0 : index
    %c0_11 = arith.constant 0 : index
    %9 = vector.load %arg14[%c0_10, %c0_11] : memref<8x512xf32, #tpu.memory_space<vmem>>, vector<8x128xf32>
    tpu.vector_store %arg14[%c0_10, %c0_11], %8 {strides = array<i32>} : memref<8x512xf32, #tpu.memory_space<vmem>>, vector<8x128xf32>,
    %cst_12 = arith.constant 0.000000e+00 : f32
    %10 = vector.broadcast %cst_12 : f32 to vector<8x128xf32>
    %c0_13 = arith.constant 0 : index
    %c384_14 = arith.constant 384 : index
    %11 = vector.load %arg14[%c0_13, %c384_14] : memref<8x512xf32, #tpu.memory_space<vmem>>, vector<8x128xf32>
    tpu.vector_store %arg14[%c0_13, %c384_14], %10 {strides = array<i32>} : memref<8x512xf32, #tpu.memory_space<vmem>>, vector<8x128xf32>,
    %cst_15 = arith.constant 0.000000e+00 : f32
    %12 = vector.broadcast %cst_15 : f32 to vector<2x256xf32>
    %c14 = arith.constant 14 : index
    %c0_16 = arith.constant 0 : index
    %13 = vector.load %arg11[%c14, %c0_16] : memref<16x256xf32, #tpu.memory_space<vmem>>, vector<2x256xf32>
    tpu.vector_store %arg11[%c14, %c0_16], %12 {strides = array<i32>} : memref<16x256xf32, #tpu.memory_space<vmem>>, vector<2x256xf32>,
    %c0_17 = arith.constant 0 : index
    %c0_18 = arith.constant 0 : index
    %14 = vector.load %arg4[%c0_17, %c0_18] : memref<32x16xf32, #tpu.memory_space<vmem>>, vector<32x16xf32>
    %c0_19 = arith.constant 0 : index
    %c0_20 = arith.constant 0 : index
    %c0_21 = arith.constant 0 : index
    %15 = vector.load %arg1[%c0_19, %c0_20, %c0_21] : memref<1x16x256xf32, #tpu.memory_space<vmem>>, vector<1x16x256xf32>
    %16 = vector.shape_cast %15 : vector<1x16x256xf32> to vector<16x256xf32>
    %cst_22 = arith.constant dense<0.000000e+00> : vector<32x256xf32>
    %17 = tpu.matmul %14, %16, %cst_22 {dimension_numbers = #tpu.dot_dimension_numbers<[1], [0], [0], [1], [0, 0, 1, 1], [], []>} : vector<32x16xf32>, vector<16x256xf32>, vector<32x256xf32> -> vector<32x256xf32>
    %c7 = arith.constant 7 : index
    %c0_23 = arith.constant 0 : index
    %18 = vector.load %arg3[%c7, %c0_23] : memref<11x256xf32, #tpu.memory_space<vmem>>, vector<1x256xf32>
    %19 = vector.extract_strided_slice %17 {offsets = [0, 0], sizes = [8, 256], strides = [1, 1]} : vector<32x256xf32> to vector<8x256xf32>
    %20 = vector.broadcast %18 : vector<1x256xf32> to vector<8x256xf32>
    %21 = arith.mulf %20, %19 : vector<8x256xf32>
    %c8 = arith.constant 8 : index
    %c0_24 = arith.constant 0 : index
    %22 = vector.load %arg3[%c8, %c0_24] : memref<11x256xf32, #tpu.memory_space<vmem>>, vector<1x256xf32>
    %23 = vector.extract_strided_slice %17 {offsets = [8, 0], sizes = [8, 256], strides = [1, 1]} : vector<32x256xf32> to vector<8x256xf32>
    %24 = vector.broadcast %22 : vector<1x256xf32> to vector<8x256xf32>
    %25 = arith.mulf %24, %23 : vector<8x256xf32>
    %26 = arith.addf %21, %25 : vector<8x256xf32>
    %c9 = arith.constant 9 : index
    %c0_25 = arith.constant 0 : index
    %27 = vector.load %arg3[%c9, %c0_25] : memref<11x256xf32, #tpu.memory_space<vmem>>, vector<1x256xf32>
    %28 = vector.extract_strided_slice %17 {offsets = [16, 0], sizes = [8, 256], strides = [1, 1]} : vector<32x256xf32> to vector<8x256xf32>
    %29 = vector.broadcast %27 : vector<1x256xf32> to vector<8x256xf32>
    %30 = arith.mulf %29, %28 : vector<8x256xf32>
    %31 = arith.addf %26, %30 : vector<8x256xf32>
    %c10 = arith.constant 10 : index
    %c0_26 = arith.constant 0 : index
    %32 = vector.load %arg3[%c10, %c0_26] : memref<11x256xf32, #tpu.memory_space<vmem>>, vector<1x256xf32>
    %33 = vector.extract_strided_slice %17 {offsets = [24, 0], sizes = [8, 256], strides = [1, 1]} : vector<32x256xf32> to vector<8x256xf32>
    %34 = vector.broadcast %32 : vector<1x256xf32> to vector<8x256xf32>
    %35 = arith.mulf %34, %33 : vector<8x256xf32>
    %36 = arith.addf %31, %35 : vector<8x256xf32>
    %cst_27 = arith.constant 0.000000e+00 : f32
    %37 = vector.broadcast %cst_27 : f32 to vector<8x256xf32>
    %38 = arith.maximumf %36, %37 : vector<8x256xf32>
    %c0_28 = arith.constant 0 : index
    %c0_29 = arith.constant 0 : index
    %39 = vector.load %arg5[%c0_28, %c0_29] : memref<16x16xf32, #tpu.memory_space<vmem>>, vector<8x16xf32>
    %cst_30 = arith.constant dense<0.000000e+00> : vector<256xf32>
    %40 = vector.multi_reduction <add>, %38, %cst_30 [0] : vector<8x256xf32> to vector<256xf32>
    %41 = vector.shape_cast %40 : vector<256xf32> to vector<1x256xf32>
    %cst_31 = arith.constant 8.000000e+00 : f32
    %42 = vector.broadcast %cst_31 : f32 to vector<1x256xf32>
    %43 = arith.divf %41, %42 : vector<1x256xf32>
    %c0_32 = arith.constant 0 : index
    %c128 = arith.constant 128 : index
    %44 = vector.load %arg10[%c0_32, %c128] : memref<2x512xf32, #tpu.memory_space<vmem>>, vector<1x256xf32>
    tpu.vector_store %arg10[%c0_32, %c128], %43 {strides = array<i32>} : memref<2x512xf32, #tpu.memory_space<vmem>>, vector<1x256xf32>,
    %cst_33 = arith.constant dense<0xFF800000> : vector<256xf32>
    %45 = vector.multi_reduction <maximumf>, %38, %cst_33 [0] : vector<8x256xf32> to vector<256xf32>
    %46 = vector.shape_cast %45 : vector<256xf32> to vector<1x256xf32>
    %c1 = arith.constant 1 : index
    %c128_34 = arith.constant 128 : index
    %47 = vector.load %arg10[%c1, %c128_34] : memref<2x512xf32, #tpu.memory_space<vmem>>, vector<1x256xf32>
    tpu.vector_store %arg10[%c1, %c128_34], %46 {strides = array<i32>} : memref<2x512xf32, #tpu.memory_space<vmem>>, vector<1x256xf32>,
    %c0_35 = arith.constant 0 : index
    %c80 = arith.constant 80 : index
    %48 = vector.load %arg10[%c0_35, %c80] : memref<2x512xf32, #tpu.memory_space<vmem>>, vector<1x256xf32>
    %c0_36 = arith.constant 0 : index
    %c0_37 = arith.constant 0 : index
    %49 = vector.load %arg11[%c0_36, %c0_37] : memref<16x256xf32, #tpu.memory_space<vmem>>, vector<1x256xf32>
    tpu.vector_store %arg11[%c0_36, %c0_37], %48 {strides = array<i32>} : memref<16x256xf32, #tpu.memory_space<vmem>>, vector<1x256xf32>,
    %c0_38 = arith.constant 0 : index
    %c96 = arith.constant 96 : index
    %50 = vector.load %arg10[%c0_38, %c96] : memref<2x512xf32, #tpu.memory_space<vmem>>, vector<1x256xf32>
    %c1_39 = arith.constant 1 : index
    %c0_40 = arith.constant 0 : index
    %51 = vector.load %arg11[%c1_39, %c0_40] : memref<16x256xf32, #tpu.memory_space<vmem>>, vector<1x256xf32>
    tpu.vector_store %arg11[%c1_39, %c0_40], %50 {strides = array<i32>} : memref<16x256xf32, #tpu.memory_space<vmem>>, vector<1x256xf32>,
    %c0_41 = arith.constant 0 : index
    %c112 = arith.constant 112 : index
    %52 = vector.load %arg10[%c0_41, %c112] : memref<2x512xf32, #tpu.memory_space<vmem>>, vector<1x256xf32>
    %c2 = arith.constant 2 : index
    %c0_42 = arith.constant 0 : index
    %53 = vector.load %arg11[%c2, %c0_42] : memref<16x256xf32, #tpu.memory_space<vmem>>, vector<1x256xf32>
    tpu.vector_store %arg11[%c2, %c0_42], %52 {strides = array<i32>} : memref<16x256xf32, #tpu.memory_space<vmem>>, vector<1x256xf32>,
    %c0_43 = arith.constant 0 : index
    %c128_44 = arith.constant 128 : index
    %54 = vector.load %arg10[%c0_43, %c128_44] : memref<2x512xf32, #tpu.memory_space<vmem>>, vector<1x256xf32>
    %c3 = arith.constant 3 : index
    %c0_45 = arith.constant 0 : index
    %55 = vector.load %arg11[%c3, %c0_45] : memref<16x256xf32, #tpu.memory_space<vmem>>, vector<1x256xf32>
    tpu.vector_store %arg11[%c3, %c0_45], %54 {strides = array<i32>} : memref<16x256xf32, #tpu.memory_space<vmem>>, vector<1x256xf32>,
    %c0_46 = arith.constant 0 : index
    %c144 = arith.constant 144 : index
    %56 = vector.load %arg10[%c0_46, %c144] : memref<2x512xf32, #tpu.memory_space<vmem>>, vector<1x256xf32>
    %c4 = arith.constant 4 : index
    %c0_47 = arith.constant 0 : index
    %57 = vector.load %arg11[%c4, %c0_47] : memref<16x256xf32, #tpu.memory_space<vmem>>, vector<1x256xf32>
    tpu.vector_store %arg11[%c4, %c0_47], %56 {strides = array<i32>} : memref<16x256xf32, #tpu.memory_space<vmem>>, vector<1x256xf32>,
    %c0_48 = arith.constant 0 : index
    %c160 = arith.constant 160 : index
    %58 = vector.load %arg10[%c0_48, %c160] : memref<2x512xf32, #tpu.memory_space<vmem>>, vector<1x256xf32>
    %c5 = arith.constant 5 : index
    %c0_49 = arith.constant 0 : index
    %59 = vector.load %arg11[%c5, %c0_49] : memref<16x256xf32, #tpu.memory_space<vmem>>, vector<1x256xf32>
    tpu.vector_store %arg11[%c5, %c0_49], %58 {strides = array<i32>} : memref<16x256xf32, #tpu.memory_space<vmem>>, vector<1x256xf32>,
    %c0_50 = arith.constant 0 : index
    %c176 = arith.constant 176 : index
    %60 = vector.load %arg10[%c0_50, %c176] : memref<2x512xf32, #tpu.memory_space<vmem>>, vector<1x256xf32>
    %c6 = arith.constant 6 : index
    %c0_51 = arith.constant 0 : index
    %61 = vector.load %arg11[%c6, %c0_51] : memref<16x256xf32, #tpu.memory_space<vmem>>, vector<1x256xf32>
    tpu.vector_store %arg11[%c6, %c0_51], %60 {strides = array<i32>} : memref<16x256xf32, #tpu.memory_space<vmem>>, vector<1x256xf32>,
    %c1_52 = arith.constant 1 : index
    %c80_53 = arith.constant 80 : index
    %62 = vector.load %arg10[%c1_52, %c80_53] : memref<2x512xf32, #tpu.memory_space<vmem>>, vector<1x256xf32>
    %c7_54 = arith.constant 7 : index
    %c0_55 = arith.constant 0 : index
    %63 = vector.load %arg11[%c7_54, %c0_55] : memref<16x256xf32, #tpu.memory_space<vmem>>, vector<1x256xf32>
    tpu.vector_store %arg11[%c7_54, %c0_55], %62 {strides = array<i32>} : memref<16x256xf32, #tpu.memory_space<vmem>>, vector<1x256xf32>,
    %c1_56 = arith.constant 1 : index
    %c96_57 = arith.constant 96 : index
    %64 = vector.load %arg10[%c1_56, %c96_57] : memref<2x512xf32, #tpu.memory_space<vmem>>, vector<1x256xf32>
    %c8_58 = arith.constant 8 : index
    %c0_59 = arith.constant 0 : index
    %65 = vector.load %arg11[%c8_58, %c0_59] : memref<16x256xf32, #tpu.memory_space<vmem>>, vector<1x256xf32>
    tpu.vector_store %arg11[%c8_58, %c0_59], %64 {strides = array<i32>} : memref<16x256xf32, #tpu.memory_space<vmem>>, vector<1x256xf32>,
    %c1_60 = arith.constant 1 : index
    %c112_61 = arith.constant 112 : index
    %66 = vector.load %arg10[%c1_60, %c112_61] : memref<2x512xf32, #tpu.memory_space<vmem>>, vector<1x256xf32>
    %c9_62 = arith.constant 9 : index
    %c0_63 = arith.constant 0 : index
    %67 = vector.load %arg11[%c9_62, %c0_63] : memref<16x256xf32, #tpu.memory_space<vmem>>, vector<1x256xf32>
    tpu.vector_store %arg11[%c9_62, %c0_63], %66 {strides = array<i32>} : memref<16x256xf32, #tpu.memory_space<vmem>>, vector<1x256xf32>,
    %c1_64 = arith.constant 1 : index
    %c128_65 = arith.constant 128 : index
    %68 = vector.load %arg10[%c1_64, %c128_65] : memref<2x512xf32, #tpu.memory_space<vmem>>, vector<1x256xf32>
    %c10_66 = arith.constant 10 : index
    %c0_67 = arith.constant 0 : index
    %69 = vector.load %arg11[%c10_66, %c0_67] : memref<16x256xf32, #tpu.memory_space<vmem>>, vector<1x256xf32>
    tpu.vector_store %arg11[%c10_66, %c0_67], %68 {strides = array<i32>} : memref<16x256xf32, #tpu.memory_space<vmem>>, vector<1x256xf32>,
    %c1_68 = arith.constant 1 : index
    %c144_69 = arith.constant 144 : index
    %70 = vector.load %arg10[%c1_68, %c144_69] : memref<2x512xf32, #tpu.memory_space<vmem>>, vector<1x256xf32>
    %c11 = arith.constant 11 : index
    %c0_70 = arith.constant 0 : index
    %71 = vector.load %arg11[%c11, %c0_70] : memref<16x256xf32, #tpu.memory_space<vmem>>, vector<1x256xf32>
    tpu.vector_store %arg11[%c11, %c0_70], %70 {strides = array<i32>} : memref<16x256xf32, #tpu.memory_space<vmem>>, vector<1x256xf32>,
    %c1_71 = arith.constant 1 : index
    %c160_72 = arith.constant 160 : index
    %72 = vector.load %arg10[%c1_71, %c160_72] : memref<2x512xf32, #tpu.memory_space<vmem>>, vector<1x256xf32>
    %c12 = arith.constant 12 : index
    %c0_73 = arith.constant 0 : index
    %73 = vector.load %arg11[%c12, %c0_73] : memref<16x256xf32, #tpu.memory_space<vmem>>, vector<1x256xf32>
    tpu.vector_store %arg11[%c12, %c0_73], %72 {strides = array<i32>} : memref<16x256xf32, #tpu.memory_space<vmem>>, vector<1x256xf32>,
    %c1_74 = arith.constant 1 : index
    %c176_75 = arith.constant 176 : index
    %74 = vector.load %arg10[%c1_74, %c176_75] : memref<2x512xf32, #tpu.memory_space<vmem>>, vector<1x256xf32>
    %c13 = arith.constant 13 : index
    %c0_76 = arith.constant 0 : index
    %75 = vector.load %arg11[%c13, %c0_76] : memref<16x256xf32, #tpu.memory_space<vmem>>, vector<1x256xf32>
    tpu.vector_store %arg11[%c13, %c0_76], %74 {strides = array<i32>} : memref<16x256xf32, #tpu.memory_space<vmem>>, vector<1x256xf32>,
    %c0_77 = arith.constant 0 : index
    %c0_78 = arith.constant 0 : index
    %76 = vector.load %arg11[%c0_77, %c0_78] : memref<16x256xf32, #tpu.memory_space<vmem>>, vector<16x256xf32>
    %cst_79 = arith.constant dense<0.000000e+00> : vector<8x256xf32>
    %77 = tpu.matmul %39, %76, %cst_79 {dimension_numbers = #tpu.dot_dimension_numbers<[1], [0], [0], [1], [0, 0, 1, 1], [], []>} : vector<8x16xf32>, vector<16x256xf32>, vector<8x256xf32> -> vector<8x256xf32>
    %c0_80 = arith.constant 0 : index
    %c128_81 = arith.constant 128 : index
    %78 = vector.load %arg12[%c0_80, %c128_81] : memref<8x512xf32, #tpu.memory_space<vmem>>, vector<8x256xf32>
    tpu.vector_store %arg12[%c0_80, %c128_81], %77 {strides = array<i32>} : memref<8x512xf32, #tpu.memory_space<vmem>>, vector<8x256xf32>,
    %cst_82 = arith.constant 0.000000e+00 : f32
    %79 = vector.broadcast %cst_82 : f32 to vector<1x256xf32>
    %c0_83 = arith.constant 0 : index
    %c125 = arith.constant 125 : index
    %80 = vector.load %arg12[%c0_83, %c125] : memref<8x512xf32, #tpu.memory_space<vmem>>, vector<1x256xf32>
    %c0_84 = arith.constant 0 : index
    %c0_85 = arith.constant 0 : index
    %81 = vector.load %arg3[%c0_84, %c0_85] : memref<11x256xf32, #tpu.memory_space<vmem>>, vector<1x256xf32>
    %82 = arith.mulf %80, %81 : vector<1x256xf32>
    %83 = arith.addf %79, %82 : vector<1x256xf32>
    %c1_86 = arith.constant 1 : index
    %c126 = arith.constant 126 : index
    %84 = vector.load %arg12[%c1_86, %c126] : memref<8x512xf32, #tpu.memory_space<vmem>>, vector<1x256xf32>
    %c1_87 = arith.constant 1 : index
    %c0_88 = arith.constant 0 : index
    %85 = vector.load %arg3[%c1_87, %c0_88] : memref<11x256xf32, #tpu.memory_space<vmem>>, vector<1x256xf32>
    %86 = arith.mulf %84, %85 : vector<1x256xf32>
    %87 = arith.addf %83, %86 : vector<1x256xf32>
    %c2_89 = arith.constant 2 : index
    %c127 = arith.constant 127 : index
    %88 = vector.load %arg12[%c2_89, %c127] : memref<8x512xf32, #tpu.memory_space<vmem>>, vector<1x256xf32>
    %c2_90 = arith.constant 2 : index
    %c0_91 = arith.constant 0 : index
    %89 = vector.load %arg3[%c2_90, %c0_91] : memref<11x256xf32, #tpu.memory_space<vmem>>, vector<1x256xf32>
    %90 = arith.mulf %88, %89 : vector<1x256xf32>
    %91 = arith.addf %87, %90 : vector<1x256xf32>
    %c3_92 = arith.constant 3 : index
    %c128_93 = arith.constant 128 : index
    %92 = vector.load %arg12[%c3_92, %c128_93] : memref<8x512xf32, #tpu.memory_space<vmem>>, vector<1x256xf32>
    %c3_94 = arith.constant 3 : index
    %c0_95 = arith.constant 0 : index
    %93 = vector.load %arg3[%c3_94, %c0_95] : memref<11x256xf32, #tpu.memory_space<vmem>>, vector<1x256xf32>
    %94 = arith.mulf %92, %93 : vector<1x256xf32>
    %95 = arith.addf %91, %94 : vector<1x256xf32>
    %c4_96 = arith.constant 4 : index
    %c129 = arith.constant 129 : index
    %96 = vector.load %arg12[%c4_96, %c129] : memref<8x512xf32, #tpu.memory_space<vmem>>, vector<1x256xf32>
    %c4_97 = arith.constant 4 : index
    %c0_98 = arith.constant 0 : index
    %97 = vector.load %arg3[%c4_97, %c0_98] : memref<11x256xf32, #tpu.memory_space<vmem>>, vector<1x256xf32>
    %98 = arith.mulf %96, %97 : vector<1x256xf32>
    %99 = arith.addf %95, %98 : vector<1x256xf32>
    %c5_99 = arith.constant 5 : index
    %c130 = arith.constant 130 : index
    %100 = vector.load %arg12[%c5_99, %c130] : memref<8x512xf32, #tpu.memory_space<vmem>>, vector<1x256xf32>
    %c5_100 = arith.constant 5 : index
    %c0_101 = arith.constant 0 : index
    %101 = vector.load %arg3[%c5_100, %c0_101] : memref<11x256xf32, #tpu.memory_space<vmem>>, vector<1x256xf32>
    %102 = arith.mulf %100, %101 : vector<1x256xf32>
    %103 = arith.addf %99, %102 : vector<1x256xf32>
    %c6_102 = arith.constant 6 : index
    %c131 = arith.constant 131 : index
    %104 = vector.load %arg12[%c6_102, %c131] : memref<8x512xf32, #tpu.memory_space<vmem>>, vector<1x256xf32>
    %c6_103 = arith.constant 6 : index
    %c0_104 = arith.constant 0 : index
    %105 = vector.load %arg3[%c6_103, %c0_104] : memref<11x256xf32, #tpu.memory_space<vmem>>, vector<1x256xf32>
    %106 = arith.mulf %104, %105 : vector<1x256xf32>
    %107 = arith.addf %103, %106 : vector<1x256xf32>
    %108 = arith.negf %107 : vector<1x256xf32>
    %109 = math.exp %108 : vector<1x256xf32>
    %cst_105 = arith.constant 1.000000e+00 : f32
    %110 = vector.broadcast %cst_105 : f32 to vector<1x256xf32>
    %111 = arith.addf %110, %109 : vector<1x256xf32>
    %112 = arith.divf %110, %111 : vector<1x256xf32>
    %113 = vector.broadcast %112 : vector<1x256xf32> to vector<8x256xf32>
    %114 = arith.mulf %38, %113 : vector<8x256xf32>
    %c0_106 = arith.constant 0 : index
    %c0_107 = arith.constant 0 : index
    %c0_108 = arith.constant 0 : index
    %115 = vector.load %arg2[%c0_106, %c0_107, %c0_108] : memref<1x8x256xf32, #tpu.memory_space<vmem>>, vector<1x8x256xf32>
    %116 = vector.shape_cast %115 : vector<1x8x256xf32> to vector<8x256xf32>
    %c0_109 = arith.constant 0 : index
    %c0_110 = arith.constant 0 : index
    %117 = vector.load %arg13[%c0_109, %c0_110] : memref<16x256xf32, #tpu.memory_space<vmem>>, vector<8x256xf32>
    tpu.vector_store %arg13[%c0_109, %c0_110], %114 {strides = array<i32>} : memref<16x256xf32, #tpu.memory_space<vmem>>, vector<8x256xf32>,
    %c8_111 = arith.constant 8 : index
    %c0_112 = arith.constant 0 : index
    %118 = vector.load %arg13[%c8_111, %c0_112] : memref<16x256xf32, #tpu.memory_space<vmem>>, vector<8x256xf32>
    tpu.vector_store %arg13[%c8_111, %c0_112], %116 {strides = array<i32>} : memref<16x256xf32, #tpu.memory_space<vmem>>, vector<8x256xf32>,
    %c0_113 = arith.constant 0 : index
    %c0_114 = arith.constant 0 : index
    %119 = vector.load %arg6[%c0_113, %c0_114] : memref<16x16xf32, #tpu.memory_space<vmem>>, vector<8x16xf32>
    %c0_115 = arith.constant 0 : index
    %c0_116 = arith.constant 0 : index
    %120 = vector.load %arg13[%c0_115, %c0_116] : memref<16x256xf32, #tpu.memory_space<vmem>>, vector<16x256xf32>
    %cst_117 = arith.constant dense<0.000000e+00> : vector<8x256xf32>
    %121 = tpu.matmul %119, %120, %cst_117 {dimension_numbers = #tpu.dot_dimension_numbers<[1], [0], [0], [1], [0, 0, 1, 1], [], []>} : vector<8x16xf32>, vector<16x256xf32>, vector<8x256xf32> -> vector<8x256xf32>
    %cst_118 = arith.constant 0.000000e+00 : f32
    %122 = vector.broadcast %cst_118 : f32 to vector<8x256xf32>
    %123 = arith.maximumf %121, %122 : vector<8x256xf32>
    %c0_119 = arith.constant 0 : index
    %c0_120 = arith.constant 0 : index
    %124 = vector.load %arg7[%c0_119, %c0_120] : memref<8x8xf32, #tpu.memory_space<vmem>>, vector<8x8xf32>
    %cst_121 = arith.constant dense<0.000000e+00> : vector<8x256xf32>
    %125 = tpu.matmul %124, %123, %cst_121 {dimension_numbers = #tpu.dot_dimension_numbers<[1], [0], [0], [1], [0, 0, 1, 1], [], []>} : vector<8x8xf32>, vector<8x256xf32>, vector<8x256xf32> -> vector<8x256xf32>
    %126 = arith.negf %125 : vector<8x256xf32>
    %127 = math.exp %126 : vector<8x256xf32>
    %cst_122 = arith.constant 1.000000e+00 : f32
    %128 = vector.broadcast %cst_122 : f32 to vector<8x256xf32>
    %129 = arith.addf %128, %127 : vector<8x256xf32>
    %130 = arith.divf %128, %129 : vector<8x256xf32>
    %131 = arith.mulf %116, %130 : vector<8x256xf32>
    %c8_123 = arith.constant 8 : index
    %c0_124 = arith.constant 0 : index
    %132 = vector.load %arg13[%c8_123, %c0_124] : memref<16x256xf32, #tpu.memory_space<vmem>>, vector<8x256xf32>
    tpu.vector_store %arg13[%c8_123, %c0_124], %131 {strides = array<i32>} : memref<16x256xf32, #tpu.memory_space<vmem>>, vector<8x256xf32>,
    %c8_125 = arith.constant 8 : index
    %c0_126 = arith.constant 0 : index
    %133 = vector.load %arg6[%c8_125, %c0_126] : memref<16x16xf32, #tpu.memory_space<vmem>>, vector<8x16xf32>
    %c0_127 = arith.constant 0 : index
    %c0_128 = arith.constant 0 : index
    %134 = vector.load %arg13[%c0_127, %c0_128] : memref<16x256xf32, #tpu.memory_space<vmem>>, vector<16x256xf32>
    %cst_129 = arith.constant dense<0.000000e+00> : vector<8x256xf32>
    %135 = tpu.matmul %133, %134, %cst_129 {dimension_numbers = #tpu.dot_dimension_numbers<[1], [0], [0], [1], [0, 0, 1, 1], [], []>} : vector<8x16xf32>, vector<16x256xf32>, vector<8x256xf32> -> vector<8x256xf32>
    %cst_130 = arith.constant 0.000000e+00 : f32
    %136 = vector.broadcast %cst_130 : f32 to vector<8x256xf32>
    %137 = arith.maximumf %135, %136 : vector<8x256xf32>
    %c8_131 = arith.constant 8 : index
    %c0_132 = arith.constant 0 : index
    %138 = vector.load %arg5[%c8_131, %c0_132] : memref<16x16xf32, #tpu.memory_space<vmem>>, vector<8x16xf32>
    %cst_133 = arith.constant dense<0.000000e+00> : vector<256xf32>
    %139 = vector.multi_reduction <add>, %137, %cst_133 [0] : vector<8x256xf32> to vector<256xf32>
    %140 = vector.shape_cast %139 : vector<256xf32> to vector<1x256xf32>
    %cst_134 = arith.constant 8.000000e+00 : f32
    %141 = vector.broadcast %cst_134 : f32 to vector<1x256xf32>
    %142 = arith.divf %140, %141 : vector<1x256xf32>
    %c0_135 = arith.constant 0 : index
    %c128_136 = arith.constant 128 : index
    %143 = vector.load %arg10[%c0_135, %c128_136] : memref<2x512xf32, #tpu.memory_space<vmem>>, vector<1x256xf32>
    tpu.vector_store %arg10[%c0_135, %c128_136], %142 {strides = array<i32>} : memref<2x512xf32, #tpu.memory_space<vmem>>, vector<1x256xf32>,
    %cst_137 = arith.constant dense<0xFF800000> : vector<256xf32>
    %144 = vector.multi_reduction <maximumf>, %137, %cst_137 [0] : vector<8x256xf32> to vector<256xf32>
    %145 = vector.shape_cast %144 : vector<256xf32> to vector<1x256xf32>
    %c1_138 = arith.constant 1 : index
    %c128_139 = arith.constant 128 : index
    %146 = vector.load %arg10[%c1_138, %c128_139] : memref<2x512xf32, #tpu.memory_space<vmem>>, vector<1x256xf32>
    tpu.vector_store %arg10[%c1_138, %c128_139], %145 {strides = array<i32>} : memref<2x512xf32, #tpu.memory_space<vmem>>, vector<1x256xf32>,
    %c0_140 = arith.constant 0 : index
    %c80_141 = arith.constant 80 : index
    %147 = vector.load %arg10[%c0_140, %c80_141] : memref<2x512xf32, #tpu.memory_space<vmem>>, vector<1x256xf32>
    %c0_142 = arith.constant 0 : index
    %c0_143 = arith.constant 0 : index
    %148 = vector.load %arg11[%c0_142, %c0_143] : memref<16x256xf32, #tpu.memory_space<vmem>>, vector<1x256xf32>
    tpu.vector_store %arg11[%c0_142, %c0_143], %147 {strides = array<i32>} : memref<16x256xf32, #tpu.memory_space<vmem>>, vector<1x256xf32>,
    %c0_144 = arith.constant 0 : index
    %c96_145 = arith.constant 96 : index
    %149 = vector.load %arg10[%c0_144, %c96_145] : memref<2x512xf32, #tpu.memory_space<vmem>>, vector<1x256xf32>
    %c1_146 = arith.constant 1 : index
    %c0_147 = arith.constant 0 : index
    %150 = vector.load %arg11[%c1_146, %c0_147] : memref<16x256xf32, #tpu.memory_space<vmem>>, vector<1x256xf32>
    tpu.vector_store %arg11[%c1_146, %c0_147], %149 {strides = array<i32>} : memref<16x256xf32, #tpu.memory_space<vmem>>, vector<1x256xf32>,
    %c0_148 = arith.constant 0 : index
    %c112_149 = arith.constant 112 : index
    %151 = vector.load %arg10[%c0_148, %c112_149] : memref<2x512xf32, #tpu.memory_space<vmem>>, vector<1x256xf32>
    %c2_150 = arith.constant 2 : index
    %c0_151 = arith.constant 0 : index
    %152 = vector.load %arg11[%c2_150, %c0_151] : memref<16x256xf32, #tpu.memory_space<vmem>>, vector<1x256xf32>
    tpu.vector_store %arg11[%c2_150, %c0_151], %151 {strides = array<i32>} : memref<16x256xf32, #tpu.memory_space<vmem>>, vector<1x256xf32>,
    %c0_152 = arith.constant 0 : index
    %c128_153 = arith.constant 128 : index
    %153 = vector.load %arg10[%c0_152, %c128_153] : memref<2x512xf32, #tpu.memory_space<vmem>>, vector<1x256xf32>
    %c3_154 = arith.constant 3 : index
    %c0_155 = arith.constant 0 : index
    %154 = vector.load %arg11[%c3_154, %c0_155] : memref<16x256xf32, #tpu.memory_space<vmem>>, vector<1x256xf32>
    tpu.vector_store %arg11[%c3_154, %c0_155], %153 {strides = array<i32>} : memref<16x256xf32, #tpu.memory_space<vmem>>, vector<1x256xf32>,
    %c0_156 = arith.constant 0 : index
    %c144_157 = arith.constant 144 : index
    %155 = vector.load %arg10[%c0_156, %c144_157] : memref<2x512xf32, #tpu.memory_space<vmem>>, vector<1x256xf32>
    %c4_158 = arith.constant 4 : index
    %c0_159 = arith.constant 0 : index
    %156 = vector.load %arg11[%c4_158, %c0_159] : memref<16x256xf32, #tpu.memory_space<vmem>>, vector<1x256xf32>
    tpu.vector_store %arg11[%c4_158, %c0_159], %155 {strides = array<i32>} : memref<16x256xf32, #tpu.memory_space<vmem>>, vector<1x256xf32>,
    %c0_160 = arith.constant 0 : index
    %c160_161 = arith.constant 160 : index
    %157 = vector.load %arg10[%c0_160, %c160_161] : memref<2x512xf32, #tpu.memory_space<vmem>>, vector<1x256xf32>
    %c5_162 = arith.constant 5 : index
    %c0_163 = arith.constant 0 : index
    %158 = vector.load %arg11[%c5_162, %c0_163] : memref<16x256xf32, #tpu.memory_space<vmem>>, vector<1x256xf32>
    tpu.vector_store %arg11[%c5_162, %c0_163], %157 {strides = array<i32>} : memref<16x256xf32, #tpu.memory_space<vmem>>, vector<1x256xf32>,
    %c0_164 = arith.constant 0 : index
    %c176_165 = arith.constant 176 : index
    %159 = vector.load %arg10[%c0_164, %c176_165] : memref<2x512xf32, #tpu.memory_space<vmem>>, vector<1x256xf32>
    %c6_166 = arith.constant 6 : index
    %c0_167 = arith.constant 0 : index
    %160 = vector.load %arg11[%c6_166, %c0_167] : memref<16x256xf32, #tpu.memory_space<vmem>>, vector<1x256xf32>
    tpu.vector_store %arg11[%c6_166, %c0_167], %159 {strides = array<i32>} : memref<16x256xf32, #tpu.memory_space<vmem>>, vector<1x256xf32>,
    %c1_168 = arith.constant 1 : index
    %c80_169 = arith.constant 80 : index
    %161 = vector.load %arg10[%c1_168, %c80_169] : memref<2x512xf32, #tpu.memory_space<vmem>>, vector<1x256xf32>
    %c7_170 = arith.constant 7 : index
    %c0_171 = arith.constant 0 : index
    %162 = vector.load %arg11[%c7_170, %c0_171] : memref<16x256xf32, #tpu.memory_space<vmem>>, vector<1x256xf32>
    tpu.vector_store %arg11[%c7_170, %c0_171], %161 {strides = array<i32>} : memref<16x256xf32, #tpu.memory_space<vmem>>, vector<1x256xf32>,
    %c1_172 = arith.constant 1 : index
    %c96_173 = arith.constant 96 : index
    %163 = vector.load %arg10[%c1_172, %c96_173] : memref<2x512xf32, #tpu.memory_space<vmem>>, vector<1x256xf32>
    %c8_174 = arith.constant 8 : index
    %c0_175 = arith.constant 0 : index
    %164 = vector.load %arg11[%c8_174, %c0_175] : memref<16x256xf32, #tpu.memory_space<vmem>>, vector<1x256xf32>
    tpu.vector_store %arg11[%c8_174, %c0_175], %163 {strides = array<i32>} : memref<16x256xf32, #tpu.memory_space<vmem>>, vector<1x256xf32>,
    %c1_176 = arith.constant 1 : index
    %c112_177 = arith.constant 112 : index
    %165 = vector.load %arg10[%c1_176, %c112_177] : memref<2x512xf32, #tpu.memory_space<vmem>>, vector<1x256xf32>
    %c9_178 = arith.constant 9 : index
    %c0_179 = arith.constant 0 : index
    %166 = vector.load %arg11[%c9_178, %c0_179] : memref<16x256xf32, #tpu.memory_space<vmem>>, vector<1x256xf32>
    tpu.vector_store %arg11[%c9_178, %c0_179], %165 {strides = array<i32>} : memref<16x256xf32, #tpu.memory_space<vmem>>, vector<1x256xf32>,
    %c1_180 = arith.constant 1 : index
    %c128_181 = arith.constant 128 : index
    %167 = vector.load %arg10[%c1_180, %c128_181] : memref<2x512xf32, #tpu.memory_space<vmem>>, vector<1x256xf32>
    %c10_182 = arith.constant 10 : index
    %c0_183 = arith.constant 0 : index
    %168 = vector.load %arg11[%c10_182, %c0_183] : memref<16x256xf32, #tpu.memory_space<vmem>>, vector<1x256xf32>
    tpu.vector_store %arg11[%c10_182, %c0_183], %167 {strides = array<i32>} : memref<16x256xf32, #tpu.memory_space<vmem>>, vector<1x256xf32>,
    %c1_184 = arith.constant 1 : index
    %c144_185 = arith.constant 144 : index
    %169 = vector.load %arg10[%c1_184, %c144_185] : memref<2x512xf32, #tpu.memory_space<vmem>>, vector<1x256xf32>
    %c11_186 = arith.constant 11 : index
    %c0_187 = arith.constant 0 : index
    %170 = vector.load %arg11[%c11_186, %c0_187] : memref<16x256xf32, #tpu.memory_space<vmem>>, vector<1x256xf32>
    tpu.vector_store %arg11[%c11_186, %c0_187], %169 {strides = array<i32>} : memref<16x256xf32, #tpu.memory_space<vmem>>, vector<1x256xf32>,
    %c1_188 = arith.constant 1 : index
    %c160_189 = arith.constant 160 : index
    %171 = vector.load %arg10[%c1_188, %c160_189] : memref<2x512xf32, #tpu.memory_space<vmem>>, vector<1x256xf32>
    %c12_190 = arith.constant 12 : index
    %c0_191 = arith.constant 0 : index
    %172 = vector.load %arg11[%c12_190, %c0_191] : memref<16x256xf32, #tpu.memory_space<vmem>>, vector<1x256xf32>
    tpu.vector_store %arg11[%c12_190, %c0_191], %171 {strides = array<i32>} : memref<16x256xf32, #tpu.memory_space<vmem>>, vector<1x256xf32>,
    %c1_192 = arith.constant 1 : index
    %c176_193 = arith.constant 176 : index
    %173 = vector.load %arg10[%c1_192, %c176_193] : memref<2x512xf32, #tpu.memory_space<vmem>>, vector<1x256xf32>
    %c13_194 = arith.constant 13 : index
    %c0_195 = arith.constant 0 : index
    %174 = vector.load %arg11[%c13_194, %c0_195] : memref<16x256xf32, #tpu.memory_space<vmem>>, vector<1x256xf32>
    tpu.vector_store %arg11[%c13_194, %c0_195], %173 {strides = array<i32>} : memref<16x256xf32, #tpu.memory_space<vmem>>, vector<1x256xf32>,
    %c0_196 = arith.constant 0 : index
    %c0_197 = arith.constant 0 : index
    %175 = vector.load %arg11[%c0_196, %c0_197] : memref<16x256xf32, #tpu.memory_space<vmem>>, vector<16x256xf32>
    %cst_198 = arith.constant dense<0.000000e+00> : vector<8x256xf32>
    %176 = tpu.matmul %138, %175, %cst_198 {dimension_numbers = #tpu.dot_dimension_numbers<[1], [0], [0], [1], [0, 0, 1, 1], [], []>} : vector<8x16xf32>, vector<16x256xf32>, vector<8x256xf32> -> vector<8x256xf32>
    %c0_199 = arith.constant 0 : index
    %c128_200 = arith.constant 128 : index
    %177 = vector.load %arg12[%c0_199, %c128_200] : memref<8x512xf32, #tpu.memory_space<vmem>>, vector<8x256xf32>
    tpu.vector_store %arg12[%c0_199, %c128_200], %176 {strides = array<i32>} : memref<8x512xf32, #tpu.memory_space<vmem>>, vector<8x256xf32>,
    %cst_201 = arith.constant 0.000000e+00 : f32
    %178 = vector.broadcast %cst_201 : f32 to vector<1x256xf32>
    %c0_202 = arith.constant 0 : index
    %c125_203 = arith.constant 125 : index
    %179 = vector.load %arg12[%c0_202, %c125_203] : memref<8x512xf32, #tpu.memory_space<vmem>>, vector<1x256xf32>
    %c0_204 = arith.constant 0 : index
    %c0_205 = arith.constant 0 : index
    %180 = vector.load %arg3[%c0_204, %c0_205] : memref<11x256xf32, #tpu.memory_space<vmem>>, vector<1x256xf32>
    %181 = arith.mulf %179, %180 : vector<1x256xf32>
    %182 = arith.addf %178, %181 : vector<1x256xf32>
    %c1_206 = arith.constant 1 : index
    %c126_207 = arith.constant 126 : index
    %183 = vector.load %arg12[%c1_206, %c126_207] : memref<8x512xf32, #tpu.memory_space<vmem>>, vector<1x256xf32>
    %c1_208 = arith.constant 1 : index
    %c0_209 = arith.constant 0 : index
    %184 = vector.load %arg3[%c1_208, %c0_209] : memref<11x256xf32, #tpu.memory_space<vmem>>, vector<1x256xf32>
    %185 = arith.mulf %183, %184 : vector<1x256xf32>
    %186 = arith.addf %182, %185 : vector<1x256xf32>
    %c2_210 = arith.constant 2 : index
    %c127_211 = arith.constant 127 : index
    %187 = vector.load %arg12[%c2_210, %c127_211] : memref<8x512xf32, #tpu.memory_space<vmem>>, vector<1x256xf32>
    %c2_212 = arith.constant 2 : index
    %c0_213 = arith.constant 0 : index
    %188 = vector.load %arg3[%c2_212, %c0_213] : memref<11x256xf32, #tpu.memory_space<vmem>>, vector<1x256xf32>
    %189 = arith.mulf %187, %188 : vector<1x256xf32>
    %190 = arith.addf %186, %189 : vector<1x256xf32>
    %c3_214 = arith.constant 3 : index
    %c128_215 = arith.constant 128 : index
    %191 = vector.load %arg12[%c3_214, %c128_215] : memref<8x512xf32, #tpu.memory_space<vmem>>, vector<1x256xf32>
    %c3_216 = arith.constant 3 : index
    %c0_217 = arith.constant 0 : index
    %192 = vector.load %arg3[%c3_216, %c0_217] : memref<11x256xf32, #tpu.memory_space<vmem>>, vector<1x256xf32>
    %193 = arith.mulf %191, %192 : vector<1x256xf32>
    %194 = arith.addf %190, %193 : vector<1x256xf32>
    %c4_218 = arith.constant 4 : index
    %c129_219 = arith.constant 129 : index
    %195 = vector.load %arg12[%c4_218, %c129_219] : memref<8x512xf32, #tpu.memory_space<vmem>>, vector<1x256xf32>
    %c4_220 = arith.constant 4 : index
    %c0_221 = arith.constant 0 : index
    %196 = vector.load %arg3[%c4_220, %c0_221] : memref<11x256xf32, #tpu.memory_space<vmem>>, vector<1x256xf32>
    %197 = arith.mulf %195, %196 : vector<1x256xf32>
    %198 = arith.addf %194, %197 : vector<1x256xf32>
    %c5_222 = arith.constant 5 : index
    %c130_223 = arith.constant 130 : index
    %199 = vector.load %arg12[%c5_222, %c130_223] : memref<8x512xf32, #tpu.memory_space<vmem>>, vector<1x256xf32>
    %c5_224 = arith.constant 5 : index
    %c0_225 = arith.constant 0 : index
    %200 = vector.load %arg3[%c5_224, %c0_225] : memref<11x256xf32, #tpu.memory_space<vmem>>, vector<1x256xf32>
    %201 = arith.mulf %199, %200 : vector<1x256xf32>
    %202 = arith.addf %198, %201 : vector<1x256xf32>
    %c6_226 = arith.constant 6 : index
    %c131_227 = arith.constant 131 : index
    %203 = vector.load %arg12[%c6_226, %c131_227] : memref<8x512xf32, #tpu.memory_space<vmem>>, vector<1x256xf32>
    %c6_228 = arith.constant 6 : index
    %c0_229 = arith.constant 0 : index
    %204 = vector.load %arg3[%c6_228, %c0_229] : memref<11x256xf32, #tpu.memory_space<vmem>>, vector<1x256xf32>
    %205 = arith.mulf %203, %204 : vector<1x256xf32>
    %206 = arith.addf %202, %205 : vector<1x256xf32>
    %207 = arith.negf %206 : vector<1x256xf32>
    %208 = math.exp %207 : vector<1x256xf32>
    %cst_230 = arith.constant 1.000000e+00 : f32
    %209 = vector.broadcast %cst_230 : f32 to vector<1x256xf32>
    %210 = arith.addf %209, %208 : vector<1x256xf32>
    %211 = arith.divf %209, %210 : vector<1x256xf32>
    %212 = vector.broadcast %211 : vector<1x256xf32> to vector<8x256xf32>
    %213 = arith.mulf %137, %212 : vector<8x256xf32>
    %c0_231 = arith.constant 0 : index
    %c0_232 = arith.constant 0 : index
    %214 = vector.load %arg8[%c0_231, %c0_232] : memref<32x72xf32, #tpu.memory_space<vmem>>, vector<8x72xf32>
    %c8_233 = arith.constant 8 : index
    %c0_234 = arith.constant 0 : index
    %215 = vector.load %arg8[%c8_233, %c0_234] : memref<32x72xf32, #tpu.memory_space<vmem>>, vector<8x72xf32>
    %c0_235 = arith.constant 0 : index
    %c128_236 = arith.constant 128 : index
    %216 = vector.load %arg14[%c0_235, %c128_236] : memref<8x512xf32, #tpu.memory_space<vmem>>, vector<8x256xf32>
    tpu.vector_store %arg14[%c0_235, %c128_236], %213 {strides = array<i32>} : memref<8x512xf32, #tpu.memory_space<vmem>>, vector<8x256xf32>,
    %c0_237 = arith.constant 0 : index
    %c111 = arith.constant 111 : index
    %217 = vector.load %arg14[%c0_237, %c111] : memref<8x512xf32, #tpu.memory_space<vmem>>, vector<8x256xf32>
    %c2_238 = arith.constant 2 : index
    %c0_239 = arith.constant 0 : index
    %218 = vector.load %arg3[%c2_238, %c0_239] : memref<11x256xf32, #tpu.memory_space<vmem>>, vector<1x256xf32>
    %219 = vector.broadcast %218 : vector<1x256xf32> to vector<8x256xf32>
    %220 = arith.mulf %217, %219 : vector<8x256xf32>
    %c0_240 = arith.constant 0 : index
    %c0_241 = arith.constant 0 : index
    %221 = vector.load %arg15[%c0_240, %c0_241] : memref<72x256xf32, #tpu.memory_space<vmem>>, vector<8x256xf32>
    tpu.vector_store %arg15[%c0_240, %c0_241], %220 {strides = array<i32>} : memref<72x256xf32, #tpu.memory_space<vmem>>, vector<8x256xf32>,
    %c0_242 = arith.constant 0 : index
    %c112_243 = arith.constant 112 : index
    %222 = vector.load %arg14[%c0_242, %c112_243] : memref<8x512xf32, #tpu.memory_space<vmem>>, vector<8x256xf32>
    %c8_244 = arith.constant 8 : index
    %c0_245 = arith.constant 0 : index
    %223 = vector.load %arg15[%c8_244, %c0_245] : memref<72x256xf32, #tpu.memory_space<vmem>>, vector<8x256xf32>
    tpu.vector_store %arg15[%c8_244, %c0_245], %222 {strides = array<i32>} : memref<72x256xf32, #tpu.memory_space<vmem>>, vector<8x256xf32>,
    %c0_246 = arith.constant 0 : index
    %c113 = arith.constant 113 : index
    %224 = vector.load %arg14[%c0_246, %c113] : memref<8x512xf32, #tpu.memory_space<vmem>>, vector<8x256xf32>
    %c4_247 = arith.constant 4 : index
    %c0_248 = arith.constant 0 : index
    %225 = vector.load %arg3[%c4_247, %c0_248] : memref<11x256xf32, #tpu.memory_space<vmem>>, vector<1x256xf32>
    %226 = vector.broadcast %225 : vector<1x256xf32> to vector<8x256xf32>
    %227 = arith.mulf %224, %226 : vector<8x256xf32>
    %c16 = arith.constant 16 : index
    %c0_249 = arith.constant 0 : index
    %228 = vector.load %arg15[%c16, %c0_249] : memref<72x256xf32, #tpu.memory_space<vmem>>, vector<8x256xf32>
    tpu.vector_store %arg15[%c16, %c0_249], %227 {strides = array<i32>} : memref<72x256xf32, #tpu.memory_space<vmem>>, vector<8x256xf32>,
    %c0_250 = arith.constant 0 : index
    %c127_251 = arith.constant 127 : index
    %229 = vector.load %arg14[%c0_250, %c127_251] : memref<8x512xf32, #tpu.memory_space<vmem>>, vector<8x256xf32>
    %c2_252 = arith.constant 2 : index
    %c0_253 = arith.constant 0 : index
    %230 = vector.load %arg3[%c2_252, %c0_253] : memref<11x256xf32, #tpu.memory_space<vmem>>, vector<1x256xf32>
    %231 = vector.broadcast %230 : vector<1x256xf32> to vector<8x256xf32>
    %232 = arith.mulf %229, %231 : vector<8x256xf32>
    %c24 = arith.constant 24 : index
    %c0_254 = arith.constant 0 : index
    %233 = vector.load %arg15[%c24, %c0_254] : memref<72x256xf32, #tpu.memory_space<vmem>>, vector<8x256xf32>
    tpu.vector_store %arg15[%c24, %c0_254], %232 {strides = array<i32>} : memref<72x256xf32, #tpu.memory_space<vmem>>, vector<8x256xf32>,
    %c0_255 = arith.constant 0 : index
    %c128_256 = arith.constant 128 : index
    %234 = vector.load %arg14[%c0_255, %c128_256] : memref<8x512xf32, #tpu.memory_space<vmem>>, vector<8x256xf32>
    %c32 = arith.constant 32 : index
    %c0_257 = arith.constant 0 : index
    %235 = vector.load %arg15[%c32, %c0_257] : memref<72x256xf32, #tpu.memory_space<vmem>>, vector<8x256xf32>
    tpu.vector_store %arg15[%c32, %c0_257], %234 {strides = array<i32>} : memref<72x256xf32, #tpu.memory_space<vmem>>, vector<8x256xf32>,
    %c0_258 = arith.constant 0 : index
    %c129_259 = arith.constant 129 : index
    %236 = vector.load %arg14[%c0_258, %c129_259] : memref<8x512xf32, #tpu.memory_space<vmem>>, vector<8x256xf32>
    %c4_260 = arith.constant 4 : index
    %c0_261 = arith.constant 0 : index
    %237 = vector.load %arg3[%c4_260, %c0_261] : memref<11x256xf32, #tpu.memory_space<vmem>>, vector<1x256xf32>
    %238 = vector.broadcast %237 : vector<1x256xf32> to vector<8x256xf32>
    %239 = arith.mulf %236, %238 : vector<8x256xf32>
    %c40 = arith.constant 40 : index
    %c0_262 = arith.constant 0 : index
    %240 = vector.load %arg15[%c40, %c0_262] : memref<72x256xf32, #tpu.memory_space<vmem>>, vector<8x256xf32>
    tpu.vector_store %arg15[%c40, %c0_262], %239 {strides = array<i32>} : memref<72x256xf32, #tpu.memory_space<vmem>>, vector<8x256xf32>,
    %c0_263 = arith.constant 0 : index
    %c143 = arith.constant 143 : index
    %241 = vector.load %arg14[%c0_263, %c143] : memref<8x512xf32, #tpu.memory_space<vmem>>, vector<8x256xf32>
    %c2_264 = arith.constant 2 : index
    %c0_265 = arith.constant 0 : index
    %242 = vector.load %arg3[%c2_264, %c0_265] : memref<11x256xf32, #tpu.memory_space<vmem>>, vector<1x256xf32>
    %243 = vector.broadcast %242 : vector<1x256xf32> to vector<8x256xf32>
    %244 = arith.mulf %241, %243 : vector<8x256xf32>
    %c48 = arith.constant 48 : index
    %c0_266 = arith.constant 0 : index
    %245 = vector.load %arg15[%c48, %c0_266] : memref<72x256xf32, #tpu.memory_space<vmem>>, vector<8x256xf32>
    tpu.vector_store %arg15[%c48, %c0_266], %244 {strides = array<i32>} : memref<72x256xf32, #tpu.memory_space<vmem>>, vector<8x256xf32>,
    %c0_267 = arith.constant 0 : index
    %c144_268 = arith.constant 144 : index
    %246 = vector.load %arg14[%c0_267, %c144_268] : memref<8x512xf32, #tpu.memory_space<vmem>>, vector<8x256xf32>
    %c56 = arith.constant 56 : index
    %c0_269 = arith.constant 0 : index
    %247 = vector.load %arg15[%c56, %c0_269] : memref<72x256xf32, #tpu.memory_space<vmem>>, vector<8x256xf32>
    tpu.vector_store %arg15[%c56, %c0_269], %246 {strides = array<i32>} : memref<72x256xf32, #tpu.memory_space<vmem>>, vector<8x256xf32>,
    %c0_270 = arith.constant 0 : index
    %c145 = arith.constant 145 : index
    %248 = vector.load %arg14[%c0_270, %c145] : memref<8x512xf32, #tpu.memory_space<vmem>>, vector<8x256xf32>
    %c4_271 = arith.constant 4 : index
    %c0_272 = arith.constant 0 : index
    %249 = vector.load %arg3[%c4_271, %c0_272] : memref<11x256xf32, #tpu.memory_space<vmem>>, vector<1x256xf32>
    %250 = vector.broadcast %249 : vector<1x256xf32> to vector<8x256xf32>
    %251 = arith.mulf %248, %250 : vector<8x256xf32>
    %c64 = arith.constant 64 : index
    %c0_273 = arith.constant 0 : index
    %252 = vector.load %arg15[%c64, %c0_273] : memref<72x256xf32, #tpu.memory_space<vmem>>, vector<8x256xf32>
    tpu.vector_store %arg15[%c64, %c0_273], %251 {strides = array<i32>} : memref<72x256xf32, #tpu.memory_space<vmem>>, vector<8x256xf32>,
    %c0_274 = arith.constant 0 : index
    %c0_275 = arith.constant 0 : index
    %253 = vector.load %arg15[%c0_274, %c0_275] : memref<72x256xf32, #tpu.memory_space<vmem>>, vector<72x256xf32>
    %cst_276 = arith.constant dense<0.000000e+00> : vector<8x256xf32>
    %254 = tpu.matmul %214, %253, %cst_276 {dimension_numbers = #tpu.dot_dimension_numbers<[1], [0], [0], [1], [0, 0, 1, 1], [], []>} : vector<8x72xf32>, vector<72x256xf32>, vector<8x256xf32> -> vector<8x256xf32>
    %cst_277 = arith.constant 0.000000e+00 : f32
    %255 = vector.broadcast %cst_277 : f32 to vector<8x256xf32>
    %256 = arith.maximumf %254, %255 : vector<8x256xf32>
    %c0_278 = arith.constant 0 : index
    %c128_279 = arith.constant 128 : index
    %257 = vector.load %arg14[%c0_278, %c128_279] : memref<8x512xf32, #tpu.memory_space<vmem>>, vector<8x256xf32>
    tpu.vector_store %arg14[%c0_278, %c128_279], %256 {strides = array<i32>} : memref<8x512xf32, #tpu.memory_space<vmem>>, vector<8x256xf32>,
    %c0_280 = arith.constant 0 : index
    %c111_281 = arith.constant 111 : index
    %258 = vector.load %arg14[%c0_280, %c111_281] : memref<8x512xf32, #tpu.memory_space<vmem>>, vector<8x256xf32>
    %c2_282 = arith.constant 2 : index
    %c0_283 = arith.constant 0 : index
    %259 = vector.load %arg3[%c2_282, %c0_283] : memref<11x256xf32, #tpu.memory_space<vmem>>, vector<1x256xf32>
    %260 = vector.broadcast %259 : vector<1x256xf32> to vector<8x256xf32>
    %261 = arith.mulf %258, %260 : vector<8x256xf32>
    %c0_284 = arith.constant 0 : index
    %c0_285 = arith.constant 0 : index
    %262 = vector.load %arg15[%c0_284, %c0_285] : memref<72x256xf32, #tpu.memory_space<vmem>>, vector<8x256xf32>
    tpu.vector_store %arg15[%c0_284, %c0_285], %261 {strides = array<i32>} : memref<72x256xf32, #tpu.memory_space<vmem>>, vector<8x256xf32>,
    %c0_286 = arith.constant 0 : index
    %c112_287 = arith.constant 112 : index
    %263 = vector.load %arg14[%c0_286, %c112_287] : memref<8x512xf32, #tpu.memory_space<vmem>>, vector<8x256xf32>
    %c8_288 = arith.constant 8 : index
    %c0_289 = arith.constant 0 : index
    %264 = vector.load %arg15[%c8_288, %c0_289] : memref<72x256xf32, #tpu.memory_space<vmem>>, vector<8x256xf32>
    tpu.vector_store %arg15[%c8_288, %c0_289], %263 {strides = array<i32>} : memref<72x256xf32, #tpu.memory_space<vmem>>, vector<8x256xf32>,
    %c0_290 = arith.constant 0 : index
    %c113_291 = arith.constant 113 : index
    %265 = vector.load %arg14[%c0_290, %c113_291] : memref<8x512xf32, #tpu.memory_space<vmem>>, vector<8x256xf32>
    %c4_292 = arith.constant 4 : index
    %c0_293 = arith.constant 0 : index
    %266 = vector.load %arg3[%c4_292, %c0_293] : memref<11x256xf32, #tpu.memory_space<vmem>>, vector<1x256xf32>
    %267 = vector.broadcast %266 : vector<1x256xf32> to vector<8x256xf32>
    %268 = arith.mulf %265, %267 : vector<8x256xf32>
    %c16_294 = arith.constant 16 : index
    %c0_295 = arith.constant 0 : index
    %269 = vector.load %arg15[%c16_294, %c0_295] : memref<72x256xf32, #tpu.memory_space<vmem>>, vector<8x256xf32>
    tpu.vector_store %arg15[%c16_294, %c0_295], %268 {strides = array<i32>} : memref<72x256xf32, #tpu.memory_space<vmem>>, vector<8x256xf32>,
    %c0_296 = arith.constant 0 : index
    %c127_297 = arith.constant 127 : index
    %270 = vector.load %arg14[%c0_296, %c127_297] : memref<8x512xf32, #tpu.memory_space<vmem>>, vector<8x256xf32>
    %c2_298 = arith.constant 2 : index
    %c0_299 = arith.constant 0 : index
    %271 = vector.load %arg3[%c2_298, %c0_299] : memref<11x256xf32, #tpu.memory_space<vmem>>, vector<1x256xf32>
    %272 = vector.broadcast %271 : vector<1x256xf32> to vector<8x256xf32>
    %273 = arith.mulf %270, %272 : vector<8x256xf32>
    %c24_300 = arith.constant 24 : index
    %c0_301 = arith.constant 0 : index
    %274 = vector.load %arg15[%c24_300, %c0_301] : memref<72x256xf32, #tpu.memory_space<vmem>>, vector<8x256xf32>
    tpu.vector_store %arg15[%c24_300, %c0_301], %273 {strides = array<i32>} : memref<72x256xf32, #tpu.memory_space<vmem>>, vector<8x256xf32>,
    %c0_302 = arith.constant 0 : index
    %c128_303 = arith.constant 128 : index
    %275 = vector.load %arg14[%c0_302, %c128_303] : memref<8x512xf32, #tpu.memory_space<vmem>>, vector<8x256xf32>
    %c32_304 = arith.constant 32 : index
    %c0_305 = arith.constant 0 : index
    %276 = vector.load %arg15[%c32_304, %c0_305] : memref<72x256xf32, #tpu.memory_space<vmem>>, vector<8x256xf32>
    tpu.vector_store %arg15[%c32_304, %c0_305], %275 {strides = array<i32>} : memref<72x256xf32, #tpu.memory_space<vmem>>, vector<8x256xf32>,
    %c0_306 = arith.constant 0 : index
    %c129_307 = arith.constant 129 : index
    %277 = vector.load %arg14[%c0_306, %c129_307] : memref<8x512xf32, #tpu.memory_space<vmem>>, vector<8x256xf32>
    %c4_308 = arith.constant 4 : index
    %c0_309 = arith.constant 0 : index
    %278 = vector.load %arg3[%c4_308, %c0_309] : memref<11x256xf32, #tpu.memory_space<vmem>>, vector<1x256xf32>
    %279 = vector.broadcast %278 : vector<1x256xf32> to vector<8x256xf32>
    %280 = arith.mulf %277, %279 : vector<8x256xf32>
    %c40_310 = arith.constant 40 : index
    %c0_311 = arith.constant 0 : index
    %281 = vector.load %arg15[%c40_310, %c0_311] : memref<72x256xf32, #tpu.memory_space<vmem>>, vector<8x256xf32>
    tpu.vector_store %arg15[%c40_310, %c0_311], %280 {strides = array<i32>} : memref<72x256xf32, #tpu.memory_space<vmem>>, vector<8x256xf32>,
    %c0_312 = arith.constant 0 : index
    %c143_313 = arith.constant 143 : index
    %282 = vector.load %arg14[%c0_312, %c143_313] : memref<8x512xf32, #tpu.memory_space<vmem>>, vector<8x256xf32>
    %c2_314 = arith.constant 2 : index
    %c0_315 = arith.constant 0 : index
    %283 = vector.load %arg3[%c2_314, %c0_315] : memref<11x256xf32, #tpu.memory_space<vmem>>, vector<1x256xf32>
    %284 = vector.broadcast %283 : vector<1x256xf32> to vector<8x256xf32>
    %285 = arith.mulf %282, %284 : vector<8x256xf32>
    %c48_316 = arith.constant 48 : index
    %c0_317 = arith.constant 0 : index
    %286 = vector.load %arg15[%c48_316, %c0_317] : memref<72x256xf32, #tpu.memory_space<vmem>>, vector<8x256xf32>
    tpu.vector_store %arg15[%c48_316, %c0_317], %285 {strides = array<i32>} : memref<72x256xf32, #tpu.memory_space<vmem>>, vector<8x256xf32>,
    %c0_318 = arith.constant 0 : index
    %c144_319 = arith.constant 144 : index
    %287 = vector.load %arg14[%c0_318, %c144_319] : memref<8x512xf32, #tpu.memory_space<vmem>>, vector<8x256xf32>
    %c56_320 = arith.constant 56 : index
    %c0_321 = arith.constant 0 : index
    %288 = vector.load %arg15[%c56_320, %c0_321] : memref<72x256xf32, #tpu.memory_space<vmem>>, vector<8x256xf32>
    tpu.vector_store %arg15[%c56_320, %c0_321], %287 {strides = array<i32>} : memref<72x256xf32, #tpu.memory_space<vmem>>, vector<8x256xf32>,
    %c0_322 = arith.constant 0 : index
    %c145_323 = arith.constant 145 : index
    %289 = vector.load %arg14[%c0_322, %c145_323] : memref<8x512xf32, #tpu.memory_space<vmem>>, vector<8x256xf32>
    %c4_324 = arith.constant 4 : index
    %c0_325 = arith.constant 0 : index
    %290 = vector.load %arg3[%c4_324, %c0_325] : memref<11x256xf32, #tpu.memory_space<vmem>>, vector<1x256xf32>
    %291 = vector.broadcast %290 : vector<1x256xf32> to vector<8x256xf32>
    %292 = arith.mulf %289, %291 : vector<8x256xf32>
    %c64_326 = arith.constant 64 : index
    %c0_327 = arith.constant 0 : index
    %293 = vector.load %arg15[%c64_326, %c0_327] : memref<72x256xf32, #tpu.memory_space<vmem>>, vector<8x256xf32>
    tpu.vector_store %arg15[%c64_326, %c0_327], %292 {strides = array<i32>} : memref<72x256xf32, #tpu.memory_space<vmem>>, vector<8x256xf32>,
    %c0_328 = arith.constant 0 : index
    %c0_329 = arith.constant 0 : index
    %294 = vector.load %arg15[%c0_328, %c0_329] : memref<72x256xf32, #tpu.memory_space<vmem>>, vector<72x256xf32>
    %cst_330 = arith.constant dense<0.000000e+00> : vector<8x256xf32>
    %295 = tpu.matmul %215, %294, %cst_330 {dimension_numbers = #tpu.dot_dimension_numbers<[1], [0], [0], [1], [0, 0, 1, 1], [], []>} : vector<8x72xf32>, vector<72x256xf32>, vector<8x256xf32> -> vector<8x256xf32>
    %296 = arith.addf %295, %213 : vector<8x256xf32>
    %cst_331 = arith.constant 0.000000e+00 : f32
    %297 = vector.broadcast %cst_331 : f32 to vector<8x256xf32>
    %298 = arith.maximumf %296, %297 : vector<8x256xf32>
    %c16_332 = arith.constant 16 : index
    %c0_333 = arith.constant 0 : index
    %299 = vector.load %arg8[%c16_332, %c0_333] : memref<32x72xf32, #tpu.memory_space<vmem>>, vector<8x72xf32>
    %c24_334 = arith.constant 24 : index
    %c0_335 = arith.constant 0 : index
    %300 = vector.load %arg8[%c24_334, %c0_335] : memref<32x72xf32, #tpu.memory_space<vmem>>, vector<8x72xf32>
    %c0_336 = arith.constant 0 : index
    %c128_337 = arith.constant 128 : index
    %301 = vector.load %arg14[%c0_336, %c128_337] : memref<8x512xf32, #tpu.memory_space<vmem>>, vector<8x256xf32>
    tpu.vector_store %arg14[%c0_336, %c128_337], %298 {strides = array<i32>} : memref<8x512xf32, #tpu.memory_space<vmem>>, vector<8x256xf32>,
    %c0_338 = arith.constant 0 : index
    %c111_339 = arith.constant 111 : index
    %302 = vector.load %arg14[%c0_338, %c111_339] : memref<8x512xf32, #tpu.memory_space<vmem>>, vector<8x256xf32>
    %c2_340 = arith.constant 2 : index
    %c0_341 = arith.constant 0 : index
    %303 = vector.load %arg3[%c2_340, %c0_341] : memref<11x256xf32, #tpu.memory_space<vmem>>, vector<1x256xf32>
    %304 = vector.broadcast %303 : vector<1x256xf32> to vector<8x256xf32>
    %305 = arith.mulf %302, %304 : vector<8x256xf32>
    %c0_342 = arith.constant 0 : index
    %c0_343 = arith.constant 0 : index
    %306 = vector.load %arg15[%c0_342, %c0_343] : memref<72x256xf32, #tpu.memory_space<vmem>>, vector<8x256xf32>
    tpu.vector_store %arg15[%c0_342, %c0_343], %305 {strides = array<i32>} : memref<72x256xf32, #tpu.memory_space<vmem>>, vector<8x256xf32>,
    %c0_344 = arith.constant 0 : index
    %c112_345 = arith.constant 112 : index
    %307 = vector.load %arg14[%c0_344, %c112_345] : memref<8x512xf32, #tpu.memory_space<vmem>>, vector<8x256xf32>
    %c8_346 = arith.constant 8 : index
    %c0_347 = arith.constant 0 : index
    %308 = vector.load %arg15[%c8_346, %c0_347] : memref<72x256xf32, #tpu.memory_space<vmem>>, vector<8x256xf32>
    tpu.vector_store %arg15[%c8_346, %c0_347], %307 {strides = array<i32>} : memref<72x256xf32, #tpu.memory_space<vmem>>, vector<8x256xf32>,
    %c0_348 = arith.constant 0 : index
    %c113_349 = arith.constant 113 : index
    %309 = vector.load %arg14[%c0_348, %c113_349] : memref<8x512xf32, #tpu.memory_space<vmem>>, vector<8x256xf32>
    %c4_350 = arith.constant 4 : index
    %c0_351 = arith.constant 0 : index
    %310 = vector.load %arg3[%c4_350, %c0_351] : memref<11x256xf32, #tpu.memory_space<vmem>>, vector<1x256xf32>
    %311 = vector.broadcast %310 : vector<1x256xf32> to vector<8x256xf32>
    %312 = arith.mulf %309, %311 : vector<8x256xf32>
    %c16_352 = arith.constant 16 : index
    %c0_353 = arith.constant 0 : index
    %313 = vector.load %arg15[%c16_352, %c0_353] : memref<72x256xf32, #tpu.memory_space<vmem>>, vector<8x256xf32>
    tpu.vector_store %arg15[%c16_352, %c0_353], %312 {strides = array<i32>} : memref<72x256xf32, #tpu.memory_space<vmem>>, vector<8x256xf32>,
    %c0_354 = arith.constant 0 : index
    %c127_355 = arith.constant 127 : index
    %314 = vector.load %arg14[%c0_354, %c127_355] : memref<8x512xf32, #tpu.memory_space<vmem>>, vector<8x256xf32>
    %c2_356 = arith.constant 2 : index
    %c0_357 = arith.constant 0 : index
    %315 = vector.load %arg3[%c2_356, %c0_357] : memref<11x256xf32, #tpu.memory_space<vmem>>, vector<1x256xf32>
    %316 = vector.broadcast %315 : vector<1x256xf32> to vector<8x256xf32>
    %317 = arith.mulf %314, %316 : vector<8x256xf32>
    %c24_358 = arith.constant 24 : index
    %c0_359 = arith.constant 0 : index
    %318 = vector.load %arg15[%c24_358, %c0_359] : memref<72x256xf32, #tpu.memory_space<vmem>>, vector<8x256xf32>
    tpu.vector_store %arg15[%c24_358, %c0_359], %317 {strides = array<i32>} : memref<72x256xf32, #tpu.memory_space<vmem>>, vector<8x256xf32>,
    %c0_360 = arith.constant 0 : index
    %c128_361 = arith.constant 128 : index
    %319 = vector.load %arg14[%c0_360, %c128_361] : memref<8x512xf32, #tpu.memory_space<vmem>>, vector<8x256xf32>
    %c32_362 = arith.constant 32 : index
    %c0_363 = arith.constant 0 : index
    %320 = vector.load %arg15[%c32_362, %c0_363] : memref<72x256xf32, #tpu.memory_space<vmem>>, vector<8x256xf32>
    tpu.vector_store %arg15[%c32_362, %c0_363], %319 {strides = array<i32>} : memref<72x256xf32, #tpu.memory_space<vmem>>, vector<8x256xf32>,
    %c0_364 = arith.constant 0 : index
    %c129_365 = arith.constant 129 : index
    %321 = vector.load %arg14[%c0_364, %c129_365] : memref<8x512xf32, #tpu.memory_space<vmem>>, vector<8x256xf32>
    %c4_366 = arith.constant 4 : index
    %c0_367 = arith.constant 0 : index
    %322 = vector.load %arg3[%c4_366, %c0_367] : memref<11x256xf32, #tpu.memory_space<vmem>>, vector<1x256xf32>
    %323 = vector.broadcast %322 : vector<1x256xf32> to vector<8x256xf32>
    %324 = arith.mulf %321, %323 : vector<8x256xf32>
    %c40_368 = arith.constant 40 : index
    %c0_369 = arith.constant 0 : index
    %325 = vector.load %arg15[%c40_368, %c0_369] : memref<72x256xf32, #tpu.memory_space<vmem>>, vector<8x256xf32>
    tpu.vector_store %arg15[%c40_368, %c0_369], %324 {strides = array<i32>} : memref<72x256xf32, #tpu.memory_space<vmem>>, vector<8x256xf32>,
    %c0_370 = arith.constant 0 : index
    %c143_371 = arith.constant 143 : index
    %326 = vector.load %arg14[%c0_370, %c143_371] : memref<8x512xf32, #tpu.memory_space<vmem>>, vector<8x256xf32>
    %c2_372 = arith.constant 2 : index
    %c0_373 = arith.constant 0 : index
    %327 = vector.load %arg3[%c2_372, %c0_373] : memref<11x256xf32, #tpu.memory_space<vmem>>, vector<1x256xf32>
    %328 = vector.broadcast %327 : vector<1x256xf32> to vector<8x256xf32>
    %329 = arith.mulf %326, %328 : vector<8x256xf32>
    %c48_374 = arith.constant 48 : index
    %c0_375 = arith.constant 0 : index
    %330 = vector.load %arg15[%c48_374, %c0_375] : memref<72x256xf32, #tpu.memory_space<vmem>>, vector<8x256xf32>
    tpu.vector_store %arg15[%c48_374, %c0_375], %329 {strides = array<i32>} : memref<72x256xf32, #tpu.memory_space<vmem>>, vector<8x256xf32>,
    %c0_376 = arith.constant 0 : index
    %c144_377 = arith.constant 144 : index
    %331 = vector.load %arg14[%c0_376, %c144_377] : memref<8x512xf32, #tpu.memory_space<vmem>>, vector<8x256xf32>
    %c56_378 = arith.constant 56 : index
    %c0_379 = arith.constant 0 : index
    %332 = vector.load %arg15[%c56_378, %c0_379] : memref<72x256xf32, #tpu.memory_space<vmem>>, vector<8x256xf32>
    tpu.vector_store %arg15[%c56_378, %c0_379], %331 {strides = array<i32>} : memref<72x256xf32, #tpu.memory_space<vmem>>, vector<8x256xf32>,
    %c0_380 = arith.constant 0 : index
    %c145_381 = arith.constant 145 : index
    %333 = vector.load %arg14[%c0_380, %c145_381] : memref<8x512xf32, #tpu.memory_space<vmem>>, vector<8x256xf32>
    %c4_382 = arith.constant 4 : index
    %c0_383 = arith.constant 0 : index
    %334 = vector.load %arg3[%c4_382, %c0_383] : memref<11x256xf32, #tpu.memory_space<vmem>>, vector<1x256xf32>
    %335 = vector.broadcast %334 : vector<1x256xf32> to vector<8x256xf32>
    %336 = arith.mulf %333, %335 : vector<8x256xf32>
    %c64_384 = arith.constant 64 : index
    %c0_385 = arith.constant 0 : index
    %337 = vector.load %arg15[%c64_384, %c0_385] : memref<72x256xf32, #tpu.memory_space<vmem>>, vector<8x256xf32>
    tpu.vector_store %arg15[%c64_384, %c0_385], %336 {strides = array<i32>} : memref<72x256xf32, #tpu.memory_space<vmem>>, vector<8x256xf32>,
    %c0_386 = arith.constant 0 : index
    %c0_387 = arith.constant 0 : index
    %338 = vector.load %arg15[%c0_386, %c0_387] : memref<72x256xf32, #tpu.memory_space<vmem>>, vector<72x256xf32>
    %cst_388 = arith.constant dense<0.000000e+00> : vector<8x256xf32>
    %339 = tpu.matmul %299, %338, %cst_388 {dimension_numbers = #tpu.dot_dimension_numbers<[1], [0], [0], [1], [0, 0, 1, 1], [], []>} : vector<8x72xf32>, vector<72x256xf32>, vector<8x256xf32> -> vector<8x256xf32>
    %cst_389 = arith.constant 0.000000e+00 : f32
    %340 = vector.broadcast %cst_389 : f32 to vector<8x256xf32>
    %341 = arith.maximumf %339, %340 : vector<8x256xf32>
    %c0_390 = arith.constant 0 : index
    %c128_391 = arith.constant 128 : index
    %342 = vector.load %arg14[%c0_390, %c128_391] : memref<8x512xf32, #tpu.memory_space<vmem>>, vector<8x256xf32>
    tpu.vector_store %arg14[%c0_390, %c128_391], %341 {strides = array<i32>} : memref<8x512xf32, #tpu.memory_space<vmem>>, vector<8x256xf32>,
    %c0_392 = arith.constant 0 : index
    %c111_393 = arith.constant 111 : index
    %343 = vector.load %arg14[%c0_392, %c111_393] : memref<8x512xf32, #tpu.memory_space<vmem>>, vector<8x256xf32>
    %c2_394 = arith.constant 2 : index
    %c0_395 = arith.constant 0 : index
    %344 = vector.load %arg3[%c2_394, %c0_395] : memref<11x256xf32, #tpu.memory_space<vmem>>, vector<1x256xf32>
    %345 = vector.broadcast %344 : vector<1x256xf32> to vector<8x256xf32>
    %346 = arith.mulf %343, %345 : vector<8x256xf32>
    %c0_396 = arith.constant 0 : index
    %c0_397 = arith.constant 0 : index
    %347 = vector.load %arg15[%c0_396, %c0_397] : memref<72x256xf32, #tpu.memory_space<vmem>>, vector<8x256xf32>
    tpu.vector_store %arg15[%c0_396, %c0_397], %346 {strides = array<i32>} : memref<72x256xf32, #tpu.memory_space<vmem>>, vector<8x256xf32>,
    %c0_398 = arith.constant 0 : index
    %c112_399 = arith.constant 112 : index
    %348 = vector.load %arg14[%c0_398, %c112_399] : memref<8x512xf32, #tpu.memory_space<vmem>>, vector<8x256xf32>
    %c8_400 = arith.constant 8 : index
    %c0_401 = arith.constant 0 : index
    %349 = vector.load %arg15[%c8_400, %c0_401] : memref<72x256xf32, #tpu.memory_space<vmem>>, vector<8x256xf32>
    tpu.vector_store %arg15[%c8_400, %c0_401], %348 {strides = array<i32>} : memref<72x256xf32, #tpu.memory_space<vmem>>, vector<8x256xf32>,
    %c0_402 = arith.constant 0 : index
    %c113_403 = arith.constant 113 : index
    %350 = vector.load %arg14[%c0_402, %c113_403] : memref<8x512xf32, #tpu.memory_space<vmem>>, vector<8x256xf32>
    %c4_404 = arith.constant 4 : index
    %c0_405 = arith.constant 0 : index
    %351 = vector.load %arg3[%c4_404, %c0_405] : memref<11x256xf32, #tpu.memory_space<vmem>>, vector<1x256xf32>
    %352 = vector.broadcast %351 : vector<1x256xf32> to vector<8x256xf32>
    %353 = arith.mulf %350, %352 : vector<8x256xf32>
    %c16_406 = arith.constant 16 : index
    %c0_407 = arith.constant 0 : index
    %354 = vector.load %arg15[%c16_406, %c0_407] : memref<72x256xf32, #tpu.memory_space<vmem>>, vector<8x256xf32>
    tpu.vector_store %arg15[%c16_406, %c0_407], %353 {strides = array<i32>} : memref<72x256xf32, #tpu.memory_space<vmem>>, vector<8x256xf32>,
    %c0_408 = arith.constant 0 : index
    %c127_409 = arith.constant 127 : index
    %355 = vector.load %arg14[%c0_408, %c127_409] : memref<8x512xf32, #tpu.memory_space<vmem>>, vector<8x256xf32>
    %c2_410 = arith.constant 2 : index
    %c0_411 = arith.constant 0 : index
    %356 = vector.load %arg3[%c2_410, %c0_411] : memref<11x256xf32, #tpu.memory_space<vmem>>, vector<1x256xf32>
    %357 = vector.broadcast %356 : vector<1x256xf32> to vector<8x256xf32>
    %358 = arith.mulf %355, %357 : vector<8x256xf32>
    %c24_412 = arith.constant 24 : index
    %c0_413 = arith.constant 0 : index
    %359 = vector.load %arg15[%c24_412, %c0_413] : memref<72x256xf32, #tpu.memory_space<vmem>>, vector<8x256xf32>
    tpu.vector_store %arg15[%c24_412, %c0_413], %358 {strides = array<i32>} : memref<72x256xf32, #tpu.memory_space<vmem>>, vector<8x256xf32>,
    %c0_414 = arith.constant 0 : index
    %c128_415 = arith.constant 128 : index
    %360 = vector.load %arg14[%c0_414, %c128_415] : memref<8x512xf32, #tpu.memory_space<vmem>>, vector<8x256xf32>
    %c32_416 = arith.constant 32 : index
    %c0_417 = arith.constant 0 : index
    %361 = vector.load %arg15[%c32_416, %c0_417] : memref<72x256xf32, #tpu.memory_space<vmem>>, vector<8x256xf32>
    tpu.vector_store %arg15[%c32_416, %c0_417], %360 {strides = array<i32>} : memref<72x256xf32, #tpu.memory_space<vmem>>, vector<8x256xf32>,
    %c0_418 = arith.constant 0 : index
    %c129_419 = arith.constant 129 : index
    %362 = vector.load %arg14[%c0_418, %c129_419] : memref<8x512xf32, #tpu.memory_space<vmem>>, vector<8x256xf32>
    %c4_420 = arith.constant 4 : index
    %c0_421 = arith.constant 0 : index
    %363 = vector.load %arg3[%c4_420, %c0_421] : memref<11x256xf32, #tpu.memory_space<vmem>>, vector<1x256xf32>
    %364 = vector.broadcast %363 : vector<1x256xf32> to vector<8x256xf32>
    %365 = arith.mulf %362, %364 : vector<8x256xf32>
    %c40_422 = arith.constant 40 : index
    %c0_423 = arith.constant 0 : index
    %366 = vector.load %arg15[%c40_422, %c0_423] : memref<72x256xf32, #tpu.memory_space<vmem>>, vector<8x256xf32>
    tpu.vector_store %arg15[%c40_422, %c0_423], %365 {strides = array<i32>} : memref<72x256xf32, #tpu.memory_space<vmem>>, vector<8x256xf32>,
    %c0_424 = arith.constant 0 : index
    %c143_425 = arith.constant 143 : index
    %367 = vector.load %arg14[%c0_424, %c143_425] : memref<8x512xf32, #tpu.memory_space<vmem>>, vector<8x256xf32>
    %c2_426 = arith.constant 2 : index
    %c0_427 = arith.constant 0 : index
    %368 = vector.load %arg3[%c2_426, %c0_427] : memref<11x256xf32, #tpu.memory_space<vmem>>, vector<1x256xf32>
    %369 = vector.broadcast %368 : vector<1x256xf32> to vector<8x256xf32>
    %370 = arith.mulf %367, %369 : vector<8x256xf32>
    %c48_428 = arith.constant 48 : index
    %c0_429 = arith.constant 0 : index
    %371 = vector.load %arg15[%c48_428, %c0_429] : memref<72x256xf32, #tpu.memory_space<vmem>>, vector<8x256xf32>
    tpu.vector_store %arg15[%c48_428, %c0_429], %370 {strides = array<i32>} : memref<72x256xf32, #tpu.memory_space<vmem>>, vector<8x256xf32>,
    %c0_430 = arith.constant 0 : index
    %c144_431 = arith.constant 144 : index
    %372 = vector.load %arg14[%c0_430, %c144_431] : memref<8x512xf32, #tpu.memory_space<vmem>>, vector<8x256xf32>
    %c56_432 = arith.constant 56 : index
    %c0_433 = arith.constant 0 : index
    %373 = vector.load %arg15[%c56_432, %c0_433] : memref<72x256xf32, #tpu.memory_space<vmem>>, vector<8x256xf32>
    tpu.vector_store %arg15[%c56_432, %c0_433], %372 {strides = array<i32>} : memref<72x256xf32, #tpu.memory_space<vmem>>, vector<8x256xf32>,
    %c0_434 = arith.constant 0 : index
    %c145_435 = arith.constant 145 : index
    %374 = vector.load %arg14[%c0_434, %c145_435] : memref<8x512xf32, #tpu.memory_space<vmem>>, vector<8x256xf32>
    %c4_436 = arith.constant 4 : index
    %c0_437 = arith.constant 0 : index
    %375 = vector.load %arg3[%c4_436, %c0_437] : memref<11x256xf32, #tpu.memory_space<vmem>>, vector<1x256xf32>
    %376 = vector.broadcast %375 : vector<1x256xf32> to vector<8x256xf32>
    %377 = arith.mulf %374, %376 : vector<8x256xf32>
    %c64_438 = arith.constant 64 : index
    %c0_439 = arith.constant 0 : index
    %378 = vector.load %arg15[%c64_438, %c0_439] : memref<72x256xf32, #tpu.memory_space<vmem>>, vector<8x256xf32>
    tpu.vector_store %arg15[%c64_438, %c0_439], %377 {strides = array<i32>} : memref<72x256xf32, #tpu.memory_space<vmem>>, vector<8x256xf32>,
    %c0_440 = arith.constant 0 : index
    %c0_441 = arith.constant 0 : index
    %379 = vector.load %arg15[%c0_440, %c0_441] : memref<72x256xf32, #tpu.memory_space<vmem>>, vector<72x256xf32>
    %cst_442 = arith.constant dense<0.000000e+00> : vector<8x256xf32>
    %380 = tpu.matmul %300, %379, %cst_442 {dimension_numbers = #tpu.dot_dimension_numbers<[1], [0], [0], [1], [0, 0, 1, 1], [], []>} : vector<8x72xf32>, vector<72x256xf32>, vector<8x256xf32> -> vector<8x256xf32>
    %381 = arith.addf %380, %298 : vector<8x256xf32>
    %cst_443 = arith.constant 0.000000e+00 : f32
    %382 = vector.broadcast %cst_443 : f32 to vector<8x256xf32>
    %383 = arith.maximumf %381, %382 : vector<8x256xf32>
    %c0_444 = arith.constant 0 : index
    %c0_445 = arith.constant 0 : index
    %c0_446 = arith.constant 0 : index
    %384 = vector.load %arg9[%c0_444, %c0_445, %c0_446] : memref<1x8x256xf32, #tpu.memory_space<vmem>>, vector<1x8x256xf32>
    %385 = vector.shape_cast %384 : vector<1x8x256xf32> to vector<8x256xf32>
    %386 = vector.shape_cast %383 : vector<8x256xf32> to vector<1x8x256xf32>
    tpu.vector_store %arg9[%c0_444, %c0_445, %c0_446], %386 {strides = array<i32>} : memref<1x8x256xf32, #tpu.memory_space<vmem>>, vector<1x8x256xf32>,
    return
  }
  func.func @transform_0(%arg0: i32) -> (i32, i32, i32) {
    %c0_i32 = arith.constant 0 : i32
    %c0_i32_0 = arith.constant 0 : i32
    %c0_i32_1 = arith.constant 0 : i32
    return %arg0, %c0_i32, %c0_i32_0 : i32, i32, i32
  }
  func.func @transform_1(%arg0: i32) -> (i32, i32, i32) {
    %c0_i32 = arith.constant 0 : i32
    %c0_i32_0 = arith.constant 0 : i32
    %c0_i32_1 = arith.constant 0 : i32
    return %arg0, %c0_i32, %c0_i32_0 : i32, i32, i32
  }
  func.func @transform_2(%arg0: i32) -> (i32, i32) {
    %c0_i32 = arith.constant 0 : i32
    %c0_i32_0 = arith.constant 0 : i32
    %c0_i32_1 = arith.constant 0 : i32
    return %c0_i32, %c0_i32_0 : i32, i32
  }
  func.func @transform_3(%arg0: i32) -> (i32, i32) {
    %c0_i32 = arith.constant 0 : i32
    %c0_i32_0 = arith.constant 0 : i32
    %c0_i32_1 = arith.constant 0 : i32
    return %c0_i32, %c0_i32_0 : i32, i32
  }
  func.func @transform_4(%arg0: i32) -> (i32, i32) {
    %c0_i32 = arith.constant 0 : i32
    %c0_i32_0 = arith.constant 0 : i32
    %c0_i32_1 = arith.constant 0 : i32
    return %c0_i32, %c0_i32_0 : i32, i32
  }
  func.func @transform_5(%arg0: i32) -> (i32, i32) {
    %c0_i32 = arith.constant 0 : i32
    %c0_i32_0 = arith.constant 0 : i32
    %c0_i32_1 = arith.constant 0 : i32
    return %c0_i32, %c0_i32_0 : i32, i32
  }
  func.func @transform_6(%arg0: i32) -> (i32, i32) {
    %c0_i32 = arith.constant 0 : i32
    %c0_i32_0 = arith.constant 0 : i32
    %c0_i32_1 = arith.constant 0 : i32
    return %c0_i32, %c0_i32_0 : i32, i32
  }
  func.func @transform_7(%arg0: i32) -> (i32, i32) {
    %c0_i32 = arith.constant 0 : i32
    %c0_i32_0 = arith.constant 0 : i32
    %c0_i32_1 = arith.constant 0 : i32
    return %c0_i32, %c0_i32_0 : i32, i32
  }
  func.func @transform_8(%arg0: i32) -> (i32, i32, i32) {
    %c0_i32 = arith.constant 0 : i32
    %c0_i32_0 = arith.constant 0 : i32
    %c0_i32_1 = arith.constant 0 : i32
    return %arg0, %c0_i32, %c0_i32_0 : i32, i32, i32
  }
}

</mosaic_0001>

<bundles_post_ra>
// kernel: decoder_stage_forward.1
= control target key start
LH: loop header
LB: loop body
LE: loop exit
PB: predicated region body
PF: predicated region fallthrough
CT: control target
= control target key end

     0   :  { %s3577_s27 = smov 0   ;;  %s4390_s0 = inlined_call_operand.vmem [shape: f32[2,16,256], index: 0, kind: input, shape index: {}]   ;;  %s4391_s1 = inlined_call_operand.vmem [shape: f32[2,8,256], index: 1, kind: input, shape index: {}]   ;;  %s4392_s2 = inlined_call_operand.vmem [shape: f32[11,256], index: 2, kind: input, shape index: {}]   ;;  %s4393_s3 = inlined_call_operand.vmem [shape: f32[32,16], index: 3, kind: input, shape index: {}]   ;;  %s4394_s4 = inlined_call_operand.vmem [shape: f32[16,16], index: 4, kind: input, shape index: {}]   ;;  %s4395_s5 = inlined_call_operand.vmem [shape: f32[16,16], index: 5, kind: input, shape index: {}]   ;;  %s4396_s6 = inlined_call_operand.vmem [shape: f32[8,8], index: 6, kind: input, shape index: {}]   ;;  %s4397_s7 = inlined_call_operand.vmem [shape: f32[32,72], index: 7, kind: input, shape index: {}]   ;;  %s4398_s8 = inlined_call_operand.vmem [shape: f32[2,8,256], index: 8, kind: output, shape index: {}]  }
   0x1 LB: > { %s3159_s28 = sadd.s32 4294967295, %s3509_s27   ;;  %p3163_p0 = scmp.ge.s32.totalorder %s3509_s27, 1  ;;  %s3509_s27 = sphi %s3577_s27, %s18_s27  }
   0x2   : > { %p272_p1 = scmp.lt.s32.totalorder %s3509_s27, 3 }
   0x4   : > { %p273_p2 = pnand %p3163_p0, %p272_p1 }
   0x5   : > { %p311_p3 = scmp.lt.s32.totalorder (!%p273_p2), %s3159_s28, 1  ;;  %v3511_v0 = vmov (!%p273_p2), 0.0   ;;  %v334_v7 = vld [vmem:[%s4393_s3] sm:$0xff] (!%p273_p2)  ;;  %vm342_vm0 = vcmask (!%p273_p2), 130048   ;;  %v335_v8 = vld [vmem:[%s4393_s3 + $0x8] sm:$0xff] (!%p273_p2)  ;;  %v336_v9 = vld [vmem:[%s4393_s3 + $0x10] sm:$0xff] (!%p273_p2)  ;;  %v447_v11 = vlaneseq (!%p273_p2) }
   0x6   : > { %276 = sbr.rel (%p273_p2) target bundleno = 3752 (0xea8), region = 52  ;;  %419 = vmatprep.mubr.f32.mxu0 (!%p273_p2), %v3511_v0  ;;  %326 = vst [vmem:[#allocation2] sm:$0x3] (!%p273_p2), %v3511_v0  ;;  %327 = vst [vmem:[#allocation2 + $0x6] sm:$0x3] (!%p273_p2), %v3511_v0  ;;  %790 = vmatprep.mubr.f32.mxu1 (!%p273_p2), %v3511_v0  ;;  %v337_v10 = vld [vmem:[%s4393_s3 + $0x18] sm:$0xff] (!%p273_p2) }
   0x7   : > { %328 = vst [vmem:[#allocation4] sm:$0xff] (!%p273_p2), %v3511_v0  ;;  %329 = vst [vmem:[#allocation4 + $0x18] sm:$0xff] (!%p273_p2), %v3511_v0  ;;  %v3620_v12 = vshrl.u32 (!%p273_p2), %v447_v11, 7  ;;  %v3174_v13 = vld [vmem:[%s4392_s2 + $0x7] ss:$8 sm:$0x3] (!%p273_p2) }
   0x8   : > { %332 = vst [vmem:[#allocation3 + $0x10] sm:$0xc0] (!%p273_p2), %v3511_v0  ;;  %333 = vst [vmem:[#allocation3 + $0x18] sm:$0xc0] (!%p273_p2), %v3511_v0  ;;  %v3512_v56 = vmov (!%p273_p2), 1966171168  }
   0x9   : > { %v3626_v14 = vsub.s32 (!%p273_p2), 0, %v3620_v12  ;;  %v3629_v15 = vsub.s32 (!%p273_p2), 1, %v3620_v12  ;;  %v3175_v16 = vld [vmem:[%s4392_s2 + $0x10] ss:$8 sm:$0x3] (!%p273_p2)  ;;  %v532_v57 = vunpack.c.l.s4 (!%p273_p2), %v3512_v56  ;;  %vm3663_vm1 = vcmp.lt.s32.totalorder (!%p273_p2), %v447_v11, 256 }
   0xa   : > { %v3176_v23 = vld [vmem:[%s4392_s2 + $0x11] ss:$8 sm:$0x3] (!%p273_p2)  ;;  %v3177_v32 = vld [vmem:[%s4392_s2 + $0x12] ss:$8 sm:$0x3] (!%p273_p2) }
   0xb   : > { %v450_v18 = vrot.slane (!%p273_p2), %v3174_v13, %v3626_v14  ;;  %v465_v20 = vrot.slane (!%p273_p2), %v3175_v16, %v3626_v14  ;;  %v454_v21 = vrot.slane (!%p273_p2), %v3174_v13, %v3629_v15  ;;  %v469_v22 = vrot.slane (!%p273_p2), %v3175_v16, %v3629_v15  ;;  %s3514_s30 = smov (!%p273_p2), 48   ;;  %s3515_s9 = smov (!%p273_p2), 112  }
   0xc   : > { %v482_v28 = vrot.slane (!%p273_p2), %v3176_v23, %v3626_v14  ;;  %v486_v31 = vrot.slane (!%p273_p2), %v3176_v23, %v3629_v15  ;;  %v499_v38 = vrot.slane (!%p273_p2), %v3177_v32, %v3626_v14  ;;  %v503_v40 = vrot.slane (!%p273_p2), %v3177_v32, %v3629_v15  ;;  %s3517_s11 = smov (!%p273_p2), 80   ;;  %s3518_s12 = smov (!%p273_p2), 96  }
   0xd   : > { %s4406_s28 = smov (!%p311_p3, %s3159_s28), 1  ;;  %s3519_s15 = smov 127   ;;  %vm599_vm2 = vcmask 261120   ;;  %vm589_vm3 = vcmask 392192   ;;  %vm625_vm4 = vcmask 916480   ;;  %vm647_vm5 = vcmask 654336  }
   0xe   : > { %s3229_s29 = sshll.u32 %s4406_s28, 5  ;;  %s3520_s18 = smov 126   ;;  %vm636_vm6 = vcmask 785408   ;;  %vm826_vm7 = vcmask 1039360   ;;  %vm818_vm8 = vcmask 1031168   ;;  %vm868_vm9 = vcmask 7168  }
   0xf   : > { %s315_s10 = scalar_lea.vmem %s4390_s0, %s3229_s29  ;;  %s3513_s29 = smov 32   ;;  %vm908_vm10 = vcmask 23552   ;;  %vm888_vm11 = vcmask 15360   ;;  %vm805_vm12 = vcmask 1022976   ;;  %vm876_vm13 = vcmask 1014784  }
  0x10   : > { %v339_v1 = vld [vmem:[%s315_s10 + $0x8] sm:$0xff]  ;;  %v341_v2 = vld [vmem:[%s315_s10 + $0x18] sm:$0xff]  ;;  %v338_v3 = vld [vmem:[%s315_s10] sm:$0xff]  ;;  %s3521_s23 = smov 2   ;;  %s3522_s24 = smov 1   ;;  %vm896_vm14 = vcmask 1006592  }
  0x11   : > { %v3232_v4 = vpack.c.bf16 %v341_v2, %v339_v1  ;;  %v340_v5 = vld [vmem:[%s315_s10 + $0x10] sm:$0xff]  ;;  %s3516_s10 = smov 16   ;;  %s3523_s16 = smov 125   ;;  %vm4399_vm15 = vcmask 998400  }
  0x12   : > { %v3234_v6 = vpack.c.bf16 %v340_v5, %v338_v3  ;;  %v533_v3 = vunpack.c.0.s8 %v532_v57  ;;  %s3524_s17 = smov 3   ;;  %s3525_s25 = smov 124  }
  0x13   : > { %3233 = vmatprep.subr.bf16.mxu0 %v3232_v4  ;;  %s3526_s26 = smov 122   ;;  %s3527_s13 = smov 123  }
  0x14   : > { %3235 = vmatpush1.bf16.msra.mxu0 %v3234_v6  ;;  %v3659_v16 = vsub.s32 %v533_v3, %v3620_v12  ;;  %s4400_s14 = sshll.u32 %s4406_s28, 4  ;;  %s3531_s22 = smov 17  }
  0x15   : > { %s320_s21 = scalar_lea.vmem %s4391_s1, %s4400_s14 }
  0x17   : > { %3170 = vmatmul.mubr.msk.f32.vlgmr.msra.gmra.mrb[0].mxu0 %vm342_vm0, %v334_v7 }
  0x18   : > { %425 = vmatprep.mubr.f32.mxu0 %v3511_v0 }
  0x1b   : > { %3171 = vmatmul.mubr.msk.f32.gmra.mrb[2].mxu0 %vm342_vm0, %v335_v8 }
  0x1c   : > { %431 = vmatprep.mubr.f32.mxu0 %v3511_v0 }
  0x1f   : > { %3172 = vmatmul.mubr.msk.f32.gmra.mrb[4].mxu0 %vm342_vm0, %v336_v9 }
  0x20   : > { %437 = vmatprep.mubr.f32.mxu0 %v3511_v0 }
  0x23   : > { %3173 = vmatmul.mubr.msk.f32.gmra.mrb[6].mxu0 %vm342_vm0, %v337_v10 }
  0x24   : > { %1461 = vmatprep.mubr.f32.mxu0 %v3511_v0 }
  0xea   : > { %v421_v17 = vpop.f32.mrb[0].mxu0 }
  0xeb   : > { %v423_v19 = vpop.f32.mrb[1].mxu0  ;;  %v457_v25 = vmul.f32 %v450_v18, %v421_v17 }
  0xec   : > { %v458_v29 = vmul.f32 %v454_v21, %v423_v19 }
  0xee   : > { %v427_v24 = vpop.f32.mrb[2].mxu0 }
  0xef   : > { %v472_v26 = vmul.f32 %v465_v20, %v427_v24  ;;  %v429_v27 = vpop.f32.mrb[3].mxu0 }
  0xf0   : > { %v473_v30 = vmul.f32 %v469_v22, %v429_v27 }
  0xf1   : > { %v474_v33 = vadd.f32 %v472_v26, %v457_v25 }
  0xf2   : > { %v475_v34 = vadd.f32 %v473_v30, %v458_v29  ;;  %v433_v35 = vpop.f32.mrb[4].mxu0 }
  0xf3   : > { %v489_v36 = vmul.f32 %v482_v28, %v433_v35  ;;  %v435_v37 = vpop.f32.mrb[5].mxu0 }
  0xf4   : > { %v490_v39 = vmul.f32 %v486_v31, %v435_v37 }
  0xf5   : > { %v491_v41 = vadd.f32 %v489_v36, %v474_v33 }
  0xf6   : > { %v492_v42 = vadd.f32 %v490_v39, %v475_v34  ;;  %v439_v43 = vpop.f32.mrb[6].mxu0 }
  0xf7   : > { %v506_v44 = vmul.f32 %v499_v38, %v439_v43  ;;  %v441_v45 = vpop.f32.mrb[7].mxu0  ;;  %v3182_v43 = vld [vmem:[%s4392_s2 + $0x4] ss:$8 sm:$0x3] }
  0xf8   : > { %v507_v46 = vmul.f32 %v503_v40, %v441_v45  ;;  %v3180_v40 = vld [vmem:[%s4392_s2 + $0x2] ss:$8 sm:$0x3]  ;;  %v3184_v45 = vld [vmem:[%s4392_s2 + $0x6] ss:$8 sm:$0x3] }
  0xf9   : > { %v508_v47 = vadd.f32 %v506_v44, %v491_v41  ;;  %v3179_v41 = vld [vmem:[%s4392_s2 + $0x1] ss:$8 sm:$0x3]  ;;  %v800_v44 = vld [vmem:[%s4392_s2] ss:$8 sm:$0x3] }
  0xfa   : > { %v509_v48 = vadd.f32 %v507_v46, %v492_v42  ;;  %v3183_v42 = vld [vmem:[%s4392_s2 + $0x5] ss:$8 sm:$0x3] }
  0xfb   : > { %v3648_v49 = vmax.f32 %v508_v47, 0.0 }
  0xfc   : > { %v3650_v50 = vmax.f32 %v509_v48, 0.0 }
  0xfd   : > { %v513_v51 = vrot.slane %v3648_v49, 4 }
  0xfe   : > { %v519_v52 = vrot.slane %v3650_v50, 4 }
  0xff   : > { %v514_v53 = vadd.f32 %v513_v51, %v3648_v49  ;;  %v553_v54 = vmax.f32 %v3648_v49, %v513_v51 }
 0x100   : > { %v520_v55 = vadd.f32 %v519_v52, %v3650_v50  ;;  %v559_v58 = vmax.f32 %v3650_v50, %v519_v52 }
 0x101   : > { %v515_v59 = vrot.slane %v514_v53, 2  ;;  %v554_v60 = vrot.slane %v553_v54, 2 }
 0x102   : > { %v521_v61 = vrot.slane %v520_v55, 2  ;;  %v560_v62 = vrot.slane %v559_v58, 2 }
 0x103   : > { %v516_v63 = vadd.f32 %v515_v59, %v514_v53  ;;  %v555_v1 = vmax.f32 %v553_v54, %v554_v60 }
 0x104   : > { %v522_v2 = vadd.f32 %v521_v61, %v520_v55  ;;  %v561_v4 = vmax.f32 %v559_v58, %v560_v62 }
 0x105   : > { %v517_v5 = vrot.slane %v516_v63, 1  ;;  %v556_v6 = vrot.slane %v555_v1, 1 }
 0x106   : > { %v523_v7 = vrot.slane %v522_v2, 1  ;;  %v562_v8 = vrot.slane %v561_v4, 1 }
 0x107   : > { %v518_v9 = vadd.f32 %v517_v5, %v516_v63  ;;  %v557_v10 = vmax.f32 %v555_v1, %v556_v6 }
 0x108   : > { %v524_v13 = vadd.f32 %v523_v7, %v522_v2  ;;  %v563_v17 = vmax.f32 %v561_v4, %v562_v8 }
 0x109   : > { %v526_v18 = vmul.f32 0.125, %v518_v9 }
 0x10a   : > { %v527_v19 = vmul.f32 0.125, %v524_v13  ;;  %v566_v20 = vcombine.low %v557_v10, %v563_v17 }
 0x10c   : > { %v530_v21 = vcombine.low %v526_v18, %v527_v19  ;;  %v573_v22 = vrot.slane %v566_v20, %v3659_v16 }
 0x10e   : > { %v537_v24 = vrot.slane %v530_v21, %v3659_v16  ;;  %v580_v25 = vrot.slane %v573_v22, %v3659_v16 }
 0x110   : > { %v544_v26 = vrot.slane %v537_v24, %v3659_v16  ;;  %583 = vst.msk [vmem:[#allocation2 + $0x3] ss:$2 sm:$0x3] %vm3663_vm1, %v580_v25 }
 0x112   : > { %551 = vst.msk [vmem:[#allocation2 + $0x2] ss:$2 sm:$0x3] %vm3663_vm1, %v544_v26 }
 0x117   : > { %v664_v27 = vld [vmem:[#allocation2 + $0x1] ss:$2 sm:$0x7] }
 0x118   : > { %v654_v28 = vld [vmem:[#allocation2 + $0x1] ss:$2 sm:$0x7]  ;;  %666 = vrot.lane.b32.xlu1 %v664_v27, %s3513_s29 }
 0x119   : > { %656 = vrot.lane.b32.xlu0 %v654_v28, %s3514_s30  ;;  %v689_v11 = vld [vmem:[#allocation2 + $0x3] ss:$2 sm:$0x7]  ;;  %v615_v30 = vld [vmem:[#allocation2 + $0x2] ss:$2 sm:$0x3] }
 0x11a   : > { %v674_v29 = vld [vmem:[#allocation2 + $0x1] ss:$2 sm:$0x7]  ;;  %617 = vst.msk [vmem:[#allocation3 + $0x3] ss:$8 sm:$0x3] %vm3663_vm1, %v615_v30 }
 0x11b   : > { %v684_v31 = vld [vmem:[#allocation2 + $0x3] ss:$2 sm:$0x3]  ;;  %v605_v32 = vld [vmem:[#allocation2] ss:$2 sm:$0x7] }
 0x11c   : > { %691 = vrot.lane.b32.xlu1 %v689_v11, %s3515_s9  ;;  %v584_v33 = vld [vmem:[#allocation2] ss:$2 sm:$0x7]  ;;  %686 = vst.msk [vmem:[#allocation3 + $0x12] ss:$8 sm:$0x3] %vm3663_vm1, %v684_v31 }
 0x11d   : > { %676 = vrot.lane.b32.xlu0 %v674_v29, %s3516_s10  ;;  %v620_v34 = vld [vmem:[#allocation2 + $0x2] ss:$2 sm:$0x7]  ;;  %v709_v38 = vld [vmem:[#allocation2 + $0x3] ss:$2 sm:$0x7] }
 0x11e   : > { %v594_v35 = vld [vmem:[#allocation2] ss:$2 sm:$0x7]  ;;  %v699_v39 = vld [vmem:[#allocation2 + $0x3] ss:$2 sm:$0x7] }
 0x11f   : > { %v642_v36 = vld [vmem:[#allocation2 + $0x2] ss:$2 sm:$0x7] }
 0x120   : > { %607 = vrot.lane.b32.xlu1 %v605_v32, %s3516_s10  ;;  %v631_v37 = vld [vmem:[#allocation2 + $0x2] ss:$2 sm:$0x7] }
 0x121   : > { %586 = vrot.lane.b32.xlu0 %v584_v33, %s3514_s30  ;;  %v512_v32 = vld [vmem:[%s4394_s4] sm:$0xff] }
 0x124   : > { %622 = vrot.lane.b32.xlu1 %v620_v34, %s3515_s9 }
 0x125   : > { %596 = vrot.lane.b32.xlu0 %v594_v35, %s3513_s29 }
 0x128   : > { %644 = vrot.lane.b32.xlu1 %v642_v36, %s3517_s11 }
 0x129   : > { %633 = vrot.lane.b32.xlu0 %v631_v37, %s3518_s12 }
 0x12c   : > { %711 = vrot.lane.b32.xlu1 %v709_v38, %s3517_s11 }
 0x12d   : > { %701 = vrot.lane.b32.xlu0 %v699_v39, %s3518_s12 }
 0x130   : > { %835 = vrot.lane.b32.xlu1 %v3180_v40, %s3519_s15 }
 0x131   : > { %815 = vrot.lane.b32.xlu0 %v3179_v41, %s3520_s18 }
 0x134   : > { %885 = vrot.lane.b32.xlu1 %v3183_v42, %s3521_s23 }
 0x135   : > { %865 = vrot.lane.b32.xlu0 %v3182_v43, %s3522_s24 }
 0x138   : > { %802 = vrot.lane.b32.xlu1 %v800_v44, %s3523_s16 }
 0x139   : > { %905 = vrot.lane.b32.xlu0 %v3184_v45, %s3524_s17 }
 0x18a   : > { %v667_v46 = vpop.permute.xlu1 %666 }
 0x18b   : > { %v657_v47 = vpop.permute.xlu0 %656  ;;  %v668_v48 = vrot.slane %v667_v46, 1 }
 0x18c   : > { %v658_v51 = vrot.slane %v657_v47, 1 }
 0x18d   : > { %v669_v52 = vsel %vm599_vm2, %v667_v46, %v668_v48 }
 0x18e   : > { %v659_v53 = vsel %vm589_vm3, %v657_v47, %v658_v51  ;;  %672 = vst.msk [vmem:[#allocation3 + $0x10] ss:$8 sm:$0x3] %vm3663_vm1, %v669_v52  ;;  %v692_v54 = vpop.permute.xlu1 %691 }
 0x18f   : > { %662 = vst.msk [vmem:[#allocation3 + $0x7] ss:$8 sm:$0x3] %vm3663_vm1, %v659_v53  ;;  %v677_v55 = vpop.permute.xlu0 %676  ;;  %v693_v56 = vrot.slane %v692_v54, 1 }
 0x190   : > { %v678_v57 = vrot.slane %v677_v55, 1 }
 0x191   : > { %v694_v58 = vsel %vm625_vm4, %v692_v54, %v693_v56  ;;  %v3181_v56 = vld [vmem:[%s4392_s2 + $0x3] ss:$8 sm:$0x3] }
 0x192   : > { %v679_v59 = vsel %vm342_vm0, %v677_v55, %v678_v57  ;;  %697 = vst.msk [vmem:[#allocation3 + $0x13] ss:$8 sm:$0x3] %vm3663_vm1, %v694_v58  ;;  %v608_v60 = vpop.permute.xlu1 %607 }
 0x193   : > { %682 = vst.msk [vmem:[#allocation3 + $0x11] ss:$8 sm:$0x3] %vm3663_vm1, %v679_v59  ;;  %v587_v61 = vpop.permute.xlu0 %586  ;;  %v609_v62 = vrot.slane %v608_v60, 1 }
 0x194   : > { %v588_v63 = vrot.slane %v587_v61, 1 }
 0x195   : > { %v610_v1 = vsel %vm342_vm0, %v608_v60, %v609_v62 }
 0x196   : > { %v590_v2 = vsel %vm589_vm3, %v587_v61, %v588_v63  ;;  %613 = vst.msk [vmem:[#allocation3 + $0x2] ss:$8 sm:$0x3] %vm3663_vm1, %v610_v1  ;;  %v623_v3 = vpop.permute.xlu1 %622 }
 0x197   : > { %592 = vst.msk [vmem:[#allocation3] ss:$8 sm:$0x3] %vm3663_vm1, %v590_v2  ;;  %v597_v4 = vpop.permute.xlu0 %596  ;;  %v624_v5 = vrot.slane %v623_v3, 1 }
 0x198   : > { %v598_v6 = vrot.slane %v597_v4, 1 }
 0x199   : > { %v626_v7 = vsel %vm625_vm4, %v623_v3, %v624_v5 }
 0x19a   : > { %v600_v8 = vsel %vm599_vm2, %v597_v4, %v598_v6  ;;  %629 = vst.msk [vmem:[#allocation3 + $0x4] ss:$8 sm:$0x3] %vm3663_vm1, %v626_v7  ;;  %v645_v9 = vpop.permute.xlu1 %644 }
 0x19b   : > { %603 = vst.msk [vmem:[#allocation3 + $0x1] ss:$8 sm:$0x3] %vm3663_vm1, %v600_v8  ;;  %v634_v10 = vpop.permute.xlu0 %633  ;;  %v646_v13 = vrot.slane %v645_v9, 1 }
 0x19c   : > { %v635_v17 = vrot.slane %v634_v10, 1 }
 0x19d   : > { %v648_v18 = vsel %vm647_vm5, %v645_v9, %v646_v13 }
 0x19e   : > { %v637_v19 = vsel %vm636_vm6, %v634_v10, %v635_v17  ;;  %651 = vst.msk [vmem:[#allocation3 + $0x6] ss:$8 sm:$0x3] %vm3663_vm1, %v648_v18  ;;  %v712_v20 = vpop.permute.xlu1 %711 }
 0x19f   : > { %640 = vst.msk [vmem:[#allocation3 + $0x5] ss:$8 sm:$0x3] %vm3663_vm1, %v637_v19  ;;  %v702_v21 = vpop.permute.xlu0 %701  ;;  %v713_v22 = vrot.slane %v712_v20, 1 }
 0x1a0   : > { %v703_v24 = vrot.slane %v702_v21, 1 }
 0x1a1   : > { %v714_v25 = vsel %vm647_vm5, %v712_v20, %v713_v22 }
 0x1a2   : > { %v704_v26 = vsel %vm636_vm6, %v702_v21, %v703_v24  ;;  %717 = vst.msk [vmem:[#allocation3 + $0x15] ss:$8 sm:$0x3] %vm3663_vm1, %v714_v25  ;;  %v836_v36 = vpop.permute.xlu1 %835 }
 0x1a3   : > { %707 = vst.msk [vmem:[#allocation3 + $0x14] ss:$8 sm:$0x3] %vm3663_vm1, %v704_v26  ;;  %v816_v33 = vpop.permute.xlu0 %815  ;;  %v837_v38 = vrot.slane %v836_v36, 7 }
 0x1a4   : > { %v817_v39 = vrot.slane %v816_v33, 7 }
 0x1a5   : > { %v838_v40 = vsel %vm826_vm7, %v837_v38, %v836_v36 }
 0x1a6   : > { %v720_v27 = vld [vmem:[#allocation3 + $0x8] sm:$0xff]  ;;  %v719_v11 = vld [vmem:[#allocation3] sm:$0xff]  ;;  %v886_v43 = vpop.permute.xlu1 %885  ;;  %v819_v45 = vsel %vm818_vm8, %v817_v39, %v816_v33  ;;  %v937_v39 = vsub.s32 2, %v3620_v12 }
 0x1a7   : > { %v866_v37 = vpop.permute.xlu0 %865  ;;  %v887_v46 = vrot.slane %v886_v43, 7 }
 0x1a8   : > { %v867_v41 = vrot.slane %v866_v37, 7 }
 0x1a9   : > { %v889_v61 = vsel %vm888_vm11, %v887_v46, %v886_v43 }
 0x1aa   : > { %v722_v28 = vld [vmem:[#allocation3 + $0x18] sm:$0xff]  ;;  %v721_v29 = vld [vmem:[#allocation3 + $0x10] sm:$0xff]  ;;  %v869_v51 = vsel %vm868_vm9, %v867_v41, %v866_v37  ;;  %v803_v2 = vpop.permute.xlu1 %802 }
 0x1ab   : > { %v3236_v30 = vpack.c.bf16 %v722_v28, %v720_v27  ;;  %v3238_v31 = vpack.c.bf16 %v721_v29, %v719_v11  ;;  %v906_v42 = vpop.permute.xlu0 %905  ;;  %v804_v3 = vrot.slane %v803_v2, 7 }
 0x1ac   : > { %v907_v52 = vrot.slane %v906_v42, 7 }
 0x1ad   : > { %3237 = vmatprep.subr.bf16.mxu1 %v3236_v30  ;;  %v806_v5 = vsel %vm805_vm12, %v804_v3, %v803_v2 }
 0x1ae   : > { %3239 = vmatpush1.bf16.msra.mxu1 %v3238_v31  ;;  %v909_v58 = vsel %vm908_vm10, %v907_v52, %v906_v42 }
 0x1b1   : > { %3178 = vmatmul.mubr.msk.f32.vlgmr.msra.gmra.mrb[0].mxu1 %vm342_vm0, %v512_v32 }
 0x1b2   : > { %1029 = vmatprep.mubr.f32.mxu1 %v3511_v0 }
 0x284   : > { %v792_v34 = vpop.f32.mrb[0].mxu1 }
 0x285   : > { %797 = vst [vmem:[#allocation4 + $0x8] sm:$0xff] %v792_v34  ;;  %v794_v35 = vpop.f32.mrb[1].mxu1 }
 0x286   : > { %798 = vst [vmem:[#allocation4 + $0x10] sm:$0xff] %v794_v35 }
 0x28d   : > { %v831_v44 = vld [vmem:[#allocation4 + $0x2] ss:$8 sm:$0x7]  ;;  %v811_v48 = vld [vmem:[#allocation4 + $0x1] ss:$8 sm:$0x7] }
 0x28e   : > { %v840_v47 = vmul.f32 %v838_v40, %v831_v44  ;;  %v821_v53 = vmul.f32 %v819_v45, %v811_v48  ;;  %v861_v54 = vld [vmem:[#allocation4 + $0xc] ss:$8 sm:$0x7]  ;;  %v849_v55 = vld [vmem:[#allocation4 + $0xb] ss:$8 sm:$0x3] }
 0x28f   : > { %v871_v57 = vmul.f32 %v869_v51, %v861_v54  ;;  %v852_v59 = vmul.f32 %v3181_v56, %v849_v55  ;;  %v901_v60 = vld [vmem:[#allocation4 + $0xe] ss:$8 sm:$0x7]  ;;  %v881_v62 = vld [vmem:[#allocation4 + $0xd] ss:$8 sm:$0x7] }
 0x290   : > { %842 = vrot.lane.b32.xlu1 %v840_v47, %s3520_s18  ;;  %823 = vrot.lane.b32.xlu0 %v821_v53, %s3519_s15  ;;  %v911_v63 = vmul.f32 %v909_v58, %v901_v60  ;;  %v891_v1 = vmul.f32 %v889_v61, %v881_v62  ;;  %v799_v4 = vld [vmem:[#allocation4] ss:$8 sm:$0x7]  ;;  %v951_v53 = vld [vmem:[%s320_s21] sm:$0xff] }
 0x291   : > { %v808_v10 = vmul.f32 %v806_v5, %v799_v4  ;;  %v952_v47 = vld [vmem:[%s320_s21 + $0x8] sm:$0xff]  ;;  %v1038_v61 = vld [vmem:[%s4396_s6] sm:$0xff]  ;;  %s3530_s21 = smov 15  }
 0x294   : > { %873 = vrot.lane.b32.xlu1 %v871_v57, %s3525_s25  ;;  %854 = vrot.lane.b32.xlu0 %v852_v59, %s3523_s16  ;;  %v957_v57 = vld [vmem:[%s4395_s5] sm:$0xff] }
 0x298   : > { %913 = vrot.lane.b32.xlu1 %v911_v63, %s3526_s26  ;;  %893 = vrot.lane.b32.xlu0 %v891_v1, %s3527_s13 }
 0x302   : > { %v843_v6 = vpop.permute.xlu1 %842  ;;  %v824_v7 = vpop.permute.xlu0 %823 }
 0x303   : > { %v844_v8 = vrot.slane %v843_v6, 1  ;;  %v825_v9 = vrot.slane %v824_v7, 1 }
 0x305   : > { %v827_v13 = vsel %vm826_vm7, %v824_v7, %v825_v9  ;;  %v845_v20 = vsel %vm818_vm8, %v843_v6, %v844_v8 }
 0x306   : > { %v874_v17 = vpop.permute.xlu1 %873  ;;  %v829_v18 = vadd.f32 %v827_v13, %v808_v10  ;;  %v855_v19 = vpop.permute.xlu0 %854 }
 0x307   : > { %v875_v21 = vrot.slane %v874_v17, 7  ;;  %v856_v22 = vrot.slane %v855_v19, 7 }
 0x308   : > { %v847_v24 = vadd.f32 %v845_v20, %v829_v18 }
 0x309   : > { %v857_v25 = vsel %vm805_vm12, %v856_v22, %v855_v19  ;;  %v877_v11 = vsel %vm876_vm13, %v875_v21, %v874_v17  ;;  %v1130_v17 = vld [vmem:[%s4395_s5 + $0x8] sm:$0xff] }
 0x30a   : > { %v914_v26 = vpop.permute.xlu1 %913  ;;  %v859_v27 = vadd.f32 %v857_v25, %v847_v24  ;;  %v894_v28 = vpop.permute.xlu0 %893 }
 0x30b   : > { %v915_v29 = vrot.slane %v914_v26, 7  ;;  %v895_v30 = vrot.slane %v894_v28, 7 }
 0x30c   : > { %v879_v31 = vadd.f32 %v877_v11, %v859_v27 }
 0x30d   : > { %v897_v32 = vsel %vm896_vm14, %v895_v30, %v894_v28  ;;  %v917_v34 = vsel %vm4399_vm15, %v915_v29, %v914_v26  ;;  %vm1039_vm15 = vcmask 64512  }
 0x30e   : > { %v899_v33 = vadd.f32 %v897_v32, %v879_v31 }
 0x310   : > { %v919_v35 = vadd.f32 %v917_v34, %v899_v33 }
 0x312   : > { %v3185_v36 = vmul.f32 -1.442695, %v919_v35 }
 0x314   : > { %3485 = vpow2.f32 %v3185_v36 }
 0x31e   : > { %v3486_v37 = vpop.eup %3485 }
 0x31f   : > { %v923_v38 = vadd.f32 1.0, %v3486_v37 }
 0x321   : > { %3487 = vrcp.f32 %v923_v38 }
 0x32b   : > { %v3488_v40 = vpop.eup %3487 }
 0x32c   : > { %v938_v41 = vrot.slane %v3488_v40, %v937_v39  ;;  %v934_v42 = vrot.slane %v3488_v40, %v3629_v15  ;;  %v930_v43 = vrot.slane %v3488_v40, %v3626_v14 }
 0x32e   : > { %943 = vrot.lane.b32.xlu1 %v938_v41, %s3524_s17  ;;  %941 = vrot.lane.b32.xlu0 %v934_v42, %s3524_s17 }
 0x332   : > { %939 = vrot.lane.b32.xlu0 %v930_v43, %s3524_s17 }
 0x3a0   : > { %v944_v44 = vpop.permute.xlu1 %943  ;;  %v942_v45 = vpop.permute.xlu0 %941 }
 0x3a1   : > { %v946_v46 = vsel %vm908_vm10, %v942_v45, %v944_v44 }
 0x3a2   : > { %v950_v48 = vmul.f32 %v946_v46, %v3650_v50 }
 0x3a4   : > { %v940_v51 = vpop.permute.xlu0 %939  ;;  %v3240_v52 = vpack.c.bf16 %v952_v47, %v950_v48 }
 0x3a5   : > { %v945_v54 = vsel %vm908_vm10, %v940_v51, %v942_v45 }
 0x3a6   : > { %v949_v55 = vmul.f32 %v945_v54, %v3648_v49  ;;  %3241 = vmatprep.subr.bf16.mxu1 %v3240_v52 }
 0x3a8   : > { %v3242_v56 = vpack.c.bf16 %v951_v53, %v949_v55 }
 0x3aa   : > { %3243 = vmatpush1.bf16.msra.mxu1 %v3242_v56 }
 0x3ad   : > { %3186 = vmatmul.mubr.msk.f32.vlgmr.msra.gmra.mrb[2].mxu1 %vm342_vm0, %v957_v57 }
 0x3ae   : > { %1107 = vmatprep.mubr.f32.mxu1 %v3511_v0 }
 0x480   : > { %v1031_v58 = vpop.f32.mrb[2].mxu1 }
 0x481   : > { %v1033_v50 = vpop.f32.mrb[3].mxu1  ;;  %v1036_v60 = vmax.f32 %v1031_v58, 0.0 }
 0x482   : > { %v1037_v59 = vmax.f32 %v1033_v50, 0.0 }
 0x484   : > { %1043 = vmatprep.subr.mxu1 %v1037_v59 }
 0x485   : > { %1044 = vmatpush1.msra.mxu1 %v1036_v60 }
 0x486   : > { %3187 = vmatmul.mubr.msk.f32.vlgmr.msra.gmra.mrb[4].mxu1 %vm1039_vm15, %v1038_v61 }
 0x487   : > { %1202 = vmatprep.mubr.f32.mxu1 %v3511_v0 }
 0x559   : > { %v1109_v49 = vpop.f32.mrb[4].mxu1 }
 0x55a   : > { %v3188_v62 = vmul.f32 -1.442695, %v1109_v49  ;;  %v1111_v63 = vpop.f32.mrb[5].mxu1 }
 0x55b   : > { %v3189_v1 = vmul.f32 -1.442695, %v1111_v63 }
 0x55c   : > { %3489 = vpow2.f32 %v3188_v62 }
 0x55d   : > { %3491 = vpow2.f32 %v3189_v1 }
 0x566   : > { %v3490_v2 = vpop.eup %3489 }
 0x567   : > { %v3492_v3 = vpop.eup %3491  ;;  %v1120_v4 = vadd.f32 1.0, %v3490_v2 }
 0x568   : > { %v1121_v5 = vadd.f32 1.0, %v3492_v3  ;;  %v3192_v3 = vld [vmem:[%s4392_s2 + $0x1] ss:$8 sm:$0x3] }
 0x569   : > { %3493 = vrcp.f32 %v1120_v4  ;;  %v3193_v4 = vld [vmem:[%s4392_s2 + $0x2] ss:$8 sm:$0x3] }
 0x56a   : > { %3495 = vrcp.f32 %v1121_v5  ;;  %v3195_v5 = vld [vmem:[%s4392_s2 + $0x4] ss:$8 sm:$0x3] }
 0x573   : > { %v3494_v6 = vpop.eup %3493 }
 0x574   : > { %v3496_v7 = vpop.eup %3495  ;;  %v1126_v8 = vmul.f32 %v3494_v6, %v951_v53  ;;  %v3196_v6 = vld [vmem:[%s4392_s2 + $0x5] ss:$8 sm:$0x3] }
 0x575   : > { %v1127_v9 = vmul.f32 %v3496_v7, %v952_v47  ;;  %v3197_v7 = vld [vmem:[%s4392_s2 + $0x6] ss:$8 sm:$0x3] }
 0x576   : > { %v3246_v13 = vpack.c.bf16 %v1126_v8, %v949_v55  ;;  %v1471_v8 = vld [vmem:[%s4392_s2] ss:$8 sm:$0x3] }
 0x577   : > { %v3244_v10 = vpack.c.bf16 %v1127_v9, %v950_v48 }
 0x579   : > { %3245 = vmatprep.subr.bf16.mxu1 %v3244_v10 }
 0x57a   : > { %3247 = vmatpush1.bf16.msra.mxu1 %v3246_v13 }
 0x57d   : > { %3190 = vmatmul.mubr.msk.f32.vlgmr.msra.gmra.mrb[6].mxu1 %vm342_vm0, %v1130_v17 }
 0x57e   : > { %1969 = vmatprep.mubr.f32.mxu1 %v3511_v0 }
 0x650   : > { %v1204_v18 = vpop.f32.mrb[6].mxu1 }
 0x651   : > { %v3808_v19 = vmax.f32 %v1204_v18, 0.0  ;;  %v1206_v20 = vpop.f32.mrb[7].mxu1 }
 0x652   : > { %v3810_v21 = vmax.f32 %v1206_v20, 0.0 }
 0x653   : > { %v1212_v22 = vrot.slane %v3808_v19, 4 }
 0x654   : > { %v1218_v24 = vrot.slane %v3810_v21, 4 }
 0x655   : > { %v1213_v25 = vadd.f32 %v1212_v22, %v3808_v19  ;;  %v1246_v26 = vmax.f32 %v3808_v19, %v1212_v22 }
 0x656   : > { %v1219_v27 = vadd.f32 %v1218_v24, %v3810_v21  ;;  %v1252_v28 = vmax.f32 %v3810_v21, %v1218_v24 }
 0x657   : > { %v1214_v11 = vrot.slane %v1213_v25, 2  ;;  %v1247_v29 = vrot.slane %v1246_v26, 2 }
 0x658   : > { %v1220_v30 = vrot.slane %v1219_v27, 2  ;;  %v1253_v31 = vrot.slane %v1252_v28, 2 }
 0x659   : > { %v1215_v32 = vadd.f32 %v1214_v11, %v1213_v25  ;;  %v1248_v33 = vmax.f32 %v1246_v26, %v1247_v29 }
 0x65a   : > { %v1221_v34 = vadd.f32 %v1220_v30, %v1219_v27  ;;  %v1254_v35 = vmax.f32 %v1252_v28, %v1253_v31 }
 0x65b   : > { %v1216_v36 = vrot.slane %v1215_v32, 1  ;;  %v1249_v37 = vrot.slane %v1248_v33, 1 }
 0x65c   : > { %v1222_v38 = vrot.slane %v1221_v34, 1  ;;  %v1255_v40 = vrot.slane %v1254_v35, 1 }
 0x65d   : > { %v1217_v41 = vadd.f32 %v1216_v36, %v1215_v32  ;;  %v1250_v42 = vmax.f32 %v1248_v33, %v1249_v37 }
 0x65e   : > { %v1223_v43 = vadd.f32 %v1222_v38, %v1221_v34  ;;  %v1256_v44 = vmax.f32 %v1254_v35, %v1255_v40 }
 0x65f   : > { %v1224_v45 = vmul.f32 0.125, %v1217_v41 }
 0x660   : > { %v1225_v46 = vmul.f32 0.125, %v1223_v43  ;;  %v1259_v47 = vcombine.low %v1250_v42, %v1256_v44 }
 0x662   : > { %v1228_v48 = vcombine.low %v1224_v45, %v1225_v46  ;;  %v1266_v51 = vrot.slane %v1259_v47, %v3659_v16 }
 0x664   : > { %v1235_v52 = vrot.slane %v1228_v48, %v3659_v16  ;;  %v1273_v53 = vrot.slane %v1266_v51, %v3659_v16 }
 0x666   : > { %v1242_v54 = vrot.slane %v1235_v52, %v3659_v16  ;;  %1275 = vst.msk [vmem:[#allocation2 + $0x3] ss:$2 sm:$0x3] %vm3663_vm1, %v1273_v53 }
 0x668   : > { %1244 = vst.msk [vmem:[#allocation2 + $0x2] ss:$2 sm:$0x3] %vm3663_vm1, %v1242_v54 }
 0x66d   : > { %v1342_v55 = vld [vmem:[#allocation2 + $0x1] ss:$2 sm:$0x7] }
 0x66e   : > { %v1333_v56 = vld [vmem:[#allocation2 + $0x1] ss:$2 sm:$0x7]  ;;  %1344 = vrot.lane.b32.xlu0 %v1342_v55, %s3513_s29 }
 0x66f   : > { %1335 = vrot.lane.b32.xlu1 %v1333_v56, %s3514_s30  ;;  %v1363_v57 = vld [vmem:[#allocation2 + $0x3] ss:$2 sm:$0x7]  ;;  %v1303_v50 = vld [vmem:[#allocation2 + $0x2] ss:$2 sm:$0x3] }
 0x670   : > { %v1351_v58 = vld [vmem:[#allocation2 + $0x1] ss:$2 sm:$0x7]  ;;  %1304 = vst.msk [vmem:[#allocation3 + $0x3] ss:$8 sm:$0x3] %vm3663_vm1, %v1303_v50 }
 0x671   : > { %v1360_v16 = vld [vmem:[#allocation2 + $0x3] ss:$2 sm:$0x3]  ;;  %v1285_v59 = vld [vmem:[#allocation2] ss:$2 sm:$0x7] }
 0x672   : > { %1365 = vrot.lane.b32.xlu0 %v1363_v57, %s3515_s9  ;;  %1361 = vst.msk [vmem:[#allocation3 + $0x12] ss:$8 sm:$0x3] %vm3663_vm1, %v1360_v16  ;;  %v1276_v60 = vld [vmem:[#allocation2] ss:$2 sm:$0x7] }
 0x673   : > { %1353 = vrot.lane.b32.xlu1 %v1351_v58, %s3516_s10  ;;  %v1306_v61 = vld [vmem:[#allocation2 + $0x2] ss:$2 sm:$0x7]  ;;  %v1381_v1 = vld [vmem:[#allocation2 + $0x3] ss:$2 sm:$0x7] }
 0x674   : > { %v1294_v49 = vld [vmem:[#allocation2] ss:$2 sm:$0x7]  ;;  %v1372_v2 = vld [vmem:[#allocation2 + $0x3] ss:$2 sm:$0x7] }
 0x675   : > { %v1324_v62 = vld [vmem:[#allocation2 + $0x2] ss:$2 sm:$0x7] }
 0x676   : > { %1287 = vrot.lane.b32.xlu0 %v1285_v59, %s3513_s29  ;;  %v1315_v63 = vld [vmem:[#allocation2 + $0x2] ss:$2 sm:$0x7]  ;;  %v1211_v59 = vld [vmem:[%s4394_s4 + $0x8] sm:$0xff] }
 0x677   : > { %1278 = vrot.lane.b32.xlu1 %v1276_v60, %s3514_s30 }
 0x67a   : > { %1308 = vrot.lane.b32.xlu0 %v1306_v61, %s3515_s9 }
 0x67b   : > { %1296 = vrot.lane.b32.xlu1 %v1294_v49, %s3516_s10 }
 0x67e   : > { %1326 = vrot.lane.b32.xlu0 %v1324_v62, %s3517_s11 }
 0x67f   : > { %1317 = vrot.lane.b32.xlu1 %v1315_v63, %s3518_s12 }
 0x682   : > { %1383 = vrot.lane.b32.xlu0 %v1381_v1, %s3517_s11  ;;  %s3528_s11 = smov 111  }
 0x683   : > { %1374 = vrot.lane.b32.xlu1 %v1372_v2, %s3518_s12  ;;  %s3529_s12 = smov 113  }
 0x686   : > { %1499 = vrot.lane.b32.xlu0 %v3193_v4, %s3519_s15 }
 0x687   : > { %1483 = vrot.lane.b32.xlu1 %v3192_v3, %s3520_s18 }
 0x68a   : > { %1541 = vrot.lane.b32.xlu0 %v3196_v6, %s3521_s23 }
 0x68b   : > { %1525 = vrot.lane.b32.xlu1 %v3195_v5, %s3522_s24 }
 0x68e   : > { %1473 = vrot.lane.b32.xlu0 %v1471_v8, %s3523_s16 }
 0x68f   : > { %1557 = vrot.lane.b32.xlu1 %v3197_v7, %s3524_s17 }
 0x6e0   : > { %v1345_v9 = vpop.permute.xlu0 %1344 }
 0x6e1   : > { %v1336_v10 = vpop.permute.xlu1 %1335  ;;  %v1346_v13 = vrot.slane %v1345_v9, 1 }
 0x6e2   : > { %v1337_v17 = vrot.slane %v1336_v10, 1 }
 0x6e3   : > { %v1347_v18 = vsel %vm599_vm2, %v1345_v9, %v1346_v13  ;;  %v3194_v13 = vld [vmem:[%s4392_s2 + $0x3] ss:$8 sm:$0x3] }
 0x6e4   : > { %v1338_v20 = vsel %vm589_vm3, %v1336_v10, %v1337_v17  ;;  %1349 = vst.msk [vmem:[#allocation3 + $0x10] ss:$8 sm:$0x3] %vm3663_vm1, %v1347_v18  ;;  %v1366_v22 = vpop.permute.xlu0 %1365 }
 0x6e5   : > { %1340 = vst.msk [vmem:[#allocation3 + $0x7] ss:$8 sm:$0x3] %vm3663_vm1, %v1338_v20  ;;  %v1354_v24 = vpop.permute.xlu1 %1353  ;;  %v1367_v25 = vrot.slane %v1366_v22, 1 }
 0x6e6   : > { %v1355_v26 = vrot.slane %v1354_v24, 1 }
 0x6e7   : > { %v1368_v27 = vsel %vm625_vm4, %v1366_v22, %v1367_v25 }
 0x6e8   : > { %v1356_v28 = vsel %vm342_vm0, %v1354_v24, %v1355_v26  ;;  %1370 = vst.msk [vmem:[#allocation3 + $0x13] ss:$8 sm:$0x3] %vm3663_vm1, %v1368_v27  ;;  %v1288_v11 = vpop.permute.xlu0 %1287 }
 0x6e9   : > { %1358 = vst.msk [vmem:[#allocation3 + $0x11] ss:$8 sm:$0x3] %vm3663_vm1, %v1356_v28  ;;  %v1279_v29 = vpop.permute.xlu1 %1278  ;;  %v1289_v30 = vrot.slane %v1288_v11, 1 }
 0x6ea   : > { %v1280_v31 = vrot.slane %v1279_v29, 1 }
 0x6eb   : > { %v1290_v32 = vsel %vm599_vm2, %v1288_v11, %v1289_v30  ;;  %vm1622_vm2 = vcmask 908288  }
 0x6ec   : > { %v1281_v33 = vsel %vm589_vm3, %v1279_v29, %v1280_v31  ;;  %1292 = vst.msk [vmem:[#allocation3 + $0x1] ss:$8 sm:$0x3] %vm3663_vm1, %v1290_v32  ;;  %v1309_v34 = vpop.permute.xlu0 %1308  ;;  %v3199_v31 = vld [vmem:[%s4392_s2 + $0x2] ss:$8 sm:$0x3] }
 0x6ed   : > { %1283 = vst.msk [vmem:[#allocation3] ss:$8 sm:$0x3] %vm3663_vm1, %v1281_v33  ;;  %v1297_v35 = vpop.permute.xlu1 %1296  ;;  %v1310_v36 = vrot.slane %v1309_v34, 1  ;;  %v1617_v32 = vrot.slane %v3199_v31, %v3629_v15  ;;  %v1613_v33 = vrot.slane %v3199_v31, %v3626_v14  ;;  %vm1681_vm3 = vcmask 924672  }
 0x6ee   : > { %v1298_v37 = vrot.slane %v1297_v35, 1 }
 0x6ef   : > { %v1311_v38 = vsel %vm625_vm4, %v1309_v34, %v1310_v36 }
 0x6f0   : > { %v1299_v40 = vsel %vm342_vm0, %v1297_v35, %v1298_v37  ;;  %1313 = vst.msk [vmem:[#allocation3 + $0x4] ss:$8 sm:$0x3] %vm3663_vm1, %v1311_v38  ;;  %v1327_v41 = vpop.permute.xlu0 %1326 }
 0x6f1   : > { %1301 = vst.msk [vmem:[#allocation3 + $0x2] ss:$8 sm:$0x3] %vm3663_vm1, %v1299_v40  ;;  %v1318_v42 = vpop.permute.xlu1 %1317  ;;  %v1328_v43 = vrot.slane %v1327_v41, 1 }
 0x6f2   : > { %v1319_v44 = vrot.slane %v1318_v42, 1 }
 0x6f3   : > { %v1329_v45 = vsel %vm647_vm5, %v1327_v41, %v1328_v43 }
 0x6f4   : > { %v1320_v46 = vsel %vm636_vm6, %v1318_v42, %v1319_v44  ;;  %1331 = vst.msk [vmem:[#allocation3 + $0x6] ss:$8 sm:$0x3] %vm3663_vm1, %v1329_v45  ;;  %v1384_v47 = vpop.permute.xlu0 %1383 }
 0x6f5   : > { %1322 = vst.msk [vmem:[#allocation3 + $0x5] ss:$8 sm:$0x3] %vm3663_vm1, %v1320_v46  ;;  %v1375_v48 = vpop.permute.xlu1 %1374  ;;  %v1385_v51 = vrot.slane %v1384_v47, 1 }
 0x6f6   : > { %v1376_v52 = vrot.slane %v1375_v48, 1 }
 0x6f7   : > { %v1386_v53 = vsel %vm647_vm5, %v1384_v47, %v1385_v51  ;;  %vm1698_vm5 = vcmask 121856  }
 0x6f8   : > { %v1377_v54 = vsel %vm636_vm6, %v1375_v48, %v1376_v52  ;;  %1388 = vst.msk [vmem:[#allocation3 + $0x15] ss:$8 sm:$0x3] %vm3663_vm1, %v1386_v53  ;;  %v1500_v62 = vpop.permute.xlu0 %1499  ;;  %vm1639_vm6 = vcmask 138240  }
 0x6f9   : > { %1379 = vst.msk [vmem:[#allocation3 + $0x14] ss:$8 sm:$0x3] %vm3663_vm1, %v1377_v54  ;;  %v1484_v60 = vpop.permute.xlu1 %1483  ;;  %v1501_v63 = vrot.slane %v1500_v62, 7  ;;  %vm4403_vm1 = vcmask 998400  }
 0x6fa   : > { %v1485_v1 = vrot.slane %v1484_v60, 7 }
 0x6fb   : > { %v1502_v2 = vsel %vm826_vm7, %v1501_v63, %v1500_v62 }
 0x6fc   : > { %v1391_v55 = vld [vmem:[#allocation3 + $0x8] sm:$0xff]  ;;  %v1390_v57 = vld [vmem:[#allocation3] sm:$0xff]  ;;  %v1486_v5 = vsel %vm818_vm8, %v1485_v1, %v1484_v60  ;;  %v1542_v7 = vpop.permute.xlu0 %1541 }
 0x6fd   : > { %v1526_v49 = vpop.permute.xlu1 %1525 }
 0x6fe   : > { %v1527_v3 = vrot.slane %v1526_v49, 7 }
 0x700   : > { %v1393_v56 = vld [vmem:[#allocation3 + $0x18] sm:$0xff]  ;;  %v1392_v58 = vld [vmem:[#allocation3 + $0x10] sm:$0xff]  ;;  %v1528_v18 = vsel %vm868_vm9, %v1527_v3, %v1526_v49  ;;  %v1474_v34 = vpop.permute.xlu0 %1473 }
 0x701   : > { %v3248_v50 = vpack.c.bf16 %v1393_v56, %v1391_v55  ;;  %v3250_v16 = vpack.c.bf16 %v1392_v58, %v1390_v57  ;;  %v1558_v4 = vpop.permute.xlu1 %1557  ;;  %v1475_v35 = vrot.slane %v1474_v34, 7  ;;  %v3200_v3 = vld [vmem:[%s4392_s2 + $0x4] ss:$8 sm:$0x3] }
 0x702   : > { %v1559_v17 = vrot.slane %v1558_v4, 7 }
 0x703   : > { %3249 = vmatprep.subr.bf16.mxu0 %v3248_v50  ;;  %v1476_v37 = vsel %vm805_vm12, %v1475_v35, %v1474_v34 }
 0x704   : > { %3251 = vmatpush1.bf16.msra.mxu0 %v3250_v16  ;;  %v1560_v27 = vsel %vm908_vm10, %v1559_v17, %v1558_v4 }
 0x707   : > { %3191 = vmatmul.mubr.msk.f32.vlgmr.msra.gmra.mrb[8].mxu0 %vm342_vm0, %v1211_v59 }
 0x708   : > { %2339 = vmatprep.mubr.f32.mxu0 %v3511_v0  ;;  %v1543_v0 = vrot.slane %v1542_v7, 7 }
 0x70a   : > { %v1544_v26 = vsel %vm888_vm11, %v1543_v0, %v1542_v7  ;;  %v3201_v7 = vld [vmem:[%s4392_s2 + $0x2] ss:$8 sm:$0x3]  ;;  %v1676_v0 = vrot.slane %v3200_v3, %v3629_v15 }
 0x7da   : > { %v1463_v61 = vpop.f32.mrb[8].mxu0 }
 0x7db   : > { %1468 = vst [vmem:[#allocation4 + $0x8] sm:$0xff] %v1463_v61  ;;  %v1465_v23 = vpop.f32.mrb[9].mxu0 }
 0x7dc   : > { %1469 = vst [vmem:[#allocation4 + $0x10] sm:$0xff] %v1465_v23 }
 0x7e3   : > { %v1480_v6 = vld [vmem:[#allocation4 + $0x1] ss:$8 sm:$0x7]  ;;  %v1496_v8 = vld [vmem:[#allocation4 + $0x2] ss:$8 sm:$0x7] }
 0x7e4   : > { %v1488_v9 = vmul.f32 %v1486_v5, %v1480_v6  ;;  %v1504_v10 = vmul.f32 %v1502_v2, %v1496_v8  ;;  %v1512_v20 = vld [vmem:[#allocation4 + $0xb] ss:$8 sm:$0x3]  ;;  %v1522_v22 = vld [vmem:[#allocation4 + $0xc] ss:$8 sm:$0x7]  ;;  %v1672_v6 = vrot.slane %v3200_v3, %v3626_v14 }
 0x7e5   : > { %v1514_v24 = vmul.f32 %v3194_v13, %v1512_v20  ;;  %v1530_v25 = vmul.f32 %v1528_v18, %v1522_v22  ;;  %v1538_v28 = vld [vmem:[#allocation4 + $0xd] ss:$8 sm:$0x7]  ;;  %v1554_v11 = vld [vmem:[#allocation4 + $0xe] ss:$8 sm:$0x7] }
 0x7e6   : > { %1490 = vrot.lane.b32.xlu1 %v1488_v9, %s3519_s15  ;;  %1506 = vrot.lane.b32.xlu0 %v1504_v10, %s3520_s18  ;;  %v1546_v29 = vmul.f32 %v1544_v26, %v1538_v28  ;;  %v1562_v30 = vmul.f32 %v1560_v27, %v1554_v11  ;;  %v1470_v36 = vld [vmem:[#allocation4] ss:$8 sm:$0x7]  ;;  %v1713_v9 = vrot.slane %v3201_v7, %v3626_v14  ;;  %v3202_v10 = vld [vmem:[%s4392_s2 + $0x4] ss:$8 sm:$0x3] }
 0x7e7   : > { %v1478_v43 = vmul.f32 %v1476_v37, %v1470_v36  ;;  %v1756_v12 = vrot.slane %v3202_v10, %v3626_v14  ;;  %v3203_v13 = vld [vmem:[%s4392_s2 + $0x2] ss:$8 sm:$0x3]  ;;  %v1760_v18 = vrot.slane %v3202_v10, %v3629_v15  ;;  %v3204_v20 = vld [vmem:[%s4392_s2 + $0x4] ss:$8 sm:$0x3] }
 0x7e8   : > { %v1795_v17 = vrot.slane %v3203_v13, %v3626_v14  ;;  %v1852_v22 = vrot.slane %v3204_v20, %v3626_v14  ;;  %v1856_v26 = vrot.slane %v3204_v20, %v3629_v15  ;;  %v3978_v28 = vld [vmem:[#allocation4] sm:$0xff] }
 0x7ea   : > { %1516 = vrot.lane.b32.xlu1 %v1514_v24, %s3523_s16  ;;  %1532 = vrot.lane.b32.xlu0 %v1530_v25, %s3525_s25  ;;  %v1799_v24 = vrot.slane %v3203_v13, %v3629_v15 }
 0x7ee   : > { %1548 = vrot.lane.b32.xlu1 %v1546_v29, %s3527_s13  ;;  %1564 = vrot.lane.b32.xlu0 %v1562_v30, %s3526_s26 }
 0x7f2   : > { %1620 = vrot.lane.b32.xlu1 %v1617_v32, %s3528_s11  ;;  %1618 = vrot.lane.b32.xlu0 %v1613_v33, %s3528_s11 }
 0x858   : > { %v1491_v38 = vpop.permute.xlu1 %1490  ;;  %v1507_v40 = vpop.permute.xlu0 %1506 }
 0x859   : > { %v1492_v41 = vrot.slane %v1491_v38, 1  ;;  %v1508_v42 = vrot.slane %v1507_v40, 1 }
 0x85b   : > { %v1493_v44 = vsel %vm826_vm7, %v1491_v38, %v1492_v41  ;;  %v1509_v48 = vsel %vm818_vm8, %v1507_v40, %v1508_v42  ;;  %vm1901_vm8 = vcmask 588800  }
 0x85c   : > { %v1495_v45 = vadd.f32 %v1493_v44, %v1478_v43  ;;  %v1517_v46 = vpop.permute.xlu1 %1516  ;;  %v1533_v47 = vpop.permute.xlu0 %1532 }
 0x85d   : > { %v1518_v51 = vrot.slane %v1517_v46, 7  ;;  %v1534_v52 = vrot.slane %v1533_v47, 7 }
 0x85e   : > { %v1511_v53 = vadd.f32 %v1509_v48, %v1495_v45 }
 0x85f   : > { %v1519_v54 = vsel %vm805_vm12, %v1518_v51, %v1517_v46  ;;  %v1535_v58 = vsel %vm876_vm13, %v1534_v52, %v1533_v47 }
 0x860   : > { %v1521_v55 = vadd.f32 %v1519_v54, %v1511_v53  ;;  %v1549_v56 = vpop.permute.xlu1 %1548  ;;  %v1565_v57 = vpop.permute.xlu0 %1564 }
 0x861   : > { %v1550_v50 = vrot.slane %v1549_v56, 7  ;;  %v1566_v16 = vrot.slane %v1565_v57, 7 }
 0x862   : > { %v1537_v59 = vadd.f32 %v1535_v58, %v1521_v55 }
 0x863   : > { %v1551_v60 = vsel %vm896_vm14, %v1550_v50, %v1549_v56  ;;  %v1567_v23 = vsel %vm4403_vm1, %v1566_v16, %v1565_v57 }
 0x864   : > { %v1553_v61 = vadd.f32 %v1551_v60, %v1537_v59  ;;  %v1619_v25 = vpop.permute.xlu0 %1618  ;;  %v1621_v11 = vpop.permute.xlu1 %1620 }
 0x865   : > { %v1627_v27 = vmul.f32 0.0, %v1619_v25  ;;  %v1623_v38 = vsel %vm1622_vm2, %v1619_v25, %v1621_v11 }
 0x866   : > { %v1569_v49 = vadd.f32 %v1567_v23, %v1553_v61 }
 0x868   : > { %v3198_v62 = vmul.f32 -1.442695, %v1569_v49 }
 0x86a   : > { %3497 = vpow2.f32 %v3198_v62 }
 0x874   : > { %v3498_v63 = vpop.eup %3497 }
 0x875   : > { %v1573_v1 = vadd.f32 1.0, %v3498_v63 }
 0x877   : > { %3499 = vrcp.f32 %v1573_v1 }
 0x881   : > { %v3500_v2 = vpop.eup %3499 }
 0x882   : > { %v1584_v4 = vrot.slane %v3500_v2, %v3629_v15  ;;  %v1580_v5 = vrot.slane %v3500_v2, %v3626_v14  ;;  %v1588_v8 = vrot.slane %v3500_v2, %v937_v39  ;;  %v1717_v39 = vrot.slane %v3201_v7, %v3629_v15 }
 0x884   : > { %1591 = vrot.lane.b32.xlu0 %v1584_v4, %s3524_s17  ;;  %1589 = vrot.lane.b32.xlu1 %v1580_v5, %s3524_s17 }
 0x888   : > { %1677 = vrot.lane.b32.xlu0 %v1672_v6, %s3529_s12  ;;  %1593 = vrot.lane.b32.xlu1 %v1588_v8, %s3524_s17  ;;  %v3206_v8 = vld [vmem:[%s4392_s2 + $0x2] ss:$8 sm:$0x3] }
 0x88c   : > { %1718 = vrot.lane.b32.xlu0 %v1713_v9, %s3519_s15  ;;  %1679 = vrot.lane.b32.xlu1 %v1676_v0, %s3529_s12  ;;  %v1988_v0 = vrot.slane %v3206_v8, %v3626_v14 }
 0x890   : > { %1761 = vrot.lane.b32.xlu0 %v1756_v12, %s3522_s24  ;;  %1720 = vrot.lane.b32.xlu1 %v1717_v39, %s3519_s15  ;;  %v3207_v12 = vld [vmem:[%s4392_s2 + $0x4] ss:$8 sm:$0x3]  ;;  %v1992_v39 = vrot.slane %v3206_v8, %v3629_v15 }
 0x891   : > { %v2045_v13 = vrot.slane %v3207_v12, %v3626_v14 }
 0x894   : > { %1800 = vrot.lane.b32.xlu0 %v1795_v17, %s3530_s21  ;;  %1763 = vrot.lane.b32.xlu1 %v1760_v18, %s3522_s24  ;;  %v3208_v17 = vld [vmem:[%s4392_s2 + $0x2] ss:$8 sm:$0x3]  ;;  %v2049_v18 = vrot.slane %v3207_v12, %v3629_v15 }
 0x895   : > { %v2084_v20 = vrot.slane %v3208_v17, %v3626_v14 }
 0x898   : > { %1857 = vrot.lane.b32.xlu0 %v1852_v22, %s3531_s22  ;;  %1802 = vrot.lane.b32.xlu1 %v1799_v24, %s3530_s21  ;;  %v3209_v22 = vld [vmem:[%s4392_s2 + $0x4] ss:$8 sm:$0x3]  ;;  %v2088_v24 = vrot.slane %v3208_v17, %v3629_v15 }
 0x899   : > { %v2127_v25 = vrot.slane %v3209_v22, %v3626_v14 }
 0x89c   : > { %1859 = vrot.lane.b32.xlu1 %v1856_v26, %s3531_s22  ;;  %1633 = vrot.lane.b32.xlu0 %v1627_v27, %s3531_s22  ;;  %v3210_v26 = vld [vmem:[%s4392_s2 + $0x2] ss:$8 sm:$0x3]  ;;  %v2131_v27 = vrot.slane %v3209_v22, %v3629_v15 }
 0x8a0   : > { %1652 = vrot.lane.b32.xlu1 %v3978_v28, %s3516_s10 }
 0x8f6   : > { %v1592_v29 = vpop.permute.xlu0 %1591  ;;  %v1590_v30 = vpop.permute.xlu1 %1589 }
 0x8f7   : > { %v1595_v31 = vsel %vm908_vm10, %v1590_v30, %v1592_v29  ;;  %v2170_v30 = vrot.slane %v3210_v26, %v3629_v15 }
 0x8f8   : > { %v3984_v32 = vmul.f32 %v1595_v31, %v3808_v19 }
 0x8fa   : > { %v1678_v33 = vpop.permute.xlu0 %1677  ;;  %v1594_v34 = vpop.permute.xlu1 %1593  ;;  %v1628_v42 = vmul.f32 %v1623_v38, %v3984_v32 }
 0x8fb   : > { %v1686_v35 = vmul.f32 0.0, %v1678_v33  ;;  %v1596_v36 = vsel %vm908_vm10, %v1592_v29, %v1594_v34  ;;  %v3211_v29 = vld [vmem:[%s4392_s2 + $0x4] ss:$8 sm:$0x3] }
 0x8fc   : > { %v3988_v37 = vmul.f32 %v1596_v36, %v3810_v21  ;;  %v2223_v31 = vrot.slane %v3211_v29, %v3626_v14 }
 0x8fd   : > { %1692 = vrot.lane.b32.xlu0 %v1686_v35, %s3530_s21 }
 0x8fe   : > { %v1719_v40 = vpop.permute.xlu0 %1718  ;;  %v1680_v41 = vpop.permute.xlu1 %1679  ;;  %v1629_v19 = vmul.f32 %v1621_v11, %v3988_v37  ;;  %v3345_v52 = vpack.i.bf16 %v3988_v37, %v3984_v32  ;;  %v3365_v62 = vpack.i.bf16 %v3978_v28, %v3988_v37  ;;  %v2166_v11 = vrot.slane %v3210_v26, %v3626_v14 }
 0x8ff   : > { %v1726_v43 = vmul.f32 0.0, %v1719_v40  ;;  %v1682_v44 = vsel %vm1681_vm3, %v1678_v33, %v1680_v41  ;;  %v1688_v46 = vmul.f32 %v1680_v41, %v3988_v37  ;;  %v2227_v33 = vrot.slane %v3211_v29, %v3629_v15 }
 0x900   : > { %v1687_v45 = vmul.f32 %v1682_v44, %v3984_v32  ;;  %v3350_v21 = vpack.i.bf16 %v1629_v19, %v1628_v42 }
 0x901   : > { %1732 = vrot.lane.b32.xlu1 %v1726_v43, %s3522_s24 }
 0x902   : > { %3351 = vrot.lane.b32.xlu0 %v3350_v21, %s3531_s22  ;;  %v1721_v47 = vpop.permute.xlu1 %1720  ;;  %v1762_v53 = vpop.permute.xlu0 %1761  ;;  %v3355_v55 = vpack.i.bf16 %v1688_v46, %v1687_v45 }
 0x903   : > { %v1722_v48 = vsel %vm826_vm7, %v1719_v40, %v1721_v47  ;;  %v1728_v51 = vmul.f32 %v1721_v47, %v3988_v37  ;;  %v1769_v2 = vmul.f32 %v1762_v53, %v3984_v32 }
 0x904   : > { %v1727_v54 = vmul.f32 %v1722_v48, %v3984_v32 }
 0x905   : > { %3346 = vrot.lane.b32.xlu1 %v3345_v52, %s3516_s10 }
 0x906   : > { %3356 = vrot.lane.b32.xlu0 %v3355_v55, %s3530_s21  ;;  %v1764_v56 = vpop.permute.xlu1 %1763  ;;  %v3360_v57 = vpack.i.bf16 %v1728_v51, %v1727_v54  ;;  %v1801_v59 = vpop.permute.xlu0 %1800 }
 0x907   : > { %v1765_v58 = vsel %vm868_vm9, %v1762_v53, %v1764_v56  ;;  %v1771_v50 = vmul.f32 0.0, %v1764_v56  ;;  %v1808_v4 = vmul.f32 %v1801_v59, %v3984_v32 }
 0x908   : > { %v1770_v16 = vmul.f32 %v1765_v58, %v3988_v37 }
 0x909   : > { %3361 = vrot.lane.b32.xlu1 %v3360_v57, %s3522_s24 }
 0x90a   : > { %v1803_v60 = vpop.permute.xlu1 %1802  ;;  %v3370_v61 = vpack.i.bf16 %v1771_v50, %v1770_v16  ;;  %v1858_v5 = vpop.permute.xlu0 %1857 }
 0x90b   : > { %v1804_v23 = vsel %vm1698_vm5, %v1801_v59, %v1803_v60  ;;  %v1810_v49 = vmul.f32 0.0, %v1803_v60  ;;  %v1865_v10 = vmul.f32 %v1858_v5, %v3984_v32 }
 0x90c   : > { %v1809_v63 = vmul.f32 %v1804_v23, %v3988_v37  ;;  %3371 = vrot.lane.b32.xlu0 %v3370_v61, %s3519_s15 }
 0x90d   : > { %3366 = vrot.lane.b32.xlu1 %v3365_v62, %s3515_s9 }
 0x90e   : > { %v3375_v1 = vpack.i.bf16 %v1810_v49, %v1809_v63  ;;  %v1860_v3 = vpop.permute.xlu1 %1859  ;;  %v1634_v34 = vpop.permute.xlu0 %1633 }
 0x90f   : > { %v1861_v6 = vsel %vm1639_vm6, %v1858_v5, %v1860_v3  ;;  %v1867_v9 = vmul.f32 0.0, %v1860_v3 }
 0x910   : > { %3376 = vrot.lane.b32.xlu0 %v3375_v1, %s3529_s12  ;;  %v1866_v7 = vmul.f32 %v1861_v6, %v3988_v37 }
 0x911   : > { %1775 = vrot.lane.b32.xlu1 %v1769_v2, %s3519_s15 }
 0x912   : > { %v1653_v35 = vpop.permute.xlu1 %1652 }
 0x914   : > { %1814 = vrot.lane.b32.xlu0 %v1808_v4, %s3529_s12 }
 0x915   : > { %1832 = vrot.lane.b32.xlu1 %v3984_v32, %s3515_s9 }
 0x918   : > { %1873 = vrot.lane.b32.xlu0 %v1866_v7, %s3528_s11 }
 0x919   : > { %1875 = vrot.lane.b32.xlu1 %v1867_v9, %s3528_s11 }
 0x91c   : > { %1871 = vrot.lane.b32.xlu0 %v1865_v10, %s3528_s11 }
 0x91d   : > { %1993 = vrot.lane.b32.xlu1 %v1988_v0, %s3528_s11 }
 0x920   : > { %1995 = vrot.lane.b32.xlu0 %v1992_v39, %s3528_s11 }
 0x921   : > { %2050 = vrot.lane.b32.xlu1 %v2045_v13, %s3529_s12 }
 0x924   : > { %2052 = vrot.lane.b32.xlu0 %v2049_v18, %s3529_s12 }
 0x925   : > { %2089 = vrot.lane.b32.xlu1 %v2084_v20, %s3519_s15 }
 0x928   : > { %2091 = vrot.lane.b32.xlu0 %v2088_v24, %s3519_s15 }
 0x929   : > { %2132 = vrot.lane.b32.xlu1 %v2127_v25, %s3522_s24 }
 0x92c   : > { %2134 = vrot.lane.b32.xlu0 %v2131_v27, %s3522_s24 }
 0x92d   : > { %2171 = vrot.lane.b32.xlu1 %v2166_v11, %s3530_s21  ;;  %v1601_v11 = vld [vmem:[%s4397_s7] sm:$0xff] }
 0x930   : > { %2173 = vrot.lane.b32.xlu0 %v2170_v30, %s3530_s21 }
 0x931   : > { %2228 = vrot.lane.b32.xlu1 %v2223_v31, %s3531_s22 }
 0x934   : > { %2230 = vrot.lane.b32.xlu0 %v2227_v33, %s3531_s22 }
 0x938   : > { %2025 = vrot.lane.b32.xlu0 %v3978_v28, %s3516_s10 }
 0x96f   : > { %v1693_v36 = vpop.permute.xlu0 %1692 }
 0x973   : > { %v1733_v38 = vpop.permute.xlu1 %1732 }
 0x974   : > { %v3352_v40 = vpop.permute.xlu0 %3351 }
 0x975   : > { %v3354_v41 = vunpack.i.h.bf16 %v3352_v40  ;;  %v3353_v42 = vunpack.i.l.bf16 %v3352_v40 }
 0x977   : > { %v3347_v19 = vpop.permute.xlu1 %3346  ;;  %v1640_v46 = vsel %vm1639_vm6, %v1634_v34, %v3353_v42  ;;  %v1641_v21 = vsel %vm1639_vm6, %v3353_v42, %v3354_v41 }
 0x978   : > { %v3349_v43 = vunpack.i.h.bf16 %v3347_v19  ;;  %v3348_v44 = vunpack.i.l.bf16 %v3347_v19  ;;  %v3357_v45 = vpop.permute.xlu0 %3356 }
 0x979   : > { %v3359_v48 = vunpack.i.h.bf16 %v3357_v45  ;;  %v3358_v51 = vunpack.i.l.bf16 %v3357_v45 }
 0x97a   : > { %v1658_v47 = vsel %vm342_vm0, %v1653_v35, %v3348_v44  ;;  %v1659_v52 = vsel %vm342_vm0, %v3348_v44, %v3349_v43 }
 0x97b   : > { %v3362_v53 = vpop.permute.xlu1 %3361  ;;  %v3252_v54 = vpack.c.bf16 %v1659_v52, %v1641_v21  ;;  %v3254_v55 = vpack.c.bf16 %v1658_v47, %v1640_v46  ;;  %v1699_v58 = vsel %vm1698_vm5, %v1693_v36, %v3358_v51  ;;  %v1700_v59 = vsel %vm1698_vm5, %v3358_v51, %v3359_v48 }
 0x97c   : > { %v3364_v56 = vunpack.i.h.bf16 %v3362_v53  ;;  %v3363_v57 = vunpack.i.l.bf16 %v3362_v53 }
 0x97d   : > { %3253 = vmatprep.subr.bf16.mxu1 %v3252_v54 }
 0x97e   : > { %v1738_v50 = vsel %vm868_vm9, %v1733_v38, %v3363_v57  ;;  %v3372_v16 = vpop.permute.xlu0 %3371  ;;  %3255 = vmatpush1.bf16.msra.mxu1 %v3254_v55  ;;  %v1739_v60 = vsel %vm868_vm9, %v3363_v57, %v3364_v56 }
 0x97f   : > { %v3258_v61 = vpack.c.bf16 %v1738_v50, %v1699_v58  ;;  %v3374_v23 = vunpack.i.h.bf16 %v3372_v16  ;;  %v3373_v49 = vunpack.i.l.bf16 %v3372_v16  ;;  %v3367_v62 = vpop.permute.xlu1 %3366  ;;  %v3256_v63 = vpack.c.bf16 %v1739_v60, %v1700_v59 }
 0x980   : > { %v3369_v1 = vunpack.i.h.bf16 %v3367_v62  ;;  %v3368_v2 = vunpack.i.l.bf16 %v3367_v62 }
 0x981   : > { %3257 = vmatprep.subr.bf16.mxu1 %v3256_v63  ;;  %v1782_v3 = vsel %vm826_vm7, %v3373_v49, %v3374_v23 }
 0x982   : > { %v3377_v4 = vpop.permute.xlu0 %3376  ;;  %3259 = vmatpush1.bf16.msra.mxu1 %v3258_v61  ;;  %v3260_v5 = vpack.c.bf16 %v1782_v3, %v3988_v37  ;;  %v1839_v12 = vsel %vm625_vm4, %v3368_v2, %v3369_v1 }
 0x983   : > { %v3379_v6 = vunpack.i.h.bf16 %v3377_v4  ;;  %v3378_v7 = vunpack.i.l.bf16 %v3377_v4  ;;  %v1776_v8 = vpop.permute.xlu1 %1775 }
 0x984   : > { %v1781_v9 = vsel %vm826_vm7, %v1776_v8, %v3373_v49  ;;  %3261 = vmatprep.subr.bf16.mxu1 %v3260_v5 }
 0x985   : > { %v3262_v0 = vpack.c.bf16 %v1781_v9, %v3984_v32  ;;  %v1821_v10 = vsel %vm1681_vm3, %v3378_v7, %v3379_v6 }
 0x986   : > { %v1815_v39 = vpop.permute.xlu0 %1814  ;;  %v3264_v13 = vpack.c.bf16 %v1839_v12, %v1821_v10  ;;  %v3213_v10 = vld [vmem:[%s4392_s2 + $0x2] ss:$8 sm:$0x3] }
 0x987   : > { %v1820_v17 = vsel %vm1681_vm3, %v1815_v39, %v3378_v7  ;;  %v1833_v18 = vpop.permute.xlu1 %1832  ;;  %3263 = vmatpush1.bf16.msra.mxu1 %v3262_v0  ;;  %v2360_v39 = vrot.slane %v3213_v10, %v3626_v14 }
 0x988   : > { %v1838_v20 = vsel %vm625_vm4, %v1833_v18, %v3368_v2  ;;  %3265 = vmatprep.subr.bf16.mxu1 %v3264_v13  ;;  %v3214_v13 = vld [vmem:[%s4392_s2 + $0x4] ss:$8 sm:$0x3] }
 0x989   : > { %v3266_v22 = vpack.c.bf16 %v1838_v20, %v1820_v17  ;;  %v2417_v18 = vrot.slane %v3214_v13, %v3626_v14  ;;  %v3215_v20 = vld [vmem:[%s4392_s2 + $0x2] ss:$8 sm:$0x3] }
 0x98a   : > { %v1874_v24 = vpop.permute.xlu0 %1873 }
 0x98b   : > { %v1876_v25 = vpop.permute.xlu1 %1875  ;;  %3267 = vmatpush1.bf16.msra.mxu1 %v3266_v22  ;;  %v2364_v22 = vrot.slane %v3213_v10, %v3629_v15 }
 0x98c   : > { %v1878_v26 = vsel %vm1622_vm2, %v1874_v24, %v1876_v25  ;;  %v3216_v25 = vld [vmem:[%s4392_s2 + $0x4] ss:$8 sm:$0x3] }
 0x98d   : > { %1921 = vmatprep.subr.mxu1 %v1878_v26  ;;  %v2421_v26 = vrot.slane %v3214_v13, %v3629_v15 }
 0x98e   : > { %v1872_v27 = vpop.permute.xlu0 %1871 }
 0x98f   : > { %v1877_v29 = vsel %vm1622_vm2, %v1872_v27, %v1874_v24  ;;  %v1994_v30 = vpop.permute.xlu1 %1993  ;;  %v2456_v24 = vrot.slane %v3215_v20, %v3626_v14  ;;  %v2499_v27 = vrot.slane %v3216_v25, %v3626_v14 }
 0x990   : > { %1922 = vmatpush1.msra.mxu1 %v1877_v29  ;;  %v2001_v31 = vmul.f32 0.0, %v1994_v30  ;;  %v2460_v29 = vrot.slane %v3215_v20, %v3629_v15 }
 0x991   : > { %3205 = vmatmul.mubr.msk.f32.vlgmr.msra.gmra.mrb[8].mxu1 %vm1901_vm8, %v1601_v11  ;;  %v3217_v11 = vld [vmem:[%s4392_s2 + $0x2] ss:$8 sm:$0x3] }
 0x992   : > { %2007 = vrot.lane.b32.xlu1 %v2001_v31, %s3531_s22  ;;  %2711 = vmatprep.mubr.f32.mxu1 %v3978_v28  ;;  %v1996_v38 = vpop.permute.xlu0 %1995  ;;  %v3218_v31 = vld [vmem:[%s4392_s2 + $0x4] ss:$8 sm:$0x3] }
 0x993   : > { %v2051_v33 = vpop.permute.xlu1 %2050  ;;  %v1997_v45 = vsel %vm1622_vm2, %v1994_v30, %v1996_v38  ;;  %v2538_v30 = vrot.slane %v3217_v11, %v3626_v14 }
 0x994   : > { %v2058_v34 = vmul.f32 0.0, %v2051_v33 }
 0x996   : > { %2064 = vrot.lane.b32.xlu1 %v2058_v34, %s3530_s21  ;;  %v2053_v40 = vpop.permute.xlu0 %2052  ;;  %v2595_v34 = vrot.slane %v3218_v31, %v3626_v14 }
 0x997   : > { %v2090_v35 = vpop.permute.xlu1 %2089  ;;  %v2054_v21 = vsel %vm1681_vm3, %v2051_v33, %v2053_v40  ;;  %v2503_v33 = vrot.slane %v3216_v25, %v3629_v15 }
 0x998   : > { %v2097_v36 = vmul.f32 0.0, %v2090_v35 }
 0x99a   : > { %2103 = vrot.lane.b32.xlu0 %v2097_v36, %s3522_s24  ;;  %v2092_v42 = vpop.permute.xlu0 %2091  ;;  %v2599_v36 = vrot.slane %v3218_v31, %v3629_v15 }
 0x99b   : > { %v2093_v44 = vsel %vm826_vm7, %v2090_v35, %v2092_v42  ;;  %v2133_v57 = vpop.permute.xlu1 %2132  ;;  %v2542_v35 = vrot.slane %v3217_v11, %v3629_v15 }
 0x99e   : > { %v2135_v50 = vpop.permute.xlu0 %2134 }
 0x99f   : > { %v2136_v59 = vsel %vm868_vm9, %v2133_v57, %v2135_v50  ;;  %v2172_v61 = vpop.permute.xlu1 %2171  ;;  %v2142_v23 = vmul.f32 0.0, %v2135_v50 }
 0x9a2   : > { %v2174_v62 = vpop.permute.xlu0 %2173 }
 0x9a3   : > { %v2175_v1 = vsel %vm1698_vm5, %v2172_v61, %v2174_v62  ;;  %v2181_v4 = vmul.f32 0.0, %v2174_v62  ;;  %v2229_v7 = vpop.permute.xlu1 %2228 }
 0x9a6   : > { %v2231_v6 = vpop.permute.xlu0 %2230 }
 0x9a7   : > { %v2238_v9 = vmul.f32 0.0, %v2231_v6  ;;  %v2232_v0 = vsel %vm1639_vm6, %v2229_v7, %v2231_v6 }
 0xa64   : > { %v1971_v41 = vpop.f32.mrb[8].mxu1 }
 0xa65   : > { %v4098_v19 = vmax.f32 %v1971_v41, 0.0  ;;  %v1973_v43 = vpop.f32.mrb[9].mxu1 }
 0xa66   : > { %v4102_v46 = vmax.f32 %v1973_v43, 0.0 }
 0xa67   : > { %v2002_v47 = vmul.f32 %v1997_v45, %v4098_v19  ;;  %v2098_v48 = vmul.f32 %v2093_v44, %v4098_v19  ;;  %v2059_v55 = vmul.f32 %v2054_v21, %v4098_v19  ;;  %v2140_v60 = vmul.f32 %v2133_v57, %v4098_v19 }
 0xa68   : > { %v2099_v51 = vmul.f32 %v2092_v42, %v4102_v46  ;;  %v3380_v52 = vpack.i.bf16 %v4102_v46, %v4098_v19  ;;  %v2003_v53 = vmul.f32 %v1996_v38, %v4102_v46  ;;  %v2060_v56 = vmul.f32 %v2053_v40, %v4102_v46  ;;  %v2026_v38 = vpop.permute.xlu0 %2025  ;;  %v2008_v40 = vpop.permute.xlu1 %2007 }
 0xa69   : > { %v2141_v49 = vmul.f32 %v2136_v59, %v4102_v46  ;;  %v2179_v63 = vmul.f32 %v2172_v61, %v4098_v19  ;;  %v3400_v2 = vpack.i.bf16 %v3978_v28, %v4102_v46  ;;  %v2180_v5 = vmul.f32 %v2175_v1, %v4102_v46 }
 0xa6a   : > { %3381 = vrot.lane.b32.xlu0 %v3380_v52, %s3516_s10  ;;  %v3385_v54 = vpack.i.bf16 %v2003_v53, %v2002_v47  ;;  %v3395_v58 = vpack.i.bf16 %v2099_v51, %v2098_v48  ;;  %v3390_v16 = vpack.i.bf16 %v2060_v56, %v2059_v55  ;;  %v2237_v12 = vmul.f32 %v2232_v0, %v4102_v46 }
 0xa6b   : > { %v3405_v3 = vpack.i.bf16 %v2142_v23, %v2141_v49  ;;  %v3410_v8 = vpack.i.bf16 %v2181_v4, %v2180_v5  ;;  %v2236_v17 = vmul.f32 %v2229_v7, %v4098_v19 }
 0xa6c   : > { %3386 = vrot.lane.b32.xlu1 %v3385_v54, %s3531_s22  ;;  %v2104_v41 = vpop.permute.xlu0 %2103  ;;  %v2065_v42 = vpop.permute.xlu1 %2064 }
 0xa6e   : > { %3396 = vrot.lane.b32.xlu0 %v3395_v58, %s3522_s24 }
 0xa70   : > { %3391 = vrot.lane.b32.xlu1 %v3390_v16, %s3530_s21 }
 0xa72   : > { %2146 = vrot.lane.b32.xlu0 %v2140_v60, %s3519_s15 }
 0xa74   : > { %2185 = vrot.lane.b32.xlu1 %v2179_v63, %s3529_s12 }
 0xa76   : > { %3401 = vrot.lane.b32.xlu0 %v3400_v2, %s3515_s9 }
 0xa78   : > { %3406 = vrot.lane.b32.xlu1 %v3405_v3, %s3519_s15 }
 0xa7a   : > { %2203 = vrot.lane.b32.xlu0 %v4098_v19, %s3515_s9 }
 0xa7c   : > { %3411 = vrot.lane.b32.xlu1 %v3410_v8, %s3529_s12 }
 0xa7e   : > { %2246 = vrot.lane.b32.xlu0 %v2238_v9, %s3528_s11 }
 0xa80   : > { %2244 = vrot.lane.b32.xlu1 %v2237_v12, %s3528_s11 }
 0xa82   : > { %2365 = vrot.lane.b32.xlu0 %v2360_v39, %s3528_s11 }
 0xa84   : > { %2242 = vrot.lane.b32.xlu1 %v2236_v17, %s3528_s11 }
 0xa86   : > { %2422 = vrot.lane.b32.xlu0 %v2417_v18, %s3529_s12 }
 0xa88   : > { %2367 = vrot.lane.b32.xlu1 %v2364_v22, %s3528_s11 }
 0xa8a   : > { %2461 = vrot.lane.b32.xlu0 %v2456_v24, %s3519_s15 }
 0xa8c   : > { %2424 = vrot.lane.b32.xlu1 %v2421_v26, %s3529_s12 }
 0xa8e   : > { %2504 = vrot.lane.b32.xlu0 %v2499_v27, %s3522_s24 }
 0xa90   : > { %2463 = vrot.lane.b32.xlu1 %v2460_v29, %s3519_s15 }
 0xa92   : > { %2543 = vrot.lane.b32.xlu0 %v2538_v30, %s3530_s21 }
 0xa94   : > { %2506 = vrot.lane.b32.xlu1 %v2503_v33, %s3522_s24 }
 0xa96   : > { %2600 = vrot.lane.b32.xlu0 %v2595_v34, %s3531_s22 }
 0xa98   : > { %2545 = vrot.lane.b32.xlu1 %v2542_v35, %s3530_s21  ;;  %v1602_v35 = vld [vmem:[%s4397_s7 + $0x8] sm:$0xff] }
 0xa9c   : > { %2602 = vrot.lane.b32.xlu1 %v2599_v36, %s3531_s22 }
 0xaa0   : > { %2397 = vrot.lane.b32.xlu1 %v3978_v28, %s3516_s10 }
 0xadc   : > { %v3382_v43 = vpop.permute.xlu0 %3381 }
 0xadd   : > { %v3384_v44 = vunpack.i.h.bf16 %v3382_v43  ;;  %v3383_v45 = vunpack.i.l.bf16 %v3382_v43 }
 0xade   : > { %v3387_v21 = vpop.permute.xlu1 %3386 }
 0xadf   : > { %v3389_v47 = vunpack.i.h.bf16 %v3387_v21  ;;  %v3388_v48 = vunpack.i.l.bf16 %v3387_v21  ;;  %v2031_v51 = vsel %vm342_vm0, %v2026_v38, %v3383_v45  ;;  %v2032_v53 = vsel %vm342_vm0, %v3383_v45, %v3384_v44 }
 0xae0   : > { %v3397_v52 = vpop.permute.xlu0 %3396 }
 0xae1   : > { %v2013_v54 = vsel %vm1639_vm6, %v2008_v40, %v3388_v48  ;;  %v3399_v55 = vunpack.i.h.bf16 %v3397_v52  ;;  %v3398_v56 = vunpack.i.l.bf16 %v3397_v52  ;;  %v2014_v57 = vsel %vm1639_vm6, %v3388_v48, %v3389_v47 }
 0xae2   : > { %v3270_v58 = vpack.c.bf16 %v2031_v51, %v2013_v54  ;;  %v3392_v50 = vpop.permute.xlu1 %3391  ;;  %v3268_v16 = vpack.c.bf16 %v2032_v53, %v2014_v57 }
 0xae3   : > { %v3394_v59 = vunpack.i.h.bf16 %v3392_v50  ;;  %v3393_v60 = vunpack.i.l.bf16 %v3392_v50  ;;  %v2109_v23 = vsel %vm868_vm9, %v2104_v41, %v3398_v56  ;;  %v2110_v63 = vsel %vm868_vm9, %v3398_v56, %v3399_v55 }
 0xae4   : > { %v2147_v61 = vpop.permute.xlu0 %2146  ;;  %3269 = vmatprep.subr.bf16.mxu0 %v3268_v16 }
 0xae5   : > { %v2070_v49 = vsel %vm1698_vm5, %v2065_v42, %v3393_v60  ;;  %3271 = vmatpush1.bf16.msra.mxu0 %v3270_v58  ;;  %v2071_v62 = vsel %vm1698_vm5, %v3393_v60, %v3394_v59 }
 0xae6   : > { %v3274_v1 = vpack.c.bf16 %v2109_v23, %v2070_v49  ;;  %v2186_v2 = vpop.permute.xlu1 %2185  ;;  %v3272_v3 = vpack.c.bf16 %v2110_v63, %v2071_v62 }
 0xae8   : > { %v3402_v4 = vpop.permute.xlu0 %3401  ;;  %3273 = vmatprep.subr.bf16.mxu0 %v3272_v3 }
 0xae9   : > { %3275 = vmatpush1.bf16.msra.mxu0 %v3274_v1  ;;  %v3404_v9 = vunpack.i.h.bf16 %v3402_v4  ;;  %v3403_v0 = vunpack.i.l.bf16 %v3402_v4 }
 0xaea   : > { %v3407_v5 = vpop.permute.xlu1 %3406 }
 0xaeb   : > { %v3409_v6 = vunpack.i.h.bf16 %v3407_v5  ;;  %v3408_v7 = vunpack.i.l.bf16 %v3407_v5  ;;  %v2210_v27 = vsel %vm625_vm4, %v3403_v0, %v3404_v9 }
 0xaec   : > { %v2204_v8 = vpop.permute.xlu0 %2203 }
 0xaed   : > { %v2152_v10 = vsel %vm826_vm7, %v2147_v61, %v3408_v7  ;;  %v2153_v12 = vsel %vm826_vm7, %v3408_v7, %v3409_v6  ;;  %v2209_v24 = vsel %vm625_vm4, %v2204_v8, %v3403_v0 }
 0xaee   : > { %v3278_v39 = vpack.c.bf16 %v2152_v10, %v4098_v19  ;;  %v3412_v13 = vpop.permute.xlu1 %3411  ;;  %v3276_v17 = vpack.c.bf16 %v2153_v12, %v4102_v46 }
 0xaef   : > { %v3414_v18 = vunpack.i.h.bf16 %v3412_v13  ;;  %v3413_v20 = vunpack.i.l.bf16 %v3412_v13 }
 0xaf0   : > { %3277 = vmatprep.subr.bf16.mxu0 %v3276_v17  ;;  %v2247_v22 = vpop.permute.xlu0 %2246 }
 0xaf1   : > { %v2191_v25 = vsel %vm1681_vm3, %v2186_v2, %v3413_v20  ;;  %3279 = vmatpush1.bf16.msra.mxu0 %v3278_v39  ;;  %v2192_v26 = vsel %vm1681_vm3, %v3413_v20, %v3414_v18  ;;  %v3220_v18 = vld [vmem:[%s4392_s2 + $0x2] ss:$8 sm:$0x3] }
 0xaf2   : > { %v3282_v11 = vpack.c.bf16 %v2209_v24, %v2191_v25  ;;  %v2245_v29 = vpop.permute.xlu1 %2244  ;;  %v3280_v30 = vpack.c.bf16 %v2210_v27, %v2192_v26  ;;  %v3221_v24 = vld [vmem:[%s4392_s2 + $0x4] ss:$8 sm:$0x3]  ;;  %v3222_v27 = vld [vmem:[%s4392_s2 + $0x2] ss:$8 sm:$0x3] }
 0xaf3   : > { %v2249_v46 = vsel %vm1622_vm2, %v2245_v29, %v2247_v22  ;;  %v2730_v22 = vrot.slane %v3220_v18, %v3626_v14  ;;  %v2787_v26 = vrot.slane %v3221_v24, %v3626_v14 }
 0xaf4   : > { %3281 = vmatprep.subr.bf16.mxu0 %v3280_v30  ;;  %v2366_v19 = vpop.permute.xlu0 %2365  ;;  %v3223_v30 = vld [vmem:[%s4392_s2 + $0x4] ss:$8 sm:$0x3] }
 0xaf5   : > { %3283 = vmatpush1.bf16.msra.mxu0 %v3282_v11  ;;  %v2373_v31 = vmul.f32 0.0, %v2366_v19  ;;  %v2734_v11 = vrot.slane %v3220_v18, %v3629_v15 }
 0xaf6   : > { %v2243_v33 = vpop.permute.xlu1 %2242  ;;  %2291 = vmatprep.subr.mxu0 %v2249_v46  ;;  %v2869_v46 = vrot.slane %v3223_v30, %v3626_v14 }
 0xaf7   : > { %v2248_v34 = vsel %vm1622_vm2, %v2243_v33, %v2245_v29  ;;  %2379 = vrot.lane.b32.xlu0 %v2373_v31, %s3531_s22  ;;  %v2826_v29 = vrot.slane %v3222_v27, %v3626_v14  ;;  %v3224_v31 = vld [vmem:[%s4392_s2 + $0x2] ss:$8 sm:$0x3]  ;;  %v2830_v33 = vrot.slane %v3222_v27, %v3629_v15 }
 0xaf8   : > { %v2423_v36 = vpop.permute.xlu0 %2422 }
 0xaf9   : > { %2292 = vmatpush1.msra.mxu0 %v2248_v34  ;;  %v2430_v38 = vmul.f32 0.0, %v2423_v36  ;;  %v2908_v34 = vrot.slane %v3224_v31, %v3626_v14 }
 0xafa   : > { %3212 = vmatmul.mubr.msk.f32.vlgmr.msra.gmra.mrb[10].mxu0 %vm1901_vm8, %v1602_v35  ;;  %v2368_v42 = vpop.permute.xlu1 %2367  ;;  %v3225_v35 = vld [vmem:[%s4392_s2 + $0x4] ss:$8 sm:$0x3] }
 0xafb   : > { %2436 = vrot.lane.b32.xlu0 %v2430_v38, %s3530_s21  ;;  %3081 = vmatprep.mubr.f32.mxu0 %v3978_v28  ;;  %v2369_v53 = vsel %vm1622_vm2, %v2366_v19, %v2368_v42  ;;  %v2791_v19 = vrot.slane %v3221_v24, %v3629_v15  ;;  %v2965_v38 = vrot.slane %v3225_v35, %v3626_v14 }
 0xafc   : > { %v2462_v40 = vpop.permute.xlu0 %2461 }
 0xafd   : > { %v2469_v41 = vmul.f32 0.0, %v2462_v40 }
 0xafe   : > { %v2425_v43 = vpop.permute.xlu1 %2424 }
 0xaff   : > { %2475 = vrot.lane.b32.xlu1 %v2469_v41, %s3522_s24  ;;  %v2426_v55 = vsel %vm1681_vm3, %v2423_v36, %v2425_v43  ;;  %v2873_v36 = vrot.slane %v3223_v30, %v3629_v15  ;;  %v2969_v41 = vrot.slane %v3225_v35, %v3629_v15  ;;  %v2348_v35 = vld [vmem:[%s4397_s7 + $0x10] sm:$0xff] }
 0xb00   : > { %v2505_v60 = vpop.permute.xlu0 %2504 }
 0xb02   : > { %v2464_v47 = vpop.permute.xlu1 %2463 }
 0xb03   : > { %v2465_v51 = vsel %vm826_vm7, %v2462_v40, %v2464_v47  ;;  %v2912_v40 = vrot.slane %v3224_v31, %v3629_v15 }
 0xb04   : > { %v2544_v1 = vpop.permute.xlu0 %2543 }
 0xb06   : > { %v2507_v61 = vpop.permute.xlu1 %2506 }
 0xb07   : > { %v2508_v62 = vsel %vm868_vm9, %v2505_v60, %v2507_v61  ;;  %v2514_v2 = vmul.f32 0.0, %v2507_v61 }
 0xb08   : > { %v2601_v10 = vpop.permute.xlu0 %2600 }
 0xb0a   : > { %v2546_v3 = vpop.permute.xlu1 %2545 }
 0xb0b   : > { %v2547_v6 = vsel %vm1698_vm5, %v2544_v1, %v2546_v3  ;;  %v2553_v8 = vmul.f32 0.0, %v2546_v3 }
 0xb0e   : > { %v2603_v12 = vpop.permute.xlu1 %2602 }
 0xb0f   : > { %v2610_v39 = vmul.f32 0.0, %v2603_v12  ;;  %v2604_v17 = vsel %vm1639_vm6, %v2601_v10, %v2603_v12 }
 0xbcd   : > { %v2341_v44 = vpop.f32.mrb[10].mxu0 }
 0xbce   : > { %v2342_v45 = vadd.f32 %v2341_v44, %v3984_v32  ;;  %v2343_v21 = vpop.f32.mrb[11].mxu0 }
 0xbcf   : > { %v2344_v48 = vadd.f32 %v2343_v21, %v3988_v37 }
 0xbd0   : > { %v4211_v52 = vmax.f32 %v2342_v45, 0.0 }
 0xbd1   : > { %v4214_v54 = vmax.f32 %v2344_v48, 0.0 }
 0xbd2   : > { %v2374_v56 = vmul.f32 %v2369_v53, %v4211_v52  ;;  %v2470_v58 = vmul.f32 %v2465_v51, %v4211_v52  ;;  %v2431_v16 = vmul.f32 %v2426_v55, %v4211_v52  ;;  %v2512_v63 = vmul.f32 %v2505_v60, %v4211_v52 }
 0xbd3   : > { %v3415_v57 = vpack.i.bf16 %v4214_v54, %v4211_v52  ;;  %v2375_v32 = vmul.f32 %v2368_v42, %v4214_v54  ;;  %v2471_v37 = vmul.f32 %v2464_v47, %v4214_v54  ;;  %v2432_v59 = vmul.f32 %v2425_v43, %v4214_v54  ;;  %v2398_v42 = vpop.permute.xlu1 %2397  ;;  %v2380_v43 = vpop.permute.xlu0 %2379 }
 0xbd4   : > { %v2551_v4 = vmul.f32 %v2544_v1, %v4211_v52  ;;  %v2513_v5 = vmul.f32 %v2508_v62, %v4214_v54  ;;  %v3435_v7 = vpack.i.bf16 %v3978_v28, %v4214_v54  ;;  %v2552_v0 = vmul.f32 %v2547_v6, %v4214_v54 }
 0xbd5   : > { %3416 = vrot.lane.b32.xlu1 %v3415_v57, %s3516_s10  ;;  %v3420_v50 = vpack.i.bf16 %v2375_v32, %v2374_v56  ;;  %v3430_v23 = vpack.i.bf16 %v2471_v37, %v2470_v58  ;;  %v3425_v49 = vpack.i.bf16 %v2432_v59, %v2431_v16  ;;  %v2609_v20 = vmul.f32 %v2604_v17, %v4214_v54 }
 0xbd6   : > { %v3440_v9 = vpack.i.bf16 %v2514_v2, %v2513_v5  ;;  %v3445_v13 = vpack.i.bf16 %v2553_v8, %v2552_v0  ;;  %v2608_v25 = vmul.f32 %v2601_v10, %v4211_v52 }
 0xbd7   : > { %3421 = vrot.lane.b32.xlu0 %v3420_v50, %s3531_s22  ;;  %v2476_v44 = vpop.permute.xlu1 %2475  ;;  %v2437_v45 = vpop.permute.xlu0 %2436 }
 0xbd9   : > { %3431 = vrot.lane.b32.xlu1 %v3430_v23, %s3522_s24 }
 0xbdb   : > { %3426 = vrot.lane.b32.xlu0 %v3425_v49, %s3530_s21 }
 0xbdd   : > { %2518 = vrot.lane.b32.xlu1 %v2512_v63, %s3519_s15 }
 0xbdf   : > { %2557 = vrot.lane.b32.xlu0 %v2551_v4, %s3529_s12 }
 0xbe1   : > { %3436 = vrot.lane.b32.xlu1 %v3435_v7, %s3515_s9 }
 0xbe3   : > { %3441 = vrot.lane.b32.xlu0 %v3440_v9, %s3519_s15 }
 0xbe5   : > { %2575 = vrot.lane.b32.xlu1 %v4211_v52, %s3515_s9 }
 0xbe7   : > { %3446 = vrot.lane.b32.xlu0 %v3445_v13, %s3529_s12 }
 0xbe9   : > { %2618 = vrot.lane.b32.xlu1 %v2610_v39, %s3528_s11 }
 0xbeb   : > { %2616 = vrot.lane.b32.xlu0 %v2609_v20, %s3528_s11 }
 0xbed   : > { %2735 = vrot.lane.b32.xlu1 %v2730_v22, %s3528_s11 }
 0xbef   : > { %2614 = vrot.lane.b32.xlu0 %v2608_v25, %s3528_s11 }
 0xbf1   : > { %2792 = vrot.lane.b32.xlu1 %v2787_v26, %s3529_s12 }
 0xbf3   : > { %2737 = vrot.lane.b32.xlu0 %v2734_v11, %s3528_s11 }
 0xbf5   : > { %2831 = vrot.lane.b32.xlu1 %v2826_v29, %s3519_s15 }
 0xbf7   : > { %2794 = vrot.lane.b32.xlu0 %v2791_v19, %s3529_s12 }
 0xbf9   : > { %2874 = vrot.lane.b32.xlu1 %v2869_v46, %s3522_s24 }
 0xbfb   : > { %2833 = vrot.lane.b32.xlu0 %v2830_v33, %s3519_s15 }
 0xbfd   : > { %2913 = vrot.lane.b32.xlu1 %v2908_v34, %s3530_s21 }
 0xbff   : > { %2876 = vrot.lane.b32.xlu0 %v2873_v36, %s3522_s24 }
 0xc01   : > { %2970 = vrot.lane.b32.xlu1 %v2965_v38, %s3531_s22 }
 0xc03   : > { %2915 = vrot.lane.b32.xlu0 %v2912_v40, %s3530_s21 }
 0xc07   : > { %2972 = vrot.lane.b32.xlu0 %v2969_v41, %s3531_s22 }
 0xc0b   : > { %2767 = vrot.lane.b32.xlu0 %v3978_v28, %s3516_s10 }
 0xc47   : > { %v3417_v14 = vpop.permute.xlu1 %3416 }
 0xc48   : > { %v3419_v21 = vunpack.i.h.bf16 %v3417_v14  ;;  %v3418_v47 = vunpack.i.l.bf16 %v3417_v14 }
 0xc49   : > { %v3422_v48 = vpop.permute.xlu0 %3421 }
 0xc4a   : > { %v3424_v51 = vunpack.i.h.bf16 %v3422_v48  ;;  %v3423_v53 = vunpack.i.l.bf16 %v3422_v48  ;;  %v2403_v55 = vsel %vm342_vm0, %v2398_v42, %v3418_v47  ;;  %v2404_v15 = vsel %vm342_vm0, %v3418_v47, %v3419_v21 }
 0xc4b   : > { %v3432_v56 = vpop.permute.xlu1 %3431 }
 0xc4c   : > { %v2385_v57 = vsel %vm1639_vm6, %v2380_v43, %v3423_v53  ;;  %v3434_v32 = vunpack.i.h.bf16 %v3432_v56  ;;  %v3433_v58 = vunpack.i.l.bf16 %v3432_v56  ;;  %v2386_v28 = vsel %vm1639_vm6, %v3423_v53, %v3424_v51 }
 0xc4d   : > { %v3286_v37 = vpack.c.bf16 %v2403_v55, %v2385_v57  ;;  %v3427_v50 = vpop.permute.xlu0 %3426  ;;  %v3284_v16 = vpack.c.bf16 %v2404_v15, %v2386_v28 }
 0xc4e   : > { %v3429_v59 = vunpack.i.h.bf16 %v3427_v50  ;;  %v3428_v60 = vunpack.i.l.bf16 %v3427_v50  ;;  %v2481_v23 = vsel %vm868_vm9, %v2476_v44, %v3433_v58  ;;  %v2482_v63 = vsel %vm868_vm9, %v3433_v58, %v3434_v32 }
 0xc4f   : > { %v2519_v61 = vpop.permute.xlu1 %2518  ;;  %3285 = vmatprep.subr.bf16.mxu1 %v3284_v16 }
 0xc50   : > { %v2442_v49 = vsel %vm1698_vm5, %v2437_v45, %v3428_v60  ;;  %3287 = vmatpush1.bf16.msra.mxu1 %v3286_v37  ;;  %v2443_v62 = vsel %vm1698_vm5, %v3428_v60, %v3429_v59 }
 0xc51   : > { %v3290_v1 = vpack.c.bf16 %v2481_v23, %v2442_v49  ;;  %v2558_v2 = vpop.permute.xlu0 %2557  ;;  %v3288_v3 = vpack.c.bf16 %v2482_v63, %v2443_v62 }
 0xc53   : > { %v3437_v4 = vpop.permute.xlu1 %3436  ;;  %3289 = vmatprep.subr.bf16.mxu1 %v3288_v3 }
 0xc54   : > { %3291 = vmatpush1.bf16.msra.mxu1 %v3290_v1  ;;  %v3439_v9 = vunpack.i.h.bf16 %v3437_v4  ;;  %v3438_v0 = vunpack.i.l.bf16 %v3437_v4  ;;  %v3502_v4 = vld [vmem:[#allocation4] sm:$0xff] }
 0xc55   : > { %v3442_v5 = vpop.permute.xlu0 %3441 }
 0xc56   : > { %v3444_v6 = vunpack.i.h.bf16 %v3442_v5  ;;  %v3443_v7 = vunpack.i.l.bf16 %v3442_v5  ;;  %v2582_v27 = vsel %vm625_vm4, %v3438_v0, %v3439_v9 }
 0xc57   : > { %v2576_v8 = vpop.permute.xlu1 %2575 }
 0xc58   : > { %v2524_v10 = vsel %vm826_vm7, %v2519_v61, %v3443_v7  ;;  %v2525_v12 = vsel %vm826_vm7, %v3443_v7, %v3444_v6  ;;  %v2581_v24 = vsel %vm625_vm4, %v2576_v8, %v3438_v0 }
 0xc59   : > { %v3294_v39 = vpack.c.bf16 %v2524_v10, %v4211_v52  ;;  %v3447_v13 = vpop.permute.xlu0 %3446  ;;  %v3292_v17 = vpack.c.bf16 %v2525_v12, %v4214_v54 }
 0xc5a   : > { %v3449_v18 = vunpack.i.h.bf16 %v3447_v13  ;;  %v3448_v20 = vunpack.i.l.bf16 %v3447_v13 }
 0xc5b   : > { %3293 = vmatprep.subr.bf16.mxu1 %v3292_v17  ;;  %v2619_v22 = vpop.permute.xlu1 %2618 }
 0xc5c   : > { %v2563_v25 = vsel %vm1681_vm3, %v2558_v2, %v3448_v20  ;;  %3295 = vmatpush1.bf16.msra.mxu1 %v3294_v39  ;;  %v2564_v26 = vsel %vm1681_vm3, %v3448_v20, %v3449_v18 }
 0xc5d   : > { %v3298_v11 = vpack.c.bf16 %v2581_v24, %v2563_v25  ;;  %v2617_v29 = vpop.permute.xlu0 %2616  ;;  %v3296_v30 = vpack.c.bf16 %v2582_v27, %v2564_v26 }
 0xc5e   : > { %v2621_v46 = vsel %vm1622_vm2, %v2617_v29, %v2619_v22 }
 0xc5f   : > { %3297 = vmatprep.subr.bf16.mxu1 %v3296_v30  ;;  %v2736_v19 = vpop.permute.xlu1 %2735 }
 0xc60   : > { %3299 = vmatpush1.bf16.msra.mxu1 %v3298_v11  ;;  %v2743_v31 = vmul.f32 0.0, %v2736_v19 }
 0xc61   : > { %v2615_v33 = vpop.permute.xlu0 %2614  ;;  %2663 = vmatprep.subr.mxu1 %v2621_v46 }
 0xc62   : > { %v2620_v34 = vsel %vm1622_vm2, %v2615_v33, %v2617_v29  ;;  %2749 = vrot.lane.b32.xlu1 %v2743_v31, %s3531_s22 }
 0xc63   : > { %v2793_v36 = vpop.permute.xlu1 %2792 }
 0xc64   : > { %2664 = vmatpush1.msra.mxu1 %v2620_v34  ;;  %v2800_v38 = vmul.f32 0.0, %v2793_v36 }
 0xc65   : > { %3219 = vmatmul.mubr.msk.f32.vlgmr.msra.gmra.mrb[10].mxu1 %vm1901_vm8, %v2348_v35  ;;  %v2738_v42 = vpop.permute.xlu0 %2737 }
 0xc66   : > { %2806 = vrot.lane.b32.xlu1 %v2800_v38, %s3530_s21  ;;  %v2739_v48 = vsel %vm1622_vm2, %v2736_v19, %v2738_v42 }
 0xc67   : > { %v2832_v40 = vpop.permute.xlu1 %2831 }
 0xc68   : > { %v2839_v41 = vmul.f32 0.0, %v2832_v40 }
 0xc69   : > { %v2795_v43 = vpop.permute.xlu0 %2794 }
 0xc6a   : > { %2845 = vrot.lane.b32.xlu0 %v2839_v41, %s3522_s24  ;;  %v2796_v53 = vsel %vm1681_vm3, %v2793_v36, %v2795_v43 }
 0xc6b   : > { %v2875_v50 = vpop.permute.xlu1 %2874 }
 0xc6d   : > { %v2834_v45 = vpop.permute.xlu0 %2833 }
 0xc6e   : > { %v2835_v47 = vsel %vm826_vm7, %v2832_v40, %v2834_v45 }
 0xc6f   : > { %v2914_v49 = vpop.permute.xlu1 %2913 }
 0xc71   : > { %v2877_v59 = vpop.permute.xlu0 %2876 }
 0xc72   : > { %v2878_v61 = vsel %vm868_vm9, %v2875_v50, %v2877_v59  ;;  %v2884_v63 = vmul.f32 0.0, %v2877_v59 }
 0xc73   : > { %v2971_v9 = vpop.permute.xlu1 %2970 }
 0xc75   : > { %v2916_v2 = vpop.permute.xlu0 %2915 }
 0xc76   : > { %v2917_v3 = vsel %vm1698_vm5, %v2914_v49, %v2916_v2  ;;  %v2923_v8 = vmul.f32 0.0, %v2916_v2 }
 0xc79   : > { %v2973_v0 = vpop.permute.xlu0 %2972 }
 0xc7a   : > { %v2980_v12 = vmul.f32 0.0, %v2973_v0  ;;  %v2974_v39 = vsel %vm1639_vm6, %v2971_v9, %v2973_v0 }
 0xc7d   : > { %v2768_v18 = vpop.permute.xlu0 %2767 }
 0xcd4   : > { %v2750_v20 = vpop.permute.xlu1 %2749 }
 0xcd8   : > { %v2807_v24 = vpop.permute.xlu1 %2806 }
 0xcdc   : > { %v2846_v22 = vpop.permute.xlu0 %2845 }
 0xd38   : > { %v2713_v44 = vpop.f32.mrb[10].mxu1 }
 0xd39   : > { %v4319_v14 = vmax.f32 %v2713_v44, 0.0  ;;  %v2715_v21 = vpop.f32.mrb[11].mxu1 }
 0xd3a   : > { %v4323_v51 = vmax.f32 %v2715_v21, 0.0 }
 0xd3b   : > { %v2744_v55 = vmul.f32 %v2739_v48, %v4319_v14  ;;  %v2840_v56 = vmul.f32 %v2835_v47, %v4319_v14  ;;  %v2801_v28 = vmul.f32 %v2796_v53, %v4319_v14  ;;  %v2882_v23 = vmul.f32 %v2875_v50, %v4319_v14 }
 0xd3c   : > { %v2841_v15 = vmul.f32 %v2834_v45, %v4323_v51  ;;  %v3450_v57 = vpack.i.bf16 %v4323_v51, %v4319_v14  ;;  %v2745_v32 = vmul.f32 %v2738_v42, %v4323_v51  ;;  %v2802_v37 = vmul.f32 %v2795_v43, %v4323_v51 }
 0xd3d   : > { %v2883_v62 = vmul.f32 %v2878_v61, %v4323_v51  ;;  %v2921_v1 = vmul.f32 %v2914_v49, %v4319_v14  ;;  %v3470_v5 = vpack.i.bf16 %v3502_v4, %v4323_v51  ;;  %v2922_v7 = vmul.f32 %v2917_v3, %v4323_v51 }
 0xd3e   : > { %3451 = vrot.lane.b32.xlu0 %v3450_v57, %s3516_s10  ;;  %v3455_v58 = vpack.i.bf16 %v2745_v32, %v2744_v55  ;;  %v3465_v16 = vpack.i.bf16 %v2841_v15, %v2840_v56  ;;  %v3460_v60 = vpack.i.bf16 %v2802_v37, %v2801_v28  ;;  %v2979_v13 = vmul.f32 %v2974_v39, %v4323_v51 }
 0xd3f   : > { %v3475_v6 = vpack.i.bf16 %v2884_v63, %v2883_v62  ;;  %v3480_v10 = vpack.i.bf16 %v2923_v8, %v2922_v7  ;;  %v2978_v17 = vmul.f32 %v2971_v9, %v4319_v14  ;;  %v2349_v9 = vld [vmem:[%s4397_s7 + $0x18] sm:$0xff] }
 0xd40   : > { %3456 = vrot.lane.b32.xlu1 %v3455_v58, %s3531_s22 }
 0xd42   : > { %3466 = vrot.lane.b32.xlu0 %v3465_v16, %s3522_s24 }
 0xd44   : > { %3461 = vrot.lane.b32.xlu1 %v3460_v60, %s3530_s21 }
 0xd46   : > { %2888 = vrot.lane.b32.xlu0 %v2882_v23, %s3519_s15 }
 0xd48   : > { %2927 = vrot.lane.b32.xlu1 %v2921_v1, %s3529_s12 }
 0xd4a   : > { %3471 = vrot.lane.b32.xlu0 %v3470_v5, %s3515_s9 }
 0xd4c   : > { %3476 = vrot.lane.b32.xlu1 %v3475_v6, %s3519_s15  ;;  %s4404_s15 = sshll.u32 %s4406_s28, 4 }
 0xd4e   : > { %2945 = vrot.lane.b32.xlu0 %v4319_v14, %s3515_s9 }
 0xd50   : > { %3481 = vrot.lane.b32.xlu1 %v3480_v10, %s3529_s12  ;;  %s325_s12 = scalar_lea.vmem %s4398_s8, %s4404_s15 }
 0xd52   : > { %2988 = vrot.lane.b32.xlu0 %v2980_v12, %s3528_s11 }
 0xd54   : > { %2986 = vrot.lane.b32.xlu1 %v2979_v13, %s3528_s11 }
 0xd58   : > { %2984 = vrot.lane.b32.xlu1 %v2978_v17, %s3528_s11 }
 0xdb0   : > { %v3452_v25 = vpop.permute.xlu0 %3451 }
 0xdb1   : > { %v3454_v26 = vunpack.i.h.bf16 %v3452_v25  ;;  %v3453_v27 = vunpack.i.l.bf16 %v3452_v25 }
 0xdb2   : > { %v3457_v11 = vpop.permute.xlu1 %3456 }
 0xdb3   : > { %v3459_v29 = vunpack.i.h.bf16 %v3457_v11  ;;  %v3458_v30 = vunpack.i.l.bf16 %v3457_v11  ;;  %v2773_v19 = vsel %vm342_vm0, %v2768_v18, %v3453_v27  ;;  %v2774_v31 = vsel %vm342_vm0, %v3453_v27, %v3454_v26 }
 0xdb4   : > { %v3467_v46 = vpop.permute.xlu0 %3466 }
 0xdb5   : > { %v2755_v33 = vsel %vm1639_vm6, %v2750_v20, %v3458_v30  ;;  %v3469_v34 = vunpack.i.h.bf16 %v3467_v46  ;;  %v3468_v35 = vunpack.i.l.bf16 %v3467_v46  ;;  %v2756_v36 = vsel %vm1639_vm6, %v3458_v30, %v3459_v29 }
 0xdb6   : > { %v3302_v38 = vpack.c.bf16 %v2773_v19, %v2755_v33  ;;  %v3462_v40 = vpop.permute.xlu1 %3461  ;;  %v3300_v41 = vpack.c.bf16 %v2774_v31, %v2756_v36 }
 0xdb7   : > { %v3464_v42 = vunpack.i.h.bf16 %v3462_v40  ;;  %v3463_v43 = vunpack.i.l.bf16 %v3462_v40  ;;  %v2851_v45 = vsel %vm868_vm9, %v2846_v22, %v3468_v35  ;;  %v2852_v48 = vsel %vm868_vm9, %v3468_v35, %v3469_v34 }
 0xdb8   : > { %v2889_v44 = vpop.permute.xlu0 %2888  ;;  %3301 = vmatprep.subr.bf16.mxu0 %v3300_v41 }
 0xdb9   : > { %v2812_v21 = vsel %vm1698_vm5, %v2807_v24, %v3463_v43  ;;  %3303 = vmatpush1.bf16.msra.mxu0 %v3302_v38  ;;  %v2813_v47 = vsel %vm1698_vm5, %v3463_v43, %v3464_v42 }
 0xdba   : > { %v3306_v53 = vpack.c.bf16 %v2851_v45, %v2812_v21  ;;  %v2928_v55 = vpop.permute.xlu1 %2927  ;;  %v3304_v56 = vpack.c.bf16 %v2852_v48, %v2813_v47 }
 0xdbc   : > { %v3472_v15 = vpop.permute.xlu0 %3471  ;;  %3305 = vmatprep.subr.bf16.mxu0 %v3304_v56 }
 0xdbd   : > { %3307 = vmatpush1.bf16.msra.mxu0 %v3306_v53  ;;  %v3474_v28 = vunpack.i.h.bf16 %v3472_v15  ;;  %v3473_v37 = vunpack.i.l.bf16 %v3472_v15 }
 0xdbe   : > { %v3477_v57 = vpop.permute.xlu1 %3476 }
 0xdbf   : > { %v3479_v32 = vunpack.i.h.bf16 %v3477_v57  ;;  %v3478_v58 = vunpack.i.l.bf16 %v3477_v57  ;;  %v2952_v3 = vsel %vm625_vm4, %v3473_v37, %v3474_v28 }
 0xdc0   : > { %v2946_v60 = vpop.permute.xlu0 %2945 }
 0xdc1   : > { %v2894_v50 = vsel %vm826_vm7, %v2889_v44, %v3478_v58  ;;  %v2895_v16 = vsel %vm826_vm7, %v3478_v58, %v3479_v32  ;;  %v2951_v63 = vsel %vm625_vm4, %v2946_v60, %v3473_v37 }
 0xdc2   : > { %v3310_v59 = vpack.c.bf16 %v2894_v50, %v4319_v14  ;;  %v3482_v61 = vpop.permute.xlu1 %3481  ;;  %v3308_v23 = vpack.c.bf16 %v2895_v16, %v4323_v51 }
 0xdc3   : > { %v3484_v49 = vunpack.i.h.bf16 %v3482_v61  ;;  %v3483_v62 = vunpack.i.l.bf16 %v3482_v61 }
 0xdc4   : > { %3309 = vmatprep.subr.bf16.mxu0 %v3308_v23  ;;  %v2989_v5 = vpop.permute.xlu0 %2988 }
 0xdc5   : > { %v2933_v1 = vsel %vm1681_vm3, %v2928_v55, %v3483_v62  ;;  %3311 = vmatpush1.bf16.msra.mxu0 %v3310_v59  ;;  %v2934_v2 = vsel %vm1681_vm3, %v3483_v62, %v3484_v49 }
 0xdc6   : > { %v3314_v4 = vpack.c.bf16 %v2951_v63, %v2933_v1  ;;  %v2987_v14 = vpop.permute.xlu1 %2986  ;;  %v3312_v6 = vpack.c.bf16 %v2952_v3, %v2934_v2 }
 0xdc7   : > { %v2991_v51 = vsel %vm1622_vm2, %v2987_v14, %v2989_v5 }
 0xdc8   : > { %3313 = vmatprep.subr.bf16.mxu0 %v3312_v6 }
 0xdc9   : > { %3315 = vmatpush1.bf16.msra.mxu0 %v3314_v4 }
 0xdca   : > { %v2985_v7 = vpop.permute.xlu1 %2984  ;;  %3033 = vmatprep.subr.mxu0 %v2991_v51 }
 0xdcb   : > { %v2990_v8 = vsel %vm1622_vm2, %v2985_v7, %v2987_v14 }
 0xdcd   : > { %3034 = vmatpush1.msra.mxu0 %v2990_v8 }
 0xdce   : > { %3226 = vmatmul.mubr.msk.f32.vlgmr.msra.gmra.mrb[12].mxu0 %vm1901_vm8, %v2349_v9 }
 0xea1   : > { %v3083_v0 = vpop.f32.mrb[12].mxu0 }
 0xea2   : > { %v3084_v10 = vadd.f32 %v3083_v0, %v4211_v52  ;;  %v3085_v12 = vpop.f32.mrb[13].mxu0 }
 0xea3   : > { %v3086_v39 = vadd.f32 %v3085_v12, %v4214_v54 }
 0xea4   : > { %v3088_v13 = vmax.f32 %v3084_v10, 0.0 }
 0xea5   : > { %v3089_v17 = vmax.f32 %v3086_v39, 0.0 }
 0xea6   : > { %3090 = vst [vmem:[%s325_s12] sm:$0xff] %v3088_v13 }
 0xea7   : > { %3091 = vst [vmem:[%s325_s12 + $0x8] sm:$0xff] %v3089_v17 }
 0xea8 PF: > { %s18_s27 = sadd.s32 1, %s3509_s27  }
 0xea9   : > { %p15_p4 = scmp.ge.s32.totalorder %s18_s27, 4  }
 0xeab   :  { %17 = sbr.rel (!%p15_p4) target bundleno = 1 (0x1), region = 119 }

</bundles_post_ra>
